<compile_context>
chip_gen: v7x
topology: tpu7x:2x2x1
jax: 0.10.0
libtpu: 0.0.40
codegen_flags: <defaults>
</compile_context>

<pallas_src>
import math

import jax
import jax.numpy as jnp
import numpy as np
from jax.experimental import pallas as pl
from jax.experimental.pallas import tpu as pltpu


def _lstm_kernel(x_ref, w_ref, u_ref, b_ref,
                 hseq_ref, hfin_ref, cfin_ref):
    """One grid step == one time-block of T_BLK timesteps.

    x_ref    : (bs, T_BLK, input_size)   current time-block of the input
    w_ref    : (input_size, 4*HS)        resident
    u_ref    : (HS, 4*HS)                resident
    b_ref    : (1, 4*HS)                 resident
    hseq_ref : (bs, T_BLK, HS)           per-block output slab
    hfin_ref : (bs, HS)  resident output block == recurrent h state
    cfin_ref : (bs, HS)  resident output block == recurrent c state
    """
    tb = pl.program_id(0)

    # Recurrent state lives in the resident (constant index_map) output blocks.
    @pl.when(tb == 0)
    def _():
        hfin_ref[...] = jnp.zeros_like(hfin_ref)
        cfin_ref[...] = jnp.zeros_like(cfin_ref)

    bs, t_blk, input_size = x_ref.shape
    HS = hfin_ref.shape[-1]

    # ---- hoisted input projection: one MXU matmul for the whole block ------
    x2d = x_ref[...].reshape(bs * t_blk, input_size)
    g2d = (jnp.dot(x2d, w_ref[...], preferred_element_type=jnp.float32)
           + b_ref[...])                                  # (bs*T_BLK, 4*HS)
    g_all = g2d.reshape(bs, t_blk, 4 * HS)

    u = u_ref[...]
    h_t = hfin_ref[...].astype(jnp.float32)
    c_t = cfin_ref[...].astype(jnp.float32)

    # ---- sequential recurrence over the resident block (fully unrolled) ----
    # T_BLK is a compile-time block-shape constant, so a static Python loop is
    # fine and keeps all slices static.
    for t in range(t_blk):
        gates = g_all[:, t, :] + jnp.dot(h_t, u,
                                         preferred_element_type=jnp.float32)
        i_t = jax.nn.sigmoid(gates[:, 0 * HS:1 * HS])
        f_t = jax.nn.sigmoid(gates[:, 1 * HS:2 * HS])
        g_t = jnp.tanh(gates[:, 2 * HS:3 * HS])
        o_t = jax.nn.sigmoid(gates[:, 3 * HS:4 * HS])
        c_t = f_t * c_t + i_t * g_t
        h_t = o_t * jnp.tanh(c_t)
        hseq_ref[:, t, :] = h_t.astype(hseq_ref.dtype)

    # Carry state to the next time-block (and final outputs at grid end).
    hfin_ref[...] = h_t.astype(hfin_ref.dtype)
    cfin_ref[...] = c_t.astype(cfin_ref.dtype)


def lstm_forward(x, W, U, bias, *, t_blk=None):
    """x: (batch, seq, input_size) float32.  Returns (hidden_seq, (h_T, c_T)),
    hidden_seq shaped (batch, seq, hidden) like the PyTorch forward()."""
    bs, seq_sz, input_size = x.shape
    four_hs = W.shape[1]
    HS = four_hs // 4

    if t_blk is None:
        if seq_sz <= 32:
            t_blk = seq_sz                      # whole sequence resident
        else:
            t_blk = max(c for c in range(1, 33) if seq_sz % c == 0)
    assert seq_sz % t_blk == 0, "seq length must be divisible by time block"

    bias_2d = bias.reshape(1, four_hs)

    out_shapes = (
        jax.ShapeDtypeStruct((bs, seq_sz, HS), x.dtype),   # hidden_seq
        jax.ShapeDtypeStruct((bs, HS), x.dtype),           # h_T
        jax.ShapeDtypeStruct((bs, HS), x.dtype),           # c_T
    )

    grid_spec = pltpu.PrefetchScalarGridSpec(
        num_scalar_prefetch=0,
        grid=(seq_sz // t_blk,),
        in_specs=[
            pl.BlockSpec((bs, t_blk, input_size), lambda tb: (0, tb, 0)),  # x block
            pl.BlockSpec((input_size, four_hs), lambda tb: (0, 0)),        # W (resident)
            pl.BlockSpec((HS, four_hs), lambda tb: (0, 0)),                # U (resident)
            pl.BlockSpec((1, four_hs), lambda tb: (0, 0)),                 # bias
        ],
        out_specs=[
            pl.BlockSpec((bs, t_blk, HS), lambda tb: (0, tb, 0)),          # hidden_seq block
            pl.BlockSpec((bs, HS), lambda tb: (0, 0)),                     # h_T (resident state)
            pl.BlockSpec((bs, HS), lambda tb: (0, 0)),                     # c_T (resident state)
        ],
        scratch_shapes=[],
    )

    hidden_seq, h_fin, c_fin = pl.pallas_call(
        _lstm_kernel,
        out_shape=out_shapes,
        grid_spec=grid_spec,
        compiler_params=pltpu.CompilerParams(
            dimension_semantics=("arbitrary",)),   # sequential recurrence axis
    )(x, W, U, bias_2d)

    return hidden_seq, (h_fin, c_fin)


def lstm_reference(x, W, U, bias):
    """Pure-JAX reference mirroring the PyTorch forward."""
    bs, seq_sz, _ = x.shape
    HS = W.shape[1] // 4
    h = jnp.zeros((bs, HS), jnp.float32)
    c = jnp.zeros((bs, HS), jnp.float32)

    def step(carry, x_t):
        h, c = carry
        gates = x_t @ W + h @ U + bias
        i_t = jax.nn.sigmoid(gates[:, :HS])
        f_t = jax.nn.sigmoid(gates[:, HS:2 * HS])
        g_t = jnp.tanh(gates[:, 2 * HS:3 * HS])
        o_t = jax.nn.sigmoid(gates[:, 3 * HS:])
        c = f_t * c + i_t * g_t
        h = o_t * jnp.tanh(c)
        return (h, c), h

    (h, c), hs = jax.lax.scan(step, (h, c), jnp.transpose(x, (1, 0, 2)))
    return jnp.transpose(hs, (1, 0, 2)), (h, c)


if __name__ == "__main__":
    # Small shapes consistent with LSTMNet(name, input_size, hidden_size):
    batch, seq, input_size, hidden = 8, 8, 16, 32

    key = jax.random.PRNGKey(0)
    kx, kw, ku, kb = jax.random.split(key, 4)

    # init_weights(): uniform(-stdv, stdv), stdv = 1/sqrt(hidden_size)
    stdv = 1.0 / math.sqrt(hidden)
    W = jax.random.uniform(kw, (input_size, hidden * 4), jnp.float32, -stdv, stdv)
    U = jax.random.uniform(ku, (hidden, hidden * 4), jnp.float32, -stdv, stdv)
    bias = jax.random.uniform(kb, (hidden * 4,), jnp.float32, -stdv, stdv)

    x = jax.random.normal(kx, (batch, seq, input_size), jnp.float32)

    hidden_seq, (h_T, c_T) = jax.block_until_ready(lstm_forward(x, W, U, bias))

    # sanity check vs pure-JAX reference
    ref_seq, (ref_h, ref_c) = lstm_reference(x, W, U, bias)
    np.testing.assert_allclose(np.asarray(hidden_seq), np.asarray(ref_seq),
                               rtol=2e-5, atol=2e-5)
    np.testing.assert_allclose(np.asarray(h_T), np.asarray(ref_h), rtol=2e-5, atol=2e-5)
    np.testing.assert_allclose(np.asarray(c_T), np.asarray(ref_c), rtol=2e-5, atol=2e-5)

    print("KERNEL_OK")
</pallas_src>

<mosaic_0001>
module attributes {stable_mosaic.version = 11 : i64} {
  func.func @_lstm_kernel(%arg0: i32, %arg1: memref<8x8x16xf32, #tpu.memory_space<vmem>>, %arg2: memref<16x128xf32, #tpu.memory_space<vmem>>, %arg3: memref<32x128xf32, #tpu.memory_space<vmem>>, %arg4: memref<1x128xf32, #tpu.memory_space<vmem>>, %arg5: memref<8x8x32xf32, #tpu.memory_space<vmem>>, %arg6: memref<8x32xf32, #tpu.memory_space<vmem>>, %arg7: memref<8x32xf32, #tpu.memory_space<vmem>>) attributes {dimension_semantics = [#tpu.dimension_semantics<arbitrary>], iteration_bounds = array<i64: 1>, scalar_prefetch = 0 : i64, scratch_operands = 0 : i64, tpu.core_type = #tpu.core_type<tc>, window_params = [{transform_indices = @transform_0, window_bounds = array<i64: 8, 8, 16>}, {pipeline_mode = #tpu.pipeline_mode<synchronous>, transform_indices = @transform_1, window_bounds = array<i64: 16, 128>}, {pipeline_mode = #tpu.pipeline_mode<synchronous>, transform_indices = @transform_2, window_bounds = array<i64: 32, 128>}, {pipeline_mode = #tpu.pipeline_mode<synchronous>, transform_indices = @transform_3, window_bounds = array<i64: 1, 128>}, {transform_indices = @transform_4, window_bounds = array<i64: 8, 8, 32>}, {pipeline_mode = #tpu.pipeline_mode<synchronous>, transform_indices = @transform_5, window_bounds = array<i64: 8, 32>}, {pipeline_mode = #tpu.pipeline_mode<synchronous>, transform_indices = @transform_6, window_bounds = array<i64: 8, 32>}]} {
    %c0_i32 = arith.constant 0 : i32
    %0 = arith.cmpi eq, %arg0, %c0_i32 : i32
    %1 = arith.extui %0 : i1 to i32
    %c0_i32_0 = arith.constant 0 : i32
    %2 = arith.cmpi ne, %1, %c0_i32_0 : i32
    scf.if %2 {
      %cst_66 = arith.constant 0.000000e+00 : f32
      %272 = vector.broadcast %cst_66 : f32 to vector<8x32xf32>
      %c0_67 = arith.constant 0 : index
      %c0_68 = arith.constant 0 : index
      %273 = vector.load %arg6[%c0_67, %c0_68] : memref<8x32xf32, #tpu.memory_space<vmem>>, vector<8x32xf32>
      tpu.vector_store %arg6[%c0_67, %c0_68], %272 {strides = array<i32>} : memref<8x32xf32, #tpu.memory_space<vmem>>, vector<8x32xf32>,
      %cst_69 = arith.constant 0.000000e+00 : f32
      %274 = vector.broadcast %cst_69 : f32 to vector<8x32xf32>
      %c0_70 = arith.constant 0 : index
      %c0_71 = arith.constant 0 : index
      %275 = vector.load %arg7[%c0_70, %c0_71] : memref<8x32xf32, #tpu.memory_space<vmem>>, vector<8x32xf32>
      tpu.vector_store %arg7[%c0_70, %c0_71], %274 {strides = array<i32>} : memref<8x32xf32, #tpu.memory_space<vmem>>, vector<8x32xf32>,
    } else {
    }
    %c0 = arith.constant 0 : index
    %c0_1 = arith.constant 0 : index
    %c0_2 = arith.constant 0 : index
    %3 = vector.load %arg1[%c0, %c0_1, %c0_2] : memref<8x8x16xf32, #tpu.memory_space<vmem>>, vector<8x8x16xf32>
    %4 = vector.shape_cast %3 : vector<8x8x16xf32> to vector<64x16xf32>
    %c0_3 = arith.constant 0 : index
    %c0_4 = arith.constant 0 : index
    %5 = vector.load %arg2[%c0_3, %c0_4] : memref<16x128xf32, #tpu.memory_space<vmem>>, vector<16x128xf32>
    %cst = arith.constant dense<0.000000e+00> : vector<64x128xf32>
    %6 = tpu.matmul %4, %5, %cst {dimension_numbers = #tpu.dot_dimension_numbers<[1], [0], [0], [1], [0, 0, 1, 1], [], []>} : vector<64x16xf32>, vector<16x128xf32>, vector<64x128xf32> -> vector<64x128xf32>
    %c0_5 = arith.constant 0 : index
    %c0_6 = arith.constant 0 : index
    %7 = vector.load %arg4[%c0_5, %c0_6] : memref<1x128xf32, #tpu.memory_space<vmem>>, vector<1x128xf32>
    %8 = vector.broadcast %7 : vector<1x128xf32> to vector<64x128xf32>
    %9 = arith.addf %6, %8 : vector<64x128xf32>
    %10 = vector.shape_cast %9 : vector<64x128xf32> to vector<8x8x128xf32>
    %c0_7 = arith.constant 0 : index
    %c0_8 = arith.constant 0 : index
    %11 = vector.load %arg3[%c0_7, %c0_8] : memref<32x128xf32, #tpu.memory_space<vmem>>, vector<32x128xf32>
    %c0_9 = arith.constant 0 : index
    %c0_10 = arith.constant 0 : index
    %12 = vector.load %arg6[%c0_9, %c0_10] : memref<8x32xf32, #tpu.memory_space<vmem>>, vector<8x32xf32>
    %c0_11 = arith.constant 0 : index
    %c0_12 = arith.constant 0 : index
    %13 = vector.load %arg7[%c0_11, %c0_12] : memref<8x32xf32, #tpu.memory_space<vmem>>, vector<8x32xf32>
    %14 = vector.extract_strided_slice %10 {offsets = [0, 0, 0], sizes = [8, 1, 128], strides = [1, 1, 1]} : vector<8x8x128xf32> to vector<8x1x128xf32>
    %15 = vector.shape_cast %14 : vector<8x1x128xf32> to vector<8x128xf32>
    %cst_13 = arith.constant dense<0.000000e+00> : vector<8x128xf32>
    %16 = tpu.matmul %12, %11, %cst_13 {dimension_numbers = #tpu.dot_dimension_numbers<[1], [0], [0], [1], [0, 0, 1, 1], [], []>} : vector<8x32xf32>, vector<32x128xf32>, vector<8x128xf32> -> vector<8x128xf32>
    %17 = arith.addf %15, %16 : vector<8x128xf32>
    %18 = vector.extract_strided_slice %17 {offsets = [0, 0], sizes = [8, 32], strides = [1, 1]} : vector<8x128xf32> to vector<8x32xf32>
    %19 = arith.negf %18 : vector<8x32xf32>
    %20 = math.exp %19 : vector<8x32xf32>
    %cst_14 = arith.constant 1.000000e+00 : f32
    %21 = vector.broadcast %cst_14 : f32 to vector<8x32xf32>
    %22 = arith.addf %21, %20 : vector<8x32xf32>
    %23 = arith.divf %21, %22 : vector<8x32xf32>
    %24 = vector.extract_strided_slice %17 {offsets = [0, 32], sizes = [8, 32], strides = [1, 1]} : vector<8x128xf32> to vector<8x32xf32>
    %25 = arith.negf %24 : vector<8x32xf32>
    %26 = math.exp %25 : vector<8x32xf32>
    %cst_15 = arith.constant 1.000000e+00 : f32
    %27 = vector.broadcast %cst_15 : f32 to vector<8x32xf32>
    %28 = arith.addf %27, %26 : vector<8x32xf32>
    %29 = arith.divf %27, %28 : vector<8x32xf32>
    %30 = vector.extract_strided_slice %17 {offsets = [0, 64], sizes = [8, 32], strides = [1, 1]} : vector<8x128xf32> to vector<8x32xf32>
    %31 = math.tanh %30 : vector<8x32xf32>
    %32 = vector.extract_strided_slice %17 {offsets = [0, 96], sizes = [8, 32], strides = [1, 1]} : vector<8x128xf32> to vector<8x32xf32>
    %33 = arith.negf %32 : vector<8x32xf32>
    %34 = math.exp %33 : vector<8x32xf32>
    %cst_16 = arith.constant 1.000000e+00 : f32
    %35 = vector.broadcast %cst_16 : f32 to vector<8x32xf32>
    %36 = arith.addf %35, %34 : vector<8x32xf32>
    %37 = arith.divf %35, %36 : vector<8x32xf32>
    %38 = arith.mulf %29, %13 : vector<8x32xf32>
    %39 = arith.mulf %23, %31 : vector<8x32xf32>
    %40 = arith.addf %38, %39 : vector<8x32xf32>
    %41 = math.tanh %40 : vector<8x32xf32>
    %42 = arith.mulf %37, %41 : vector<8x32xf32>
    %c0_17 = arith.constant 0 : index
    %c0_18 = arith.constant 0 : index
    %c0_19 = arith.constant 0 : index
    %43 = vector.load %arg5[%c0_17, %c0_18, %c0_19] : memref<8x8x32xf32, #tpu.memory_space<vmem>>, vector<8x1x32xf32>
    %44 = vector.shape_cast %43 : vector<8x1x32xf32> to vector<8x32xf32>
    %45 = vector.shape_cast %42 : vector<8x32xf32> to vector<8x1x32xf32>
    tpu.vector_store %arg5[%c0_17, %c0_18, %c0_19], %45 {strides = array<i32>} : memref<8x8x32xf32, #tpu.memory_space<vmem>>, vector<8x1x32xf32>,
    %46 = vector.extract_strided_slice %10 {offsets = [0, 1, 0], sizes = [8, 1, 128], strides = [1, 1, 1]} : vector<8x8x128xf32> to vector<8x1x128xf32>
    %47 = vector.shape_cast %46 : vector<8x1x128xf32> to vector<8x128xf32>
    %cst_20 = arith.constant dense<0.000000e+00> : vector<8x128xf32>
    %48 = tpu.matmul %42, %11, %cst_20 {dimension_numbers = #tpu.dot_dimension_numbers<[1], [0], [0], [1], [0, 0, 1, 1], [], []>} : vector<8x32xf32>, vector<32x128xf32>, vector<8x128xf32> -> vector<8x128xf32>
    %49 = arith.addf %47, %48 : vector<8x128xf32>
    %50 = vector.extract_strided_slice %49 {offsets = [0, 0], sizes = [8, 32], strides = [1, 1]} : vector<8x128xf32> to vector<8x32xf32>
    %51 = arith.negf %50 : vector<8x32xf32>
    %52 = math.exp %51 : vector<8x32xf32>
    %cst_21 = arith.constant 1.000000e+00 : f32
    %53 = vector.broadcast %cst_21 : f32 to vector<8x32xf32>
    %54 = arith.addf %53, %52 : vector<8x32xf32>
    %55 = arith.divf %53, %54 : vector<8x32xf32>
    %56 = vector.extract_strided_slice %49 {offsets = [0, 32], sizes = [8, 32], strides = [1, 1]} : vector<8x128xf32> to vector<8x32xf32>
    %57 = arith.negf %56 : vector<8x32xf32>
    %58 = math.exp %57 : vector<8x32xf32>
    %cst_22 = arith.constant 1.000000e+00 : f32
    %59 = vector.broadcast %cst_22 : f32 to vector<8x32xf32>
    %60 = arith.addf %59, %58 : vector<8x32xf32>
    %61 = arith.divf %59, %60 : vector<8x32xf32>
    %62 = vector.extract_strided_slice %49 {offsets = [0, 64], sizes = [8, 32], strides = [1, 1]} : vector<8x128xf32> to vector<8x32xf32>
    %63 = math.tanh %62 : vector<8x32xf32>
    %64 = vector.extract_strided_slice %49 {offsets = [0, 96], sizes = [8, 32], strides = [1, 1]} : vector<8x128xf32> to vector<8x32xf32>
    %65 = arith.negf %64 : vector<8x32xf32>
    %66 = math.exp %65 : vector<8x32xf32>
    %cst_23 = arith.constant 1.000000e+00 : f32
    %67 = vector.broadcast %cst_23 : f32 to vector<8x32xf32>
    %68 = arith.addf %67, %66 : vector<8x32xf32>
    %69 = arith.divf %67, %68 : vector<8x32xf32>
    %70 = arith.mulf %61, %40 : vector<8x32xf32>
    %71 = arith.mulf %55, %63 : vector<8x32xf32>
    %72 = arith.addf %70, %71 : vector<8x32xf32>
    %73 = math.tanh %72 : vector<8x32xf32>
    %74 = arith.mulf %69, %73 : vector<8x32xf32>
    %c0_24 = arith.constant 0 : index
    %c1 = arith.constant 1 : index
    %c0_25 = arith.constant 0 : index
    %75 = vector.load %arg5[%c0_24, %c1, %c0_25] : memref<8x8x32xf32, #tpu.memory_space<vmem>>, vector<8x1x32xf32>
    %76 = vector.shape_cast %75 : vector<8x1x32xf32> to vector<8x32xf32>
    %77 = vector.shape_cast %74 : vector<8x32xf32> to vector<8x1x32xf32>
    tpu.vector_store %arg5[%c0_24, %c1, %c0_25], %77 {strides = array<i32>} : memref<8x8x32xf32, #tpu.memory_space<vmem>>, vector<8x1x32xf32>,
    %78 = vector.extract_strided_slice %10 {offsets = [0, 2, 0], sizes = [8, 1, 128], strides = [1, 1, 1]} : vector<8x8x128xf32> to vector<8x1x128xf32>
    %79 = vector.shape_cast %78 : vector<8x1x128xf32> to vector<8x128xf32>
    %cst_26 = arith.constant dense<0.000000e+00> : vector<8x128xf32>
    %80 = tpu.matmul %74, %11, %cst_26 {dimension_numbers = #tpu.dot_dimension_numbers<[1], [0], [0], [1], [0, 0, 1, 1], [], []>} : vector<8x32xf32>, vector<32x128xf32>, vector<8x128xf32> -> vector<8x128xf32>
    %81 = arith.addf %79, %80 : vector<8x128xf32>
    %82 = vector.extract_strided_slice %81 {offsets = [0, 0], sizes = [8, 32], strides = [1, 1]} : vector<8x128xf32> to vector<8x32xf32>
    %83 = arith.negf %82 : vector<8x32xf32>
    %84 = math.exp %83 : vector<8x32xf32>
    %cst_27 = arith.constant 1.000000e+00 : f32
    %85 = vector.broadcast %cst_27 : f32 to vector<8x32xf32>
    %86 = arith.addf %85, %84 : vector<8x32xf32>
    %87 = arith.divf %85, %86 : vector<8x32xf32>
    %88 = vector.extract_strided_slice %81 {offsets = [0, 32], sizes = [8, 32], strides = [1, 1]} : vector<8x128xf32> to vector<8x32xf32>
    %89 = arith.negf %88 : vector<8x32xf32>
    %90 = math.exp %89 : vector<8x32xf32>
    %cst_28 = arith.constant 1.000000e+00 : f32
    %91 = vector.broadcast %cst_28 : f32 to vector<8x32xf32>
    %92 = arith.addf %91, %90 : vector<8x32xf32>
    %93 = arith.divf %91, %92 : vector<8x32xf32>
    %94 = vector.extract_strided_slice %81 {offsets = [0, 64], sizes = [8, 32], strides = [1, 1]} : vector<8x128xf32> to vector<8x32xf32>
    %95 = math.tanh %94 : vector<8x32xf32>
    %96 = vector.extract_strided_slice %81 {offsets = [0, 96], sizes = [8, 32], strides = [1, 1]} : vector<8x128xf32> to vector<8x32xf32>
    %97 = arith.negf %96 : vector<8x32xf32>
    %98 = math.exp %97 : vector<8x32xf32>
    %cst_29 = arith.constant 1.000000e+00 : f32
    %99 = vector.broadcast %cst_29 : f32 to vector<8x32xf32>
    %100 = arith.addf %99, %98 : vector<8x32xf32>
    %101 = arith.divf %99, %100 : vector<8x32xf32>
    %102 = arith.mulf %93, %72 : vector<8x32xf32>
    %103 = arith.mulf %87, %95 : vector<8x32xf32>
    %104 = arith.addf %102, %103 : vector<8x32xf32>
    %105 = math.tanh %104 : vector<8x32xf32>
    %106 = arith.mulf %101, %105 : vector<8x32xf32>
    %c0_30 = arith.constant 0 : index
    %c2 = arith.constant 2 : index
    %c0_31 = arith.constant 0 : index
    %107 = vector.load %arg5[%c0_30, %c2, %c0_31] : memref<8x8x32xf32, #tpu.memory_space<vmem>>, vector<8x1x32xf32>
    %108 = vector.shape_cast %107 : vector<8x1x32xf32> to vector<8x32xf32>
    %109 = vector.shape_cast %106 : vector<8x32xf32> to vector<8x1x32xf32>
    tpu.vector_store %arg5[%c0_30, %c2, %c0_31], %109 {strides = array<i32>} : memref<8x8x32xf32, #tpu.memory_space<vmem>>, vector<8x1x32xf32>,
    %110 = vector.extract_strided_slice %10 {offsets = [0, 3, 0], sizes = [8, 1, 128], strides = [1, 1, 1]} : vector<8x8x128xf32> to vector<8x1x128xf32>
    %111 = vector.shape_cast %110 : vector<8x1x128xf32> to vector<8x128xf32>
    %cst_32 = arith.constant dense<0.000000e+00> : vector<8x128xf32>
    %112 = tpu.matmul %106, %11, %cst_32 {dimension_numbers = #tpu.dot_dimension_numbers<[1], [0], [0], [1], [0, 0, 1, 1], [], []>} : vector<8x32xf32>, vector<32x128xf32>, vector<8x128xf32> -> vector<8x128xf32>
    %113 = arith.addf %111, %112 : vector<8x128xf32>
    %114 = vector.extract_strided_slice %113 {offsets = [0, 0], sizes = [8, 32], strides = [1, 1]} : vector<8x128xf32> to vector<8x32xf32>
    %115 = arith.negf %114 : vector<8x32xf32>
    %116 = math.exp %115 : vector<8x32xf32>
    %cst_33 = arith.constant 1.000000e+00 : f32
    %117 = vector.broadcast %cst_33 : f32 to vector<8x32xf32>
    %118 = arith.addf %117, %116 : vector<8x32xf32>
    %119 = arith.divf %117, %118 : vector<8x32xf32>
    %120 = vector.extract_strided_slice %113 {offsets = [0, 32], sizes = [8, 32], strides = [1, 1]} : vector<8x128xf32> to vector<8x32xf32>
    %121 = arith.negf %120 : vector<8x32xf32>
    %122 = math.exp %121 : vector<8x32xf32>
    %cst_34 = arith.constant 1.000000e+00 : f32
    %123 = vector.broadcast %cst_34 : f32 to vector<8x32xf32>
    %124 = arith.addf %123, %122 : vector<8x32xf32>
    %125 = arith.divf %123, %124 : vector<8x32xf32>
    %126 = vector.extract_strided_slice %113 {offsets = [0, 64], sizes = [8, 32], strides = [1, 1]} : vector<8x128xf32> to vector<8x32xf32>
    %127 = math.tanh %126 : vector<8x32xf32>
    %128 = vector.extract_strided_slice %113 {offsets = [0, 96], sizes = [8, 32], strides = [1, 1]} : vector<8x128xf32> to vector<8x32xf32>
    %129 = arith.negf %128 : vector<8x32xf32>
    %130 = math.exp %129 : vector<8x32xf32>
    %cst_35 = arith.constant 1.000000e+00 : f32
    %131 = vector.broadcast %cst_35 : f32 to vector<8x32xf32>
    %132 = arith.addf %131, %130 : vector<8x32xf32>
    %133 = arith.divf %131, %132 : vector<8x32xf32>
    %134 = arith.mulf %125, %104 : vector<8x32xf32>
    %135 = arith.mulf %119, %127 : vector<8x32xf32>
    %136 = arith.addf %134, %135 : vector<8x32xf32>
    %137 = math.tanh %136 : vector<8x32xf32>
    %138 = arith.mulf %133, %137 : vector<8x32xf32>
    %c0_36 = arith.constant 0 : index
    %c3 = arith.constant 3 : index
    %c0_37 = arith.constant 0 : index
    %139 = vector.load %arg5[%c0_36, %c3, %c0_37] : memref<8x8x32xf32, #tpu.memory_space<vmem>>, vector<8x1x32xf32>
    %140 = vector.shape_cast %139 : vector<8x1x32xf32> to vector<8x32xf32>
    %141 = vector.shape_cast %138 : vector<8x32xf32> to vector<8x1x32xf32>
    tpu.vector_store %arg5[%c0_36, %c3, %c0_37], %141 {strides = array<i32>} : memref<8x8x32xf32, #tpu.memory_space<vmem>>, vector<8x1x32xf32>,
    %142 = vector.extract_strided_slice %10 {offsets = [0, 4, 0], sizes = [8, 1, 128], strides = [1, 1, 1]} : vector<8x8x128xf32> to vector<8x1x128xf32>
    %143 = vector.shape_cast %142 : vector<8x1x128xf32> to vector<8x128xf32>
    %cst_38 = arith.constant dense<0.000000e+00> : vector<8x128xf32>
    %144 = tpu.matmul %138, %11, %cst_38 {dimension_numbers = #tpu.dot_dimension_numbers<[1], [0], [0], [1], [0, 0, 1, 1], [], []>} : vector<8x32xf32>, vector<32x128xf32>, vector<8x128xf32> -> vector<8x128xf32>
    %145 = arith.addf %143, %144 : vector<8x128xf32>
    %146 = vector.extract_strided_slice %145 {offsets = [0, 0], sizes = [8, 32], strides = [1, 1]} : vector<8x128xf32> to vector<8x32xf32>
    %147 = arith.negf %146 : vector<8x32xf32>
    %148 = math.exp %147 : vector<8x32xf32>
    %cst_39 = arith.constant 1.000000e+00 : f32
    %149 = vector.broadcast %cst_39 : f32 to vector<8x32xf32>
    %150 = arith.addf %149, %148 : vector<8x32xf32>
    %151 = arith.divf %149, %150 : vector<8x32xf32>
    %152 = vector.extract_strided_slice %145 {offsets = [0, 32], sizes = [8, 32], strides = [1, 1]} : vector<8x128xf32> to vector<8x32xf32>
    %153 = arith.negf %152 : vector<8x32xf32>
    %154 = math.exp %153 : vector<8x32xf32>
    %cst_40 = arith.constant 1.000000e+00 : f32
    %155 = vector.broadcast %cst_40 : f32 to vector<8x32xf32>
    %156 = arith.addf %155, %154 : vector<8x32xf32>
    %157 = arith.divf %155, %156 : vector<8x32xf32>
    %158 = vector.extract_strided_slice %145 {offsets = [0, 64], sizes = [8, 32], strides = [1, 1]} : vector<8x128xf32> to vector<8x32xf32>
    %159 = math.tanh %158 : vector<8x32xf32>
    %160 = vector.extract_strided_slice %145 {offsets = [0, 96], sizes = [8, 32], strides = [1, 1]} : vector<8x128xf32> to vector<8x32xf32>
    %161 = arith.negf %160 : vector<8x32xf32>
    %162 = math.exp %161 : vector<8x32xf32>
    %cst_41 = arith.constant 1.000000e+00 : f32
    %163 = vector.broadcast %cst_41 : f32 to vector<8x32xf32>
    %164 = arith.addf %163, %162 : vector<8x32xf32>
    %165 = arith.divf %163, %164 : vector<8x32xf32>
    %166 = arith.mulf %157, %136 : vector<8x32xf32>
    %167 = arith.mulf %151, %159 : vector<8x32xf32>
    %168 = arith.addf %166, %167 : vector<8x32xf32>
    %169 = math.tanh %168 : vector<8x32xf32>
    %170 = arith.mulf %165, %169 : vector<8x32xf32>
    %c0_42 = arith.constant 0 : index
    %c4 = arith.constant 4 : index
    %c0_43 = arith.constant 0 : index
    %171 = vector.load %arg5[%c0_42, %c4, %c0_43] : memref<8x8x32xf32, #tpu.memory_space<vmem>>, vector<8x1x32xf32>
    %172 = vector.shape_cast %171 : vector<8x1x32xf32> to vector<8x32xf32>
    %173 = vector.shape_cast %170 : vector<8x32xf32> to vector<8x1x32xf32>
    tpu.vector_store %arg5[%c0_42, %c4, %c0_43], %173 {strides = array<i32>} : memref<8x8x32xf32, #tpu.memory_space<vmem>>, vector<8x1x32xf32>,
    %174 = vector.extract_strided_slice %10 {offsets = [0, 5, 0], sizes = [8, 1, 128], strides = [1, 1, 1]} : vector<8x8x128xf32> to vector<8x1x128xf32>
    %175 = vector.shape_cast %174 : vector<8x1x128xf32> to vector<8x128xf32>
    %cst_44 = arith.constant dense<0.000000e+00> : vector<8x128xf32>
    %176 = tpu.matmul %170, %11, %cst_44 {dimension_numbers = #tpu.dot_dimension_numbers<[1], [0], [0], [1], [0, 0, 1, 1], [], []>} : vector<8x32xf32>, vector<32x128xf32>, vector<8x128xf32> -> vector<8x128xf32>
    %177 = arith.addf %175, %176 : vector<8x128xf32>
    %178 = vector.extract_strided_slice %177 {offsets = [0, 0], sizes = [8, 32], strides = [1, 1]} : vector<8x128xf32> to vector<8x32xf32>
    %179 = arith.negf %178 : vector<8x32xf32>
    %180 = math.exp %179 : vector<8x32xf32>
    %cst_45 = arith.constant 1.000000e+00 : f32
    %181 = vector.broadcast %cst_45 : f32 to vector<8x32xf32>
    %182 = arith.addf %181, %180 : vector<8x32xf32>
    %183 = arith.divf %181, %182 : vector<8x32xf32>
    %184 = vector.extract_strided_slice %177 {offsets = [0, 32], sizes = [8, 32], strides = [1, 1]} : vector<8x128xf32> to vector<8x32xf32>
    %185 = arith.negf %184 : vector<8x32xf32>
    %186 = math.exp %185 : vector<8x32xf32>
    %cst_46 = arith.constant 1.000000e+00 : f32
    %187 = vector.broadcast %cst_46 : f32 to vector<8x32xf32>
    %188 = arith.addf %187, %186 : vector<8x32xf32>
    %189 = arith.divf %187, %188 : vector<8x32xf32>
    %190 = vector.extract_strided_slice %177 {offsets = [0, 64], sizes = [8, 32], strides = [1, 1]} : vector<8x128xf32> to vector<8x32xf32>
    %191 = math.tanh %190 : vector<8x32xf32>
    %192 = vector.extract_strided_slice %177 {offsets = [0, 96], sizes = [8, 32], strides = [1, 1]} : vector<8x128xf32> to vector<8x32xf32>
    %193 = arith.negf %192 : vector<8x32xf32>
    %194 = math.exp %193 : vector<8x32xf32>
    %cst_47 = arith.constant 1.000000e+00 : f32
    %195 = vector.broadcast %cst_47 : f32 to vector<8x32xf32>
    %196 = arith.addf %195, %194 : vector<8x32xf32>
    %197 = arith.divf %195, %196 : vector<8x32xf32>
    %198 = arith.mulf %189, %168 : vector<8x32xf32>
    %199 = arith.mulf %183, %191 : vector<8x32xf32>
    %200 = arith.addf %198, %199 : vector<8x32xf32>
    %201 = math.tanh %200 : vector<8x32xf32>
    %202 = arith.mulf %197, %201 : vector<8x32xf32>
    %c0_48 = arith.constant 0 : index
    %c5 = arith.constant 5 : index
    %c0_49 = arith.constant 0 : index
    %203 = vector.load %arg5[%c0_48, %c5, %c0_49] : memref<8x8x32xf32, #tpu.memory_space<vmem>>, vector<8x1x32xf32>
    %204 = vector.shape_cast %203 : vector<8x1x32xf32> to vector<8x32xf32>
    %205 = vector.shape_cast %202 : vector<8x32xf32> to vector<8x1x32xf32>
    tpu.vector_store %arg5[%c0_48, %c5, %c0_49], %205 {strides = array<i32>} : memref<8x8x32xf32, #tpu.memory_space<vmem>>, vector<8x1x32xf32>,
    %206 = vector.extract_strided_slice %10 {offsets = [0, 6, 0], sizes = [8, 1, 128], strides = [1, 1, 1]} : vector<8x8x128xf32> to vector<8x1x128xf32>
    %207 = vector.shape_cast %206 : vector<8x1x128xf32> to vector<8x128xf32>
    %cst_50 = arith.constant dense<0.000000e+00> : vector<8x128xf32>
    %208 = tpu.matmul %202, %11, %cst_50 {dimension_numbers = #tpu.dot_dimension_numbers<[1], [0], [0], [1], [0, 0, 1, 1], [], []>} : vector<8x32xf32>, vector<32x128xf32>, vector<8x128xf32> -> vector<8x128xf32>
    %209 = arith.addf %207, %208 : vector<8x128xf32>
    %210 = vector.extract_strided_slice %209 {offsets = [0, 0], sizes = [8, 32], strides = [1, 1]} : vector<8x128xf32> to vector<8x32xf32>
    %211 = arith.negf %210 : vector<8x32xf32>
    %212 = math.exp %211 : vector<8x32xf32>
    %cst_51 = arith.constant 1.000000e+00 : f32
    %213 = vector.broadcast %cst_51 : f32 to vector<8x32xf32>
    %214 = arith.addf %213, %212 : vector<8x32xf32>
    %215 = arith.divf %213, %214 : vector<8x32xf32>
    %216 = vector.extract_strided_slice %209 {offsets = [0, 32], sizes = [8, 32], strides = [1, 1]} : vector<8x128xf32> to vector<8x32xf32>
    %217 = arith.negf %216 : vector<8x32xf32>
    %218 = math.exp %217 : vector<8x32xf32>
    %cst_52 = arith.constant 1.000000e+00 : f32
    %219 = vector.broadcast %cst_52 : f32 to vector<8x32xf32>
    %220 = arith.addf %219, %218 : vector<8x32xf32>
    %221 = arith.divf %219, %220 : vector<8x32xf32>
    %222 = vector.extract_strided_slice %209 {offsets = [0, 64], sizes = [8, 32], strides = [1, 1]} : vector<8x128xf32> to vector<8x32xf32>
    %223 = math.tanh %222 : vector<8x32xf32>
    %224 = vector.extract_strided_slice %209 {offsets = [0, 96], sizes = [8, 32], strides = [1, 1]} : vector<8x128xf32> to vector<8x32xf32>
    %225 = arith.negf %224 : vector<8x32xf32>
    %226 = math.exp %225 : vector<8x32xf32>
    %cst_53 = arith.constant 1.000000e+00 : f32
    %227 = vector.broadcast %cst_53 : f32 to vector<8x32xf32>
    %228 = arith.addf %227, %226 : vector<8x32xf32>
    %229 = arith.divf %227, %228 : vector<8x32xf32>
    %230 = arith.mulf %221, %200 : vector<8x32xf32>
    %231 = arith.mulf %215, %223 : vector<8x32xf32>
    %232 = arith.addf %230, %231 : vector<8x32xf32>
    %233 = math.tanh %232 : vector<8x32xf32>
    %234 = arith.mulf %229, %233 : vector<8x32xf32>
    %c0_54 = arith.constant 0 : index
    %c6 = arith.constant 6 : index
    %c0_55 = arith.constant 0 : index
    %235 = vector.load %arg5[%c0_54, %c6, %c0_55] : memref<8x8x32xf32, #tpu.memory_space<vmem>>, vector<8x1x32xf32>
    %236 = vector.shape_cast %235 : vector<8x1x32xf32> to vector<8x32xf32>
    %237 = vector.shape_cast %234 : vector<8x32xf32> to vector<8x1x32xf32>
    tpu.vector_store %arg5[%c0_54, %c6, %c0_55], %237 {strides = array<i32>} : memref<8x8x32xf32, #tpu.memory_space<vmem>>, vector<8x1x32xf32>,
    %238 = vector.extract_strided_slice %10 {offsets = [0, 7, 0], sizes = [8, 1, 128], strides = [1, 1, 1]} : vector<8x8x128xf32> to vector<8x1x128xf32>
    %239 = vector.shape_cast %238 : vector<8x1x128xf32> to vector<8x128xf32>
    %cst_56 = arith.constant dense<0.000000e+00> : vector<8x128xf32>
    %240 = tpu.matmul %234, %11, %cst_56 {dimension_numbers = #tpu.dot_dimension_numbers<[1], [0], [0], [1], [0, 0, 1, 1], [], []>} : vector<8x32xf32>, vector<32x128xf32>, vector<8x128xf32> -> vector<8x128xf32>
    %241 = arith.addf %239, %240 : vector<8x128xf32>
    %242 = vector.extract_strided_slice %241 {offsets = [0, 0], sizes = [8, 32], strides = [1, 1]} : vector<8x128xf32> to vector<8x32xf32>
    %243 = arith.negf %242 : vector<8x32xf32>
    %244 = math.exp %243 : vector<8x32xf32>
    %cst_57 = arith.constant 1.000000e+00 : f32
    %245 = vector.broadcast %cst_57 : f32 to vector<8x32xf32>
    %246 = arith.addf %245, %244 : vector<8x32xf32>
    %247 = arith.divf %245, %246 : vector<8x32xf32>
    %248 = vector.extract_strided_slice %241 {offsets = [0, 32], sizes = [8, 32], strides = [1, 1]} : vector<8x128xf32> to vector<8x32xf32>
    %249 = arith.negf %248 : vector<8x32xf32>
    %250 = math.exp %249 : vector<8x32xf32>
    %cst_58 = arith.constant 1.000000e+00 : f32
    %251 = vector.broadcast %cst_58 : f32 to vector<8x32xf32>
    %252 = arith.addf %251, %250 : vector<8x32xf32>
    %253 = arith.divf %251, %252 : vector<8x32xf32>
    %254 = vector.extract_strided_slice %241 {offsets = [0, 64], sizes = [8, 32], strides = [1, 1]} : vector<8x128xf32> to vector<8x32xf32>
    %255 = math.tanh %254 : vector<8x32xf32>
    %256 = vector.extract_strided_slice %241 {offsets = [0, 96], sizes = [8, 32], strides = [1, 1]} : vector<8x128xf32> to vector<8x32xf32>
    %257 = arith.negf %256 : vector<8x32xf32>
    %258 = math.exp %257 : vector<8x32xf32>
    %cst_59 = arith.constant 1.000000e+00 : f32
    %259 = vector.broadcast %cst_59 : f32 to vector<8x32xf32>
    %260 = arith.addf %259, %258 : vector<8x32xf32>
    %261 = arith.divf %259, %260 : vector<8x32xf32>
    %262 = arith.mulf %253, %232 : vector<8x32xf32>
    %263 = arith.mulf %247, %255 : vector<8x32xf32>
    %264 = arith.addf %262, %263 : vector<8x32xf32>
    %265 = math.tanh %264 : vector<8x32xf32>
    %266 = arith.mulf %261, %265 : vector<8x32xf32>
    %c0_60 = arith.constant 0 : index
    %c7 = arith.constant 7 : index
    %c0_61 = arith.constant 0 : index
    %267 = vector.load %arg5[%c0_60, %c7, %c0_61] : memref<8x8x32xf32, #tpu.memory_space<vmem>>, vector<8x1x32xf32>
    %268 = vector.shape_cast %267 : vector<8x1x32xf32> to vector<8x32xf32>
    %269 = vector.shape_cast %266 : vector<8x32xf32> to vector<8x1x32xf32>
    tpu.vector_store %arg5[%c0_60, %c7, %c0_61], %269 {strides = array<i32>} : memref<8x8x32xf32, #tpu.memory_space<vmem>>, vector<8x1x32xf32>,
    %c0_62 = arith.constant 0 : index
    %c0_63 = arith.constant 0 : index
    %270 = vector.load %arg6[%c0_62, %c0_63] : memref<8x32xf32, #tpu.memory_space<vmem>>, vector<8x32xf32>
    tpu.vector_store %arg6[%c0_62, %c0_63], %266 {strides = array<i32>} : memref<8x32xf32, #tpu.memory_space<vmem>>, vector<8x32xf32>,
    %c0_64 = arith.constant 0 : index
    %c0_65 = arith.constant 0 : index
    %271 = vector.load %arg7[%c0_64, %c0_65] : memref<8x32xf32, #tpu.memory_space<vmem>>, vector<8x32xf32>
    tpu.vector_store %arg7[%c0_64, %c0_65], %264 {strides = array<i32>} : memref<8x32xf32, #tpu.memory_space<vmem>>, vector<8x32xf32>,
    return
  }
  func.func @transform_0(%arg0: i32) -> (i32, i32, i32) {
    %c0_i32 = arith.constant 0 : i32
    %c0_i32_0 = arith.constant 0 : i32
    %c0_i32_1 = arith.constant 0 : i32
    return %c0_i32, %arg0, %c0_i32_0 : i32, i32, i32
  }
  func.func @transform_1(%arg0: i32) -> (i32, i32) {
    %c0_i32 = arith.constant 0 : i32
    %c0_i32_0 = arith.constant 0 : i32
    %c0_i32_1 = arith.constant 0 : i32
    return %c0_i32, %c0_i32_0 : i32, i32
  }
  func.func @transform_2(%arg0: i32) -> (i32, i32) {
    %c0_i32 = arith.constant 0 : i32
    %c0_i32_0 = arith.constant 0 : i32
    %c0_i32_1 = arith.constant 0 : i32
    return %c0_i32, %c0_i32_0 : i32, i32
  }
  func.func @transform_3(%arg0: i32) -> (i32, i32) {
    %c0_i32 = arith.constant 0 : i32
    %c0_i32_0 = arith.constant 0 : i32
    %c0_i32_1 = arith.constant 0 : i32
    return %c0_i32, %c0_i32_0 : i32, i32
  }
  func.func @transform_4(%arg0: i32) -> (i32, i32, i32) {
    %c0_i32 = arith.constant 0 : i32
    %c0_i32_0 = arith.constant 0 : i32
    %c0_i32_1 = arith.constant 0 : i32
    return %c0_i32, %arg0, %c0_i32_0 : i32, i32, i32
  }
  func.func @transform_5(%arg0: i32) -> (i32, i32) {
    %c0_i32 = arith.constant 0 : i32
    %c0_i32_0 = arith.constant 0 : i32
    %c0_i32_1 = arith.constant 0 : i32
    return %c0_i32, %c0_i32_0 : i32, i32
  }
  func.func @transform_6(%arg0: i32) -> (i32, i32) {
    %c0_i32 = arith.constant 0 : i32
    %c0_i32_0 = arith.constant 0 : i32
    %c0_i32_1 = arith.constant 0 : i32
    return %c0_i32, %c0_i32_0 : i32, i32
  }
}

</mosaic_0001>

<bundles_post_ra>
// kernel: tpu_custom_call.1
= control target key start
LH: loop header
LB: loop body
LE: loop exit
PB: predicated region body
PF: predicated region fallthrough
CT: control target
= control target key end

     0   :  { %12 = vsyncpa [#allocation3], 0  ;;  %s5715_s0 = inlined_call_operand.hbm [shape: f32[8,8,16], index: 0, kind: input, shape index: {}]   ;;  %s5716_s1 = inlined_call_operand.hbm [shape: f32[16,128], index: 1, kind: input, shape index: {}]   ;;  %s5717_s2 = inlined_call_operand.hbm [shape: f32[32,128], index: 2, kind: input, shape index: {}]   ;;  %s5718_s3 = inlined_call_operand.vmem [shape: f32[1,128], index: 3, kind: input, shape index: {}]   ;;  %s5719_s4 = inlined_call_operand.hbm [shape: f32[8,8,32], index: 4, kind: output, shape index: {0}]   ;;  %s5720_s5 = inlined_call_operand.hbm [shape: f32[8,32], index: 5, kind: output, shape index: {1}]   ;;  %s5721_s6 = inlined_call_operand.hbm [shape: f32[8,32], index: 6, kind: output, shape index: {2}]  }
   0x1   :  { %13 = vsyncpa [#allocation6], 0 }
   0x2   :  { %14 = vsyncpa [#allocation4], 0 }
   0x3   :  { %15 = vsyncpa [#allocation10], 0  ;;  %s4222_s21 = smov [#allocation5]   ;;  %s4223_s23 = smov [#allocation2]  }
   0x4   :  { %s33_s22 = sshll.u32 %s4222_s21, 4  ;;  %s21_s24 = sshll.u32 %s4223_s23, 4  ;;  %s34_s22 = int_to_ptr.vmem [resolvable:$true] %s33_s22  ;;  %s4271_s24 = int_to_ptr.vmem [resolvable:$true] %s21_s24 }
   0x5   :  { %s4082_s27 = scalar_lea.hbm %s5716_s1, 256 }
   0x6   :  { %p4083_p0 = scmp.ne.s32.totalorder %s5716_s1, %s4082_s27  ;;  %p4086_p1 = scmp.lt.u32.totalorder %s4082_s27, %s5716_s1 }
   0x8   :  { %p4088_p2 = pnand %p4086_p1, %p4083_p0 }
   0xa   :  { %4091 = shalt.err (!%p4088_p2)
}
   0xb   :  { %s4092_s8 = scalar_lea.vmem %s34_s22, 256  ;;  %p4097_p4 = scmp.lt.s32.totalorder %s34_s22, %s34_s22 }
   0xc   :  { %p4093_p3 = scmp.ne.s32.totalorder %s34_s22, %s4092_s8  ;;  %p4098_p5 = scmp.lt.s32.totalorder %s4092_s8, %s4092_s8 }
   0xe   :  { %p4099_p6 = por %p4098_p5, %p4097_p4 }
  0x10   :  { %p4100_p7 = pnand %p4099_p6, %p4093_p3 }
  0x12   :  { %4103 = shalt.err (!%p4100_p7)
}
  0x13   :  { %s4224_s9 = smov 128   ;;  %s4225_s10 = smov 8  }
  0x14   :  { %39 = dma.hbm_to_vmem [thread:$0]  %s5716_s1, 256, %s34_s22, [#allocation6], %s4224_s9, %s4224_s9, %s4225_s10  }
  0x15   :  { %s4104_s15 = scalar_lea.hbm %s5715_s0, 1024 }
  0x16   :  { %p4105_p8 = scmp.ne.s32.totalorder %s5715_s0, %s4104_s15  ;;  %p4108_p9 = scmp.lt.u32.totalorder %s4104_s15, %s5715_s0 }
  0x18   :  { %p4110_p10 = pnand %p4108_p9, %p4105_p8 }
  0x1a   :  { %4113 = shalt.err (!%p4110_p10)
}
  0x1b   :  { %s4114_s20 = scalar_lea.vmem %s4271_s24, 1024  ;;  %p4119_p12 = scmp.lt.s32.totalorder %s4271_s24, %s4271_s24 }
  0x1c   :  { %p4115_p11 = scmp.ne.s32.totalorder %s4271_s24, %s4114_s20  ;;  %p4120_p13 = scmp.lt.s32.totalorder %s4114_s20, %s4114_s20 }
  0x1e   :  { %p4121_p0 = por %p4120_p13, %p4119_p12 }
  0x20   :  { %p4122_p1 = pnand %p4121_p0, %p4115_p11 }
  0x22   :  { %4125 = shalt.err (!%p4122_p1)
}
  0x23   :  { %27 = dma.hbm_to_vmem [thread:$0]  %s5715_s0, 1024, %s4271_s24, [#allocation3], %s4224_s9, %s4224_s9, %s4225_s10  }
  0x24   :  { %s4226_s22 = smov [#allocation7]   ;;  %s4126_s27 = scalar_lea.hbm %s5717_s2, 512 }
  0x25   :  { %s45_s23 = sshll.u32 %s4226_s22, 4  ;;  %p4127_p2 = scmp.ne.s32.totalorder %s5717_s2, %s4126_s27  ;;  %s46_s23 = int_to_ptr.vmem [resolvable:$true] %s45_s23 }
  0x26   :  { %p4130_p3 = scmp.lt.u32.totalorder %s4126_s27, %s5717_s2 }
  0x28   :  { %p4132_p4 = pnand %p4130_p3, %p4127_p2 }
  0x2a   :  { %4135 = shalt.err (!%p4132_p4)
}
  0x2b   :  { %s4136_s8 = scalar_lea.vmem %s46_s23, 512  ;;  %p4141_p6 = scmp.lt.s32.totalorder %s46_s23, %s46_s23 }
  0x2c   :  { %p4137_p5 = scmp.ne.s32.totalorder %s46_s23, %s4136_s8  ;;  %p4142_p7 = scmp.lt.s32.totalorder %s4136_s8, %s4136_s8 }
  0x2e   :  { %p4143_p8 = por %p4142_p7, %p4141_p6 }
  0x30   :  { %p4144_p9 = pnand %p4143_p8, %p4137_p5 }
  0x32   :  { %4147 = shalt.err (!%p4144_p9)
}
  0x33   :  { %51 = dma.hbm_to_vmem [thread:$0]  %s5717_s2, 512, %s46_s23, [#allocation6], %s4224_s9, %s4224_s9, %s4225_s10  }
  0x34   :  { %4214 = dma.done.wait [#allocation3], 1024  }
  0x35   :  { %4215 = vsyncadd [#allocation3], 4294966272 }
  0x36   :  { %4216 = dma.done.wait [#allocation6], 768  }
  0x37   :  { %4217 = vsyncadd [#allocation6], 4294966528  ;;  %v5722_v0 = vmov 0.0|0.0   ;;  %vm4228_vm0 = vmmov 0   ;;  %v5724_v1 = vmov 0.0   ;;  %vm67_vm1 = vcmask 261120  }
  0x38   :  { %3508 = vmatprep.subr.bf16.mxu1 %v5722_v0  ;;  %3424 = vmatprep.mubr.msk.f32.mxu1 %vm4228_vm0, %v5724_v1  ;;  %68 = vst.msk [vmem:[#allocation9] sm:$0xff] %vm67_vm1, %v5724_v1  ;;  %69 = vst.msk [vmem:[#allocation11] sm:$0xff] %vm67_vm1, %v5724_v1  ;;  %vm87_vm2 = vcmask 130048   ;;  %v78_v2 = vld [vmem:[#allocation5] sm:$0xff]  ;;  %v79_v3 = vld [vmem:[#allocation5 + $0x8] sm:$0xff]  ;;  %s4231_s12 = smov 32  }
  0x39   :  { %v217_v4 = vld [vmem:[#allocation7] sm:$0xff]  ;;  %v3504_v5 = vpack.c.bf16 %v79_v3, %v78_v2  ;;  %v218_v6 = vld [vmem:[#allocation7 + $0x8] sm:$0xff]  ;;  %v70_v7 = vld [vmem:[#allocation2] sm:$0xff]  ;;  %vm587_vm3 = vcmask 1041409   ;;  %vm590_vm4 = vcmask 1042434   ;;  %vm593_vm5 = vcmask 1043459  }
  0x3a   :  { %v4330_v8 = vpack.c.bf16 %v218_v6, %v217_v4  ;;  %3404 = vmatprep.mubr.msk.f32.mxu0 %vm87_vm2, %v70_v7  ;;  %v219_v9 = vld [vmem:[#allocation7 + $0x10] sm:$0xff]  ;;  %v220_v10 = vld [vmem:[#allocation7 + $0x18] sm:$0xff]  ;;  %v72_v13 = vld [vmem:[#allocation2 + $0x10] sm:$0xff]  ;;  %vm596_vm6 = vcmask 1044484   ;;  %vm599_vm7 = vcmask 1045509   ;;  %vm602_vm8 = vcmask 1046534  }
  0x3b   :  { %3505 = vmatprep.subr.bf16.mxu0 %v3504_v5  ;;  %v71_v11 = vld [vmem:[#allocation2 + $0x8] sm:$0xff]  ;;  %v4334_v12 = vpack.c.bf16 %v220_v10, %v219_v9  ;;  %v73_v15 = vld [vmem:[#allocation2 + $0x18] sm:$0xff]  ;;  %v74_v16 = vld [vmem:[#allocation2 + $0x20] sm:$0xff]  ;;  %vm605_vm9 = vcmask 1047559   ;;  %vm577_vm10 = vcmask 253952   ;;  %vm953_vm11 = vcmask 254977  }
  0x3c   :  { %3510 = vmatpush3.bf16.msra.mxu1 %v4330_v8  ;;  %3507 = vmatpush3.bf16.msra.mxu0 %v3504_v5  ;;  %v75_v17 = vld [vmem:[#allocation2 + $0x28] sm:$0xff]  ;;  %v76_v18 = vld [vmem:[#allocation2 + $0x30] sm:$0xff]  ;;  %v77_v19 = vld [vmem:[#allocation2 + $0x38] sm:$0xff]  ;;  %vm1322_vm12 = vcmask 256002   ;;  %vm1691_vm13 = vcmask 257027   ;;  %vm2060_vm14 = vcmask 258052  }
  0x3d   :  { %3511 = vmatprep.subr.bf16.mxu1 %v5722_v0  ;;  %3520 = vmatprep.subr.bf16.mxu0 %v5722_v0  ;;  %v3269_v21 = vld [vmem:[%s5718_s3] ss:$0 sm:$0xff]  ;;  %s4230_s3 = smov 64   ;;  %vm2429_vm15 = vcmask 259077   ;;  %s4232_s13 = smov 96  }
  0x3e   :  { %s4233_s14 = smov [#allocation9]   ;;  %s4234_s16 = smov [#allocation8]  }
  0x3f   :  { %3405 = vmatmul.mubr.msk.f32.vlgmr.msra.gmra.mrb[0].mxu0 %vm87_vm2, %v71_v11  ;;  %v221_v14 = vld [vmem:[#allocation9] sm:$0xff]  ;;  %v222_v60 = vld [vmem:[#allocation11] sm:$0xff]  ;;  %s3242_s15 = sshll.u32 %s4233_s14, 4  ;;  %s3229_s17 = sshll.u32 %s4234_s16, 4  ;;  %s3243_s15 = int_to_ptr.vmem [resolvable:$true] %s3242_s15  ;;  %s5658_s17 = int_to_ptr.vmem [resolvable:$true] %s3229_s17 }
  0x40   :  { %3513 = vmatpush3.bf16.msra.mxu1 %v4334_v12  ;;  %3407 = vmatprep.mubr.msk.f32.mxu0 %vm87_vm2, %v72_v13  ;;  %v379_v62 = vrot.slane %v222_v60, 2  ;;  %v378_v2 = vrot.slane %v222_v60, 1  ;;  %v380_v3 = vrot.slane %v222_v60, 3  ;;  %v381_v4 = vrot.slane %v222_v60, 4  ;;  %s4235_s18 = smov [#allocation11]   ;;  %s4148_s20 = scalar_lea.vmem %s3243_s15, 128 }
  0x41   :  { %3514 = vmatprep.subr.bf16.mxu1 %v5722_v0  ;;  %3522 = vmatpush3.bf16.msra.mxu0 %v4330_v8  ;;  %v383_v5 = vrot.slane %v222_v60, 6  ;;  %v382_v6 = vrot.slane %v222_v60, 5  ;;  %v384_v7 = vrot.slane %v222_v60, 7  ;;  %s3252_s19 = sshll.u32 %s4235_s18, 4  ;;  %p4149_p10 = scmp.ne.s32.totalorder %s3243_s15, %s4148_s20  ;;  %s5662_s19 = int_to_ptr.vmem [resolvable:$true] %s3252_s19 }
  0x42   :  { %3523 = vmatprep.subr.bf16.mxu0 %v5722_v0  ;;  %p4153_p11 = scmp.lt.s32.totalorder %s3243_s15, %s3243_s15  ;;  %p4154_p12 = scmp.lt.s32.totalorder %s4148_s20, %s4148_s20 }
  0x43   :  { %3425 = vmatmul.mubr.msk.f32.vlgmr.msra.gmra.mrb[0].mxu1 %vm67_vm1, %v221_v14  ;;  %3408 = vmatmul.mubr.msk.f32.gmra.mrb[2].mxu0 %vm87_vm2, %v73_v15 }
  0x44   :  { %3410 = vmatprep.mubr.msk.f32.mxu0 %vm87_vm2, %v74_v16  ;;  %3516 = vmatpush3.bf16.msra.mxu1 %v4330_v8  ;;  %p4155_p13 = por %p4154_p12, %p4153_p11 }
  0x45   :  { %3517 = vmatprep.subr.bf16.mxu1 %v5722_v0  ;;  %3435 = vmatprep.mubr.msk.f32.mxu1 %vm4228_vm0, %v5724_v1 }
  0x46   :  { %3525 = vmatpush3.bf16.msra.mxu0 %v4334_v12  ;;  %p4156_p0 = pnand %p4155_p13, %p4149_p10 }
  0x47   :  { %3411 = vmatmul.mubr.msk.f32.gmra.mrb[4].mxu0 %vm87_vm2, %v75_v17  ;;  %3532 = vmatprep.subr.bf16.mxu0 %v5722_v0 }
  0x48   :  { %3413 = vmatprep.mubr.msk.f32.mxu0 %vm87_vm2, %v76_v18  ;;  %3519 = vmatpush3.bf16.msra.mxu1 %v4334_v12 }
  0x49   :  { %3526 = vmatprep.subr.bf16.mxu1 %v5722_v0 }
  0x4b   :  { %3414 = vmatmul.mubr.msk.f32.gmra.mrb[6].mxu0 %vm87_vm2, %v77_v19  ;;  %vm3193_vm2 = vcmask 260096  }
  0x4c   :  { %3446 = vmatprep.mubr.msk.f32.mxu0 %vm4228_vm0, %v5724_v1 }
 0x112   :  { %v3406_v20 = vpop.f32.mrb[0].mxu0 }
 0x113   :  { %v178_v22 = vpop.f32.mrb[1].mxu0  ;;  %v4367_v30 = vadd.f32 %v3406_v20, %v3269_v21 }
 0x114   :  { %v4363_v23 = vadd.f32 %v3269_v21, %v178_v22 }
 0x116   :  { %v293_v24 = vpop.f32.mrb[0].mxu1  ;;  %v3409_v25 = vpop.f32.mrb[2].mxu0 }
 0x117   :  { %v300_v26 = vrot.slane %v293_v24, 3  ;;  %v3426_v27 = vpop.f32.mrb[1].mxu1  ;;  %v188_v28 = vpop.f32.mrb[3].mxu0  ;;  %v4365_v29 = vadd.f32 %v3409_v25, %v3269_v21  ;;  %v4370_v31 = vadd.f32 %v293_v24, %v4363_v23  ;;  %v298_v32 = vrot.slane %v293_v24, 1 }
 0x118   :  { %v4372_v33 = vadd.f32 %v3269_v21, %v188_v28  ;;  %v299_v38 = vrot.slane %v293_v24, 2  ;;  %v302_v40 = vrot.slane %v293_v24, 5  ;;  %v301_v45 = vrot.slane %v293_v24, 4 }
 0x119   :  { %v4375_v35 = vadd.f32 %v300_v26, %v4365_v29  ;;  %3570 = vtanh.f32 %v4370_v31  ;;  %v314_v37 = vadd.f32 %v298_v32, %v4367_v30  ;;  %v304_v48 = vrot.slane %v293_v24, 7 }
 0x11a   :  { %v3412_v34 = vpop.f32.mrb[4].mxu0  ;;  %v315_v43 = vadd.f32 %v299_v38, %v4372_v33  ;;  %v303_v53 = vrot.slane %v293_v24, 6  ;;  %v3279_v9 = vmul.f32 -1.442695, %v4370_v31 }
 0x11b   :  { %v198_v36 = vpop.f32.mrb[5].mxu0  ;;  %v4379_v39 = vadd.f32 %v3412_v34, %v3269_v21  ;;  %3572 = vtanh.f32 %v4375_v35  ;;  %v3280_v10 = vmul.f32 -1.442695, %v314_v37  ;;  %v3282_v11 = vmul.f32 -1.442695, %v4375_v35 }
 0x11c   :  { %v4382_v41 = vadd.f32 %v3269_v21, %v198_v36  ;;  %3574 = vtanh.f32 %v314_v37  ;;  %v3281_v13 = vmul.f32 -1.442695, %v315_v43 }
 0x11d   :  { %v318_v47 = vadd.f32 %v302_v40, %v4379_v39  ;;  %3576 = vtanh.f32 %v315_v43 }
 0x11e   :  { %v3415_v42 = vpop.f32.mrb[6].mxu0  ;;  %v317_v49 = vadd.f32 %v301_v45, %v4382_v41 }
 0x11f   :  { %v208_v44 = vpop.f32.mrb[7].mxu0  ;;  %v4385_v46 = vadd.f32 %v3415_v42, %v3269_v21  ;;  %3578 = vtanh.f32 %v318_v47  ;;  %v3284_v14 = vmul.f32 -1.442695, %v318_v47 }
 0x120   :  { %v4389_v50 = vadd.f32 %v3269_v21, %v208_v44  ;;  %3580 = vtanh.f32 %v317_v49  ;;  %v3283_v15 = vmul.f32 -1.442695, %v317_v49 }
 0x121   :  { %v320_v51 = vadd.f32 %v304_v48, %v4385_v46 }
 0x122   :  { %v319_v55 = vadd.f32 %v303_v53, %v4389_v50 }
 0x123   :  { %v3571_v52 = vpop.eup %3570  ;;  %3582 = vtanh.f32 %v320_v51  ;;  %v3286_v17 = vmul.f32 -1.442695, %v320_v51 }
 0x124   :  { %425 = vrot.lane.b32.xlu1 %v3571_v52, %s4230_s3  ;;  %3584 = vtanh.f32 %v319_v55  ;;  %v3285_v18 = vmul.f32 -1.442695, %v319_v55 }
 0x125   :  { %v3573_v54 = vpop.eup %3572  ;;  %3586 = vpow2.f32 %v3279_v9 }
 0x126   :  { %v3575_v56 = vpop.eup %3574  ;;  %3588 = vpow2.f32 %v3280_v10 }
 0x127   :  { %427 = vrot.lane.b32.xlu0 %v3575_v56, %s4230_s3  ;;  %v3577_v57 = vpop.eup %3576  ;;  %3590 = vpow2.f32 %v3282_v11 }
 0x128   :  { %431 = vrot.lane.b32.xlu1 %v3573_v54, %s4230_s3  ;;  %3592 = vpow2.f32 %v3281_v13 }
 0x129   :  { %v3579_v58 = vpop.eup %3578  ;;  %3594 = vpow2.f32 %v3284_v14 }
 0x12a   :  { %v3581_v59 = vpop.eup %3580  ;;  %3596 = vpow2.f32 %v3283_v15 }
 0x12b   :  { %429 = vrot.lane.b32.xlu0 %v3577_v57, %s4230_s3  ;;  %3598 = vpow2.f32 %v3286_v17 }
 0x12c   :  { %435 = vrot.lane.b32.xlu1 %v3579_v58, %s4230_s3  ;;  %3600 = vpow2.f32 %v3285_v18 }
 0x12d   :  { %v3583_v61 = vpop.eup %3582 }
 0x12e   :  { %v3585_v63 = vpop.eup %3584 }
 0x12f   :  { %433 = vrot.lane.b32.xlu0 %v3581_v59, %s4230_s3  ;;  %v3587_v16 = vpop.eup %3586 }
 0x130   :  { %439 = vrot.lane.b32.xlu1 %v3583_v61, %s4230_s3  ;;  %v3589_v19 = vpop.eup %3588  ;;  %v345_v20 = vadd.f32 1.0, %v3587_v16 }
 0x131   :  { %v3591_v21 = vpop.eup %3590  ;;  %v346_v22 = vadd.f32 1.0, %v3589_v19 }
 0x132   :  { %3602 = vrcp.f32 %v345_v20  ;;  %v348_v24 = vadd.f32 1.0, %v3591_v21  ;;  %v3593_v25 = vpop.eup %3592 }
 0x133   :  { %437 = vrot.lane.b32.xlu0 %v3585_v63, %s4230_s3  ;;  %v3595_v26 = vpop.eup %3594  ;;  %3604 = vrcp.f32 %v346_v22  ;;  %v347_v27 = vadd.f32 1.0, %v3593_v25 }
 0x134   :  { %389 = vrot.lane.b32.xlu1 %v379_v62, %s4231_s12  ;;  %3606 = vrcp.f32 %v348_v24  ;;  %v350_v28 = vadd.f32 1.0, %v3595_v26  ;;  %v3597_v31 = vpop.eup %3596 }
 0x135   :  { %v3599_v32 = vpop.eup %3598  ;;  %3608 = vrcp.f32 %v347_v27  ;;  %v349_v35 = vadd.f32 1.0, %v3597_v31 }
 0x136   :  { %v3601_v34 = vpop.eup %3600  ;;  %3610 = vrcp.f32 %v350_v28  ;;  %v352_v44 = vadd.f32 1.0, %v3599_v32 }
 0x137   :  { %387 = vrot.lane.b32.xlu0 %v378_v2, %s4231_s12  ;;  %v351_v40 = vadd.f32 1.0, %v3601_v34  ;;  %3612 = vrcp.f32 %v349_v35 }
 0x138   :  { %391 = vrot.lane.b32.xlu1 %v380_v3, %s4231_s12 }
 0x139   :  { %3614 = vrcp.f32 %v351_v40 }
 0x13a   :  { %3616 = vrcp.f32 %v352_v44 }
 0x13b   :  { %385 = vrot.lane.b32.xlu0 %v222_v60, %s4231_s12 }
 0x13c   :  { %393 = vrot.lane.b32.xlu1 %v381_v4, %s4231_s12  ;;  %v4411_v36 = vpop.eup %3602 }
 0x13d   :  { %v4414_v42 = vpop.eup %3604 }
 0x13e   :  { %v4417_v45 = vpop.eup %3606 }
 0x13f   :  { %397 = vrot.lane.b32.xlu0 %v383_v5, %s4231_s12  ;;  %v4423_v52 = vpop.eup %3608 }
 0x140   :  { %395 = vrot.lane.b32.xlu1 %v382_v6, %s4231_s12  ;;  %v4425_v53 = vpop.eup %3610 }
 0x141   :  { %v4431_v58 = vpop.eup %3612 }
 0x143   :  { %399 = vrot.lane.b32.xlu0 %v384_v7, %s4231_s12  ;;  %v4434_v61 = vpop.eup %3614 }
 0x144   :  { %v4437_v63 = vpop.eup %3616 }
 0x196   :  { %v426_v37 = vpop.permute.xlu1 %425 }
 0x197   :  { %v449_v38 = vmul.f32 %v4411_v36, %v426_v37 }
 0x199   :  { %v428_v43 = vpop.permute.xlu0 %427  ;;  %465 = vrot.lane.b32.xlu0 %v449_v38, %s4231_s12 }
 0x19a   :  { %v432_v47 = vpop.permute.xlu1 %431  ;;  %v450_v48 = vmul.f32 %v4414_v42, %v428_v43 }
 0x19b   :  { %v452_v49 = vmul.f32 %v4417_v45, %v432_v47 }
 0x19d   :  { %v430_v51 = vpop.permute.xlu0 %429  ;;  %471 = vrot.lane.b32.xlu1 %v452_v49, %s4231_s12  ;;  %467 = vrot.lane.b32.xlu0 %v450_v48, %s4231_s12 }
 0x19e   :  { %v451_v54 = vmul.f32 %v4423_v52, %v430_v51  ;;  %v436_v55 = vpop.permute.xlu1 %435 }
 0x19f   :  { %v454_v56 = vmul.f32 %v4425_v53, %v436_v55 }
 0x1a1   :  { %v434_v57 = vpop.permute.xlu0 %433  ;;  %469 = vrot.lane.b32.xlu0 %v451_v54, %s4231_s12  ;;  %475 = vrot.lane.b32.xlu1 %v454_v56, %s4231_s12 }
 0x1a2   :  { %v453_v59 = vmul.f32 %v4431_v58, %v434_v57  ;;  %v440_v60 = vpop.permute.xlu1 %439 }
 0x1a3   :  { %v456_v3 = vmul.f32 %v4437_v63, %v440_v60 }
 0x1a5   :  { %v438_v62 = vpop.permute.xlu0 %437  ;;  %473 = vrot.lane.b32.xlu1 %v453_v59, %s4231_s12 }
 0x1a6   :  { %v455_v2 = vmul.f32 %v4434_v61, %v438_v62  ;;  %v390_v5 = vpop.permute.xlu1 %389 }
 0x1a7   :  { %v411_v24 = vmul.f32 %v4423_v52, %v390_v5 }
 0x1a8   :  { %477 = vrot.lane.b32.xlu0 %v455_v2, %s4231_s12 }
 0x1a9   :  { %479 = vrot.lane.b32.xlu1 %v456_v3, %s4231_s12  ;;  %v388_v4 = vpop.permute.xlu0 %387 }
 0x1aa   :  { %v392_v7 = vpop.permute.xlu1 %391  ;;  %v410_v17 = vmul.f32 %v4414_v42, %v388_v4 }
 0x1ab   :  { %v412_v18 = vmul.f32 %v4417_v45, %v392_v7 }
 0x1ad   :  { %v386_v6 = vpop.permute.xlu0 %385 }
 0x1ae   :  { %v394_v10 = vpop.permute.xlu1 %393  ;;  %v409_v13 = vmul.f32 %v4411_v36, %v386_v6 }
 0x1af   :  { %v413_v32 = vmul.f32 %v4431_v58, %v394_v10 }
 0x1b1   :  { %v398_v9 = vpop.permute.xlu0 %397 }
 0x1b2   :  { %v396_v14 = vpop.permute.xlu1 %395  ;;  %v415_v38 = vmul.f32 %v4434_v61, %v398_v9 }
 0x1b3   :  { %v414_v26 = vmul.f32 %v4425_v53, %v396_v14 }
 0x1b5   :  { %v400_v11 = vpop.permute.xlu0 %399 }
 0x1b6   :  { %v416_v40 = vmul.f32 %v4437_v63, %v400_v11 }
 0x20b   :  { %v466_v15 = vpop.permute.xlu0 %465 }
 0x20c   :  { %v4444_v16 = vadd.f32 %v466_v15, %v409_v13 }
 0x20e   :  { %3618 = vtanh.f32 %v4444_v16 }
 0x20f   :  { %v472_v19 = vpop.permute.xlu1 %471  ;;  %v468_v20 = vpop.permute.xlu0 %467 }
 0x210   :  { %v4449_v21 = vadd.f32 %v472_v19, %v412_v18  ;;  %v4451_v22 = vadd.f32 %v468_v20, %v410_v17 }
 0x212   :  { %3620 = vtanh.f32 %v4449_v21 }
 0x213   :  { %3622 = vtanh.f32 %v4451_v22  ;;  %v470_v25 = vpop.permute.xlu0 %469  ;;  %v476_v27 = vpop.permute.xlu1 %475 }
 0x214   :  { %v4457_v28 = vadd.f32 %v470_v25, %v411_v24  ;;  %v4459_v31 = vadd.f32 %v476_v27, %v414_v26 }
 0x216   :  { %3624 = vtanh.f32 %v4457_v28 }
 0x217   :  { %v474_v35 = vpop.permute.xlu1 %473  ;;  %3626 = vtanh.f32 %v4459_v31 }
 0x218   :  { %v3619_v34 = vpop.eup %3618  ;;  %v4463_v37 = vadd.f32 %v474_v35, %v413_v32 }
 0x219   :  { %513 = vrot.lane.b32.xlu0 %v3619_v34, %s4230_s3 }
 0x21a   :  { %3628 = vtanh.f32 %v4463_v37  ;;  %v478_v43 = vpop.permute.xlu0 %477 }
 0x21b   :  { %v4470_v47 = vadd.f32 %v478_v43, %v415_v38  ;;  %v480_v48 = vpop.permute.xlu1 %479 }
 0x21c   :  { %v3621_v44 = vpop.eup %3620  ;;  %v4472_v51 = vadd.f32 %v480_v48, %v416_v40 }
 0x21d   :  { %v3623_v49 = vpop.eup %3622  ;;  %519 = vrot.lane.b32.xlu1 %v3621_v44, %s4230_s3  ;;  %3630 = vtanh.f32 %v4470_v47 }
 0x21e   :  { %515 = vrot.lane.b32.xlu0 %v3623_v49, %s4230_s3  ;;  %3632 = vtanh.f32 %v4472_v51 }
 0x220   :  { %v3625_v54 = vpop.eup %3624 }
 0x221   :  { %517 = vrot.lane.b32.xlu1 %v3625_v54, %s4230_s3  ;;  %v3627_v55 = vpop.eup %3626 }
 0x224   :  { %v3629_v56 = vpop.eup %3628 }
 0x225   :  { %523 = vrot.lane.b32.xlu1 %v3627_v55, %s4230_s3  ;;  %521 = vrot.lane.b32.xlu0 %v3629_v56, %s4230_s3 }
 0x227   :  { %v3631_v57 = vpop.eup %3630 }
 0x228   :  { %v3633_v59 = vpop.eup %3632 }
 0x229   :  { %527 = vrot.lane.b32.xlu1 %v3633_v59, %s4230_s3  ;;  %525 = vrot.lane.b32.xlu0 %v3631_v57, %s4230_s3 }
 0x28b   :  { %v514_v60 = vpop.permute.xlu0 %513 }
 0x28c   :  { %v4491_v7 = vmul.f32 %v4411_v36, %v514_v60 }
 0x28f   :  { %v520_v62 = vpop.permute.xlu1 %519 }
 0x290   :  { %v516_v2 = vpop.permute.xlu0 %515  ;;  %v4494_v9 = vmul.f32 %v4417_v45, %v520_v62 }
 0x291   :  { %v4484_v3 = vmul.f32 %v4414_v42, %v516_v2 }
 0x292   :  { %v592_v45 = vrot.slane %v4494_v9, 5 }
 0x293   :  { %v518_v4 = vpop.permute.xlu1 %517  ;;  %v586_v5 = vrot.slane %v4484_v3, 7 }
 0x294   :  { %v4488_v6 = vmul.f32 %v4423_v52, %v518_v4 }
 0x295   :  { %v588_v42 = vsel %vm587_vm3, %v586_v5, %v4491_v7 }
 0x296   :  { %v589_v10 = vrot.slane %v4488_v6, 6 }
 0x297   :  { %v524_v11 = vpop.permute.xlu1 %523  ;;  %v522_v14 = vpop.permute.xlu0 %521 }
 0x298   :  { %v4500_v13 = vmul.f32 %v4425_v53, %v524_v11  ;;  %v591_v52 = vsel %vm590_vm4, %v589_v10, %v588_v42  ;;  %v4504_v36 = vmul.f32 %v4431_v58, %v522_v14 }
 0x299   :  { %v594_v18 = vsel %vm593_vm5, %v592_v45, %v591_v52 }
 0x29a   :  { %v595_v15 = vrot.slane %v4504_v36, 4  ;;  %v598_v17 = vrot.slane %v4500_v13, 3 }
 0x29b   :  { %v528_v19 = vpop.permute.xlu1 %527  ;;  %v526_v20 = vpop.permute.xlu0 %525 }
 0x29c   :  { %v597_v53 = vsel %vm596_vm6, %v595_v15, %v594_v18  ;;  %v4512_v24 = vmul.f32 %v4437_v63, %v528_v19  ;;  %v4515_v25 = vmul.f32 %v4434_v61, %v526_v20 }
 0x29d   :  { %v600_v27 = vsel %vm599_vm7, %v598_v17, %v597_v53 }
 0x29e   :  { %v604_v58 = vrot.slane %v4512_v24, 1  ;;  %v601_v26 = vrot.slane %v4515_v25, 2 }
 0x2a0   :  { %v603_v32 = vsel %vm602_vm8, %v601_v26, %v600_v27 }
 0x2a1   :  { %v606_v34 = vsel %vm605_vm9, %v604_v58, %v603_v32 }
 0x2a2   :  { %607 = vrot.lane.b32.xlu0 %v606_v34, %s4231_s12 }
 0x314   :  { %v608_v63 = vpop.permute.xlu0 %607 }
 0x315   :  { %3436 = vmatmul.mubr.msk.f32.vlgmr.msra.gmra.mrb[2].mxu1 %vm67_vm1, %v608_v63 }
 0x316   :  { %3528 = vmatpush3.bf16.msra.mxu1 %v4330_v8  ;;  %3457 = vmatprep.mubr.msk.f32.mxu1 %vm4228_vm0, %v5724_v1 }
 0x317   :  { %3529 = vmatprep.subr.bf16.mxu1 %v5722_v0 }
 0x31a   :  { %3531 = vmatpush3.bf16.msra.mxu1 %v4334_v12 }
 0x31b   :  { %3538 = vmatprep.subr.bf16.mxu1 %v5722_v0 }
 0x3e8   :  { %v677_v61 = vpop.f32.mrb[2].mxu1 }
 0x3e9   :  { %v3437_v35 = vpop.f32.mrb[3].mxu1  ;;  %v683_v38 = vrot.slane %v677_v61, 1  ;;  %v682_v40 = vrot.slane %v677_v61, 7  ;;  %v698_v43 = vadd.f32 %v677_v61, %v4367_v30  ;;  %v684_v44 = vrot.slane %v677_v61, 2 }
 0x3ea   :  { %v685_v49 = vrot.slane %v677_v61, 3  ;;  %v686_v55 = vrot.slane %v677_v61, 4  ;;  %v687_v57 = vrot.slane %v677_v61, 5  ;;  %v688_v60 = vrot.slane %v677_v61, 6 }
 0x3eb   :  { %v699_v48 = vadd.f32 %v683_v38, %v4372_v33  ;;  %v697_v54 = vadd.f32 %v682_v40, %v4363_v23  ;;  %3634 = vtanh.f32 %v698_v43  ;;  %v700_v56 = vadd.f32 %v684_v44, %v4365_v29 }
 0x3ec   :  { %v701_v59 = vadd.f32 %v685_v49, %v4382_v41  ;;  %v702_v62 = vadd.f32 %v686_v55, %v4379_v39  ;;  %v703_v2 = vadd.f32 %v687_v57, %v4389_v50  ;;  %v704_v4 = vadd.f32 %v688_v60, %v4385_v46 }
 0x3ed   :  { %3636 = vtanh.f32 %v699_v48  ;;  %v3289_v17 = vmul.f32 -1.442695, %v698_v43  ;;  %v3290_v18 = vmul.f32 -1.442695, %v699_v48  ;;  %v3288_v19 = vmul.f32 -1.442695, %v697_v54 }
 0x3ee   :  { %3638 = vtanh.f32 %v697_v54  ;;  %v3291_v20 = vmul.f32 -1.442695, %v700_v56  ;;  %v3292_v53 = vmul.f32 -1.442695, %v701_v59  ;;  %v3293_v58 = vmul.f32 -1.442695, %v702_v62 }
 0x3ef   :  { %3640 = vtanh.f32 %v700_v56  ;;  %v3294_v26 = vmul.f32 -1.442695, %v703_v2  ;;  %v3295_v27 = vmul.f32 -1.442695, %v704_v4 }
 0x3f0   :  { %3642 = vtanh.f32 %v701_v59 }
 0x3f1   :  { %3644 = vtanh.f32 %v702_v62 }
 0x3f2   :  { %3646 = vtanh.f32 %v703_v2 }
 0x3f3   :  { %3648 = vtanh.f32 %v704_v4 }
 0x3f4   :  { %3650 = vpow2.f32 %v3289_v17 }
 0x3f5   :  { %v3635_v5 = vpop.eup %3634  ;;  %3652 = vpow2.f32 %v3290_v18 }
 0x3f6   :  { %803 = vrot.lane.b32.xlu1 %v3635_v5, %s4230_s3  ;;  %3654 = vpow2.f32 %v3288_v19 }
 0x3f7   :  { %v3637_v10 = vpop.eup %3636  ;;  %3656 = vpow2.f32 %v3291_v20 }
 0x3f8   :  { %805 = vrot.lane.b32.xlu0 %v3637_v10, %s4230_s3  ;;  %v3639_v11 = vpop.eup %3638  ;;  %3658 = vpow2.f32 %v3292_v53 }
 0x3f9   :  { %v3641_v42 = vpop.eup %3640  ;;  %3660 = vpow2.f32 %v3293_v58 }
 0x3fa   :  { %801 = vrot.lane.b32.xlu1 %v3639_v11, %s4230_s3  ;;  %v3643_v14 = vpop.eup %3642  ;;  %3662 = vpow2.f32 %v3294_v26 }
 0x3fb   :  { %v3645_v52 = vpop.eup %3644  ;;  %3664 = vpow2.f32 %v3295_v27 }
 0x3fc   :  { %807 = vrot.lane.b32.xlu0 %v3641_v42, %s4230_s3  ;;  %v3647_v45 = vpop.eup %3646 }
 0x3fd   :  { %v3649_v15 = vpop.eup %3648 }
 0x3fe   :  { %809 = vrot.lane.b32.xlu1 %v3643_v14, %s4230_s3  ;;  %v3651_v32 = vpop.eup %3650 }
 0x3ff   :  { %v3653_v34 = vpop.eup %3652  ;;  %v730_v63 = vadd.f32 1.0, %v3651_v32 }
 0x400   :  { %811 = vrot.lane.b32.xlu0 %v3645_v52, %s4230_s3  ;;  %v3655_v61 = vpop.eup %3654  ;;  %v731_v35 = vadd.f32 1.0, %v3653_v34 }
 0x401   :  { %v3657_v38 = vpop.eup %3656  ;;  %3666 = vrcp.f32 %v730_v63  ;;  %v729_v40 = vadd.f32 1.0, %v3655_v61 }
 0x402   :  { %813 = vrot.lane.b32.xlu1 %v3647_v45, %s4230_s3  ;;  %v3659_v43 = vpop.eup %3658  ;;  %3668 = vrcp.f32 %v731_v35  ;;  %v732_v44 = vadd.f32 1.0, %v3657_v38  ;;  %v770_v35 = vrot.slane %v4451_v22, 7  ;;  %v771_v38 = vrot.slane %v4457_v28, 7 }
 0x403   :  { %v3661_v48 = vpop.eup %3660  ;;  %3670 = vrcp.f32 %v729_v40  ;;  %v733_v49 = vadd.f32 1.0, %v3659_v43 }
 0x404   :  { %815 = vrot.lane.b32.xlu0 %v3649_v15, %s4230_s3  ;;  %v3663_v54 = vpop.eup %3662  ;;  %3672 = vrcp.f32 %v732_v44  ;;  %v734_v55 = vadd.f32 1.0, %v3661_v48  ;;  %v769_v48 = vrot.slane %v4444_v16, 7 }
 0x405   :  { %v3665_v56 = vpop.eup %3664  ;;  %3674 = vrcp.f32 %v733_v49  ;;  %v735_v57 = vadd.f32 1.0, %v3663_v54 }
 0x406   :  { %3676 = vrcp.f32 %v734_v55  ;;  %v736_v59 = vadd.f32 1.0, %v3665_v56  ;;  %v772_v55 = vrot.slane %v4449_v21, 7 }
 0x407   :  { %3678 = vrcp.f32 %v735_v57 }
 0x408   :  { %3680 = vrcp.f32 %v736_v59  ;;  %v773_v59 = vrot.slane %v4463_v37, 7 }
 0x40b   :  { %v4546_v60 = vpop.eup %3666 }
 0x40c   :  { %v4548_v2 = vpop.eup %3668  ;;  %v786_v40 = vmul.f32 %v4546_v60, %v770_v35 }
 0x40d   :  { %v4553_v11 = vpop.eup %3670  ;;  %v787_v44 = vmul.f32 %v4548_v2, %v771_v38 }
 0x40e   :  { %v4556_v14 = vpop.eup %3672  ;;  %v785_v22 = vmul.f32 %v4553_v11, %v769_v48 }
 0x40f   :  { %v4561_v17 = vpop.eup %3674  ;;  %v788_v57 = vmul.f32 %v4556_v14, %v772_v55 }
 0x410   :  { %v4564_v19 = vpop.eup %3676  ;;  %v789_v21 = vmul.f32 %v4561_v17, %v773_v59 }
 0x411   :  { %v4569_v26 = vpop.eup %3678 }
 0x412   :  { %v4572_v32 = vpop.eup %3680 }
 0x468   :  { %v804_v62 = vpop.permute.xlu1 %803 }
 0x469   :  { %v826_v4 = vmul.f32 %v4546_v60, %v804_v62 }
 0x46a   :  { %v806_v5 = vpop.permute.xlu0 %805 }
 0x46b   :  { %v827_v10 = vmul.f32 %v4548_v2, %v806_v5  ;;  %843 = vrot.lane.b32.xlu1 %v826_v4, %s4231_s12  ;;  %v774_v4 = vrot.slane %v4459_v31, 7 }
 0x46c   :  { %v802_v42 = vpop.permute.xlu1 %801 }
 0x46d   :  { %845 = vrot.lane.b32.xlu0 %v827_v10, %s4231_s12  ;;  %v825_v52 = vmul.f32 %v4553_v11, %v802_v42  ;;  %v790_v42 = vmul.f32 %v4564_v19, %v774_v4 }
 0x46e   :  { %v808_v45 = vpop.permute.xlu0 %807 }
 0x46f   :  { %v828_v15 = vmul.f32 %v4556_v14, %v808_v45  ;;  %841 = vrot.lane.b32.xlu1 %v825_v52, %s4231_s12  ;;  %v775_v52 = vrot.slane %v4470_v47, 7 }
 0x470   :  { %v810_v18 = vpop.permute.xlu1 %809 }
 0x471   :  { %847 = vrot.lane.b32.xlu0 %v828_v15, %s4231_s12  ;;  %v829_v20 = vmul.f32 %v4561_v17, %v810_v18  ;;  %v776_v15 = vrot.slane %v4472_v51, 7  ;;  %v791_v31 = vmul.f32 %v4569_v26, %v775_v52 }
 0x472   :  { %v812_v53 = vpop.permute.xlu0 %811 }
 0x473   :  { %v830_v58 = vmul.f32 %v4564_v19, %v812_v53  ;;  %849 = vrot.lane.b32.xlu1 %v829_v20, %s4231_s12  ;;  %v792_v53 = vmul.f32 %v4572_v32, %v776_v15 }
 0x474   :  { %v814_v27 = vpop.permute.xlu1 %813 }
 0x475   :  { %851 = vrot.lane.b32.xlu0 %v830_v58, %s4231_s12  ;;  %v831_v34 = vmul.f32 %v4569_v26, %v814_v27 }
 0x476   :  { %v816_v63 = vpop.permute.xlu0 %815 }
 0x477   :  { %v832_v61 = vmul.f32 %v4572_v32, %v816_v63  ;;  %853 = vrot.lane.b32.xlu1 %v831_v34, %s4231_s12 }
 0x479   :  { %855 = vrot.lane.b32.xlu0 %v832_v61, %s4231_s12 }
 0x4dd   :  { %v844_v43 = vpop.permute.xlu1 %843 }
 0x4de   :  { %v4583_v49 = vadd.f32 %v844_v43, %v786_v40 }
 0x4df   :  { %v846_v54 = vpop.permute.xlu0 %845 }
 0x4e0   :  { %v4586_v56 = vadd.f32 %v846_v54, %v787_v44  ;;  %3682 = vtanh.f32 %v4583_v49 }
 0x4e1   :  { %v842_v28 = vpop.permute.xlu1 %841 }
 0x4e2   :  { %3684 = vtanh.f32 %v4586_v56  ;;  %v4593_v62 = vadd.f32 %v842_v28, %v785_v22 }
 0x4e3   :  { %v848_v16 = vpop.permute.xlu0 %847 }
 0x4e4   :  { %v4596_v5 = vadd.f32 %v848_v16, %v788_v57  ;;  %3686 = vtanh.f32 %v4593_v62 }
 0x4e5   :  { %v850_v10 = vpop.permute.xlu1 %849 }
 0x4e6   :  { %3688 = vtanh.f32 %v4596_v5  ;;  %v4603_v45 = vadd.f32 %v850_v10, %v789_v21 }
 0x4e7   :  { %v852_v37 = vpop.permute.xlu0 %851 }
 0x4e8   :  { %v4606_v18 = vadd.f32 %v852_v37, %v790_v42  ;;  %3690 = vtanh.f32 %v4603_v45 }
 0x4e9   :  { %v854_v20 = vpop.permute.xlu1 %853 }
 0x4ea   :  { %3692 = vtanh.f32 %v4606_v18  ;;  %v3683_v58 = vpop.eup %3682  ;;  %v4612_v27 = vadd.f32 %v854_v20, %v791_v31 }
 0x4eb   :  { %v856_v47 = vpop.permute.xlu0 %855  ;;  %891 = vrot.lane.b32.xlu1 %v3683_v58, %s4230_s3 }
 0x4ec   :  { %v3685_v34 = vpop.eup %3684  ;;  %v4614_v63 = vadd.f32 %v856_v47, %v792_v53  ;;  %3694 = vtanh.f32 %v4612_v27 }
 0x4ed   :  { %893 = vrot.lane.b32.xlu0 %v3685_v34, %s4230_s3 }
 0x4ee   :  { %3696 = vtanh.f32 %v4614_v63  ;;  %v3687_v51 = vpop.eup %3686 }
 0x4ef   :  { %889 = vrot.lane.b32.xlu1 %v3687_v51, %s4230_s3 }
 0x4f0   :  { %v3689_v61 = vpop.eup %3688 }
 0x4f1   :  { %895 = vrot.lane.b32.xlu0 %v3689_v61, %s4230_s3 }
 0x4f2   :  { %v3691_v35 = vpop.eup %3690 }
 0x4f3   :  { %897 = vrot.lane.b32.xlu1 %v3691_v35, %s4230_s3 }
 0x4f4   :  { %v3693_v38 = vpop.eup %3692 }
 0x4f5   :  { %899 = vrot.lane.b32.xlu0 %v3693_v38, %s4230_s3 }
 0x4f6   :  { %v3695_v40 = vpop.eup %3694 }
 0x4f7   :  { %901 = vrot.lane.b32.xlu1 %v3695_v40, %s4230_s3 }
 0x4f8   :  { %v3697_v43 = vpop.eup %3696 }
 0x4f9   :  { %903 = vrot.lane.b32.xlu0 %v3697_v43, %s4230_s3 }
 0x55d   :  { %v892_v44 = vpop.permute.xlu1 %891 }
 0x55e   :  { %v4636_v59 = vmul.f32 %v4546_v60, %v892_v44 }
 0x55f   :  { %v894_v48 = vpop.permute.xlu0 %893 }
 0x560   :  { %v4627_v54 = vmul.f32 %v4548_v2, %v894_v48 }
 0x561   :  { %v890_v55 = vpop.permute.xlu1 %889 }
 0x562   :  { %v4630_v22 = vmul.f32 %v4553_v11, %v890_v55  ;;  %v964_v4 = vrot.slane %v4627_v54, 7 }
 0x563   :  { %v896_v28 = vpop.permute.xlu0 %895 }
 0x564   :  { %v4633_v57 = vmul.f32 %v4556_v14, %v896_v28  ;;  %v962_v16 = vrot.slane %v4630_v22, 1 }
 0x565   :  { %v898_v10 = vpop.permute.xlu1 %897 }
 0x566   :  { %v966_v21 = vrot.slane %v4633_v57, 6  ;;  %v963_v2 = vsel %vm587_vm3, %v4636_v59, %v962_v16  ;;  %v4644_v11 = vmul.f32 %v4561_v17, %v898_v10 }
 0x567   :  { %v900_v42 = vpop.permute.xlu0 %899  ;;  %v965_v14 = vsel %vm590_vm4, %v964_v4, %v963_v2 }
 0x568   :  { %v4648_v52 = vmul.f32 %v4564_v19, %v900_v42  ;;  %v967_v60 = vsel %vm593_vm5, %v966_v21, %v965_v14  ;;  %v968_v37 = vrot.slane %v4644_v11, 5 }
 0x569   :  { %v902_v31 = vpop.permute.xlu1 %901 }
 0x56a   :  { %v970_v15 = vrot.slane %v4648_v52, 4  ;;  %v969_v20 = vsel %vm596_vm6, %v968_v37, %v967_v60  ;;  %v4655_v53 = vmul.f32 %v4569_v26, %v902_v31 }
 0x56b   :  { %v904_v17 = vpop.permute.xlu0 %903 }
 0x56c   :  { %v4658_v58 = vmul.f32 %v4572_v32, %v904_v17  ;;  %v971_v47 = vsel %vm599_vm7, %v970_v15, %v969_v20  ;;  %v972_v19 = vrot.slane %v4655_v53, 3 }
 0x56e   :  { %v974_v34 = vrot.slane %v4658_v58, 2  ;;  %v973_v51 = vsel %vm602_vm8, %v972_v19, %v971_v47 }
 0x570   :  { %v975_v61 = vsel %vm605_vm9, %v974_v34, %v973_v51 }
 0x571   :  { %976 = vrot.lane.b32.xlu1 %v975_v61, %s4231_s12 }
 0x5e3   :  { %v977_v35 = vpop.permute.xlu1 %976 }
 0x5e4   :  { %3447 = vmatmul.mubr.msk.f32.vlgmr.msra.gmra.mrb[8].mxu0 %vm67_vm1, %v977_v35 }
 0x5e5   :  { %3534 = vmatpush3.bf16.msra.mxu0 %v4330_v8  ;;  %3468 = vmatprep.mubr.msk.f32.mxu0 %vm4228_vm0, %v5724_v1 }
 0x5e6   :  { %3535 = vmatprep.subr.bf16.mxu0 %v5722_v0 }
 0x5e9   :  { %3537 = vmatpush3.bf16.msra.mxu0 %v4334_v12 }
 0x5ea   :  { %3544 = vmatprep.subr.bf16.mxu0 %v5722_v0 }
 0x6b7   :  { %v1046_v26 = vpop.f32.mrb[8].mxu0 }
 0x6b8   :  { %v1051_v32 = vrot.slane %v1046_v26, 6  ;;  %v3448_v38 = vpop.f32.mrb[9].mxu0  ;;  %v1053_v43 = vrot.slane %v1046_v26, 1  ;;  %v1052_v44 = vrot.slane %v1046_v26, 7  ;;  %v1068_v48 = vadd.f32 %v1046_v26, %v4372_v33 }
 0x6b9   :  { %v1054_v55 = vrot.slane %v1046_v26, 2  ;;  %v1055_v4 = vrot.slane %v1046_v26, 3  ;;  %v1056_v10 = vrot.slane %v1046_v26, 4  ;;  %v1057_v42 = vrot.slane %v1046_v26, 5 }
 0x6ba   :  { %v1066_v40 = vadd.f32 %v1051_v32, %v4363_v23  ;;  %v1069_v28 = vadd.f32 %v1053_v43, %v4365_v29  ;;  %v1067_v21 = vadd.f32 %v1052_v44, %v4367_v30  ;;  %v3299_v61 = vmul.f32 -1.442695, %v1068_v48 }
 0x6bb   :  { %v1070_v2 = vadd.f32 %v1054_v55, %v4382_v41  ;;  %v1071_v14 = vadd.f32 %v1055_v4, %v4379_v39  ;;  %v1072_v60 = vadd.f32 %v1056_v10, %v4389_v50  ;;  %v1073_v37 = vadd.f32 %v1057_v42, %v4385_v46 }
 0x6bc   :  { %3698 = vtanh.f32 %v1066_v40  ;;  %v3297_v51 = vmul.f32 -1.442695, %v1066_v40  ;;  %v3300_v35 = vmul.f32 -1.442695, %v1069_v28  ;;  %v3298_v32 = vmul.f32 -1.442695, %v1067_v21 }
 0x6bd   :  { %3700 = vtanh.f32 %v1068_v48  ;;  %v3301_v38 = vmul.f32 -1.442695, %v1070_v2  ;;  %v3302_v44 = vmul.f32 -1.442695, %v1071_v14  ;;  %v3303_v55 = vmul.f32 -1.442695, %v1072_v60 }
 0x6be   :  { %3702 = vtanh.f32 %v1069_v28 }
 0x6bf   :  { %3704 = vtanh.f32 %v1067_v21 }
 0x6c0   :  { %3706 = vtanh.f32 %v1070_v2 }
 0x6c1   :  { %3708 = vtanh.f32 %v1071_v14 }
 0x6c2   :  { %3710 = vtanh.f32 %v1072_v60 }
 0x6c3   :  { %3712 = vtanh.f32 %v1073_v37 }
 0x6c4   :  { %3714 = vpow2.f32 %v3297_v51 }
 0x6c5   :  { %3716 = vpow2.f32 %v3299_v61 }
 0x6c6   :  { %v3699_v16 = vpop.eup %3698  ;;  %3718 = vpow2.f32 %v3300_v35 }
 0x6c7   :  { %1170 = vrot.lane.b32.xlu0 %v3699_v16, %s4230_s3  ;;  %v3701_v15 = vpop.eup %3700  ;;  %3720 = vpow2.f32 %v3298_v32  ;;  %v3304_v16 = vmul.f32 -1.442695, %v1073_v37 }
 0x6c8   :  { %v3703_v31 = vpop.eup %3702  ;;  %1174 = vrot.lane.b32.xlu1 %v3701_v15, %s4230_s3  ;;  %3722 = vpow2.f32 %v3301_v38 }
 0x6c9   :  { %v3705_v20 = vpop.eup %3704 }
 0x6ca   :  { %v3707_v17 = vpop.eup %3706 }
 0x6cb   :  { %1176 = vrot.lane.b32.xlu0 %v3703_v31, %s4230_s3  ;;  %v3709_v47 = vpop.eup %3708 }
 0x6cc   :  { %1172 = vrot.lane.b32.xlu1 %v3705_v20, %s4230_s3  ;;  %v3711_v19 = vpop.eup %3710 }
 0x6cd   :  { %v3713_v34 = vpop.eup %3712 }
 0x6ce   :  { %v3715_v26 = vpop.eup %3714 }
 0x6cf   :  { %1178 = vrot.lane.b32.xlu0 %v3707_v17, %s4230_s3  ;;  %v1098_v43 = vadd.f32 1.0, %v3715_v26  ;;  %v3717_v4 = vpop.eup %3716 }
 0x6d0   :  { %1180 = vrot.lane.b32.xlu1 %v3709_v47, %s4230_s3  ;;  %v3719_v10 = vpop.eup %3718  ;;  %v1100_v40 = vadd.f32 1.0, %v3717_v4 }
 0x6d1   :  { %3724 = vrcp.f32 %v1098_v43  ;;  %v3721_v48 = vpop.eup %3720  ;;  %v1101_v28 = vadd.f32 1.0, %v3719_v10 }
 0x6d2   :  { %3726 = vpow2.f32 %v3302_v44  ;;  %v3723_v42 = vpop.eup %3722  ;;  %v1099_v15 = vadd.f32 1.0, %v3721_v48 }
 0x6d3   :  { %1182 = vrot.lane.b32.xlu0 %v3711_v19, %s4230_s3  ;;  %3728 = vpow2.f32 %v3303_v55  ;;  %v1102_v60 = vadd.f32 1.0, %v3723_v42 }
 0x6d4   :  { %1184 = vrot.lane.b32.xlu1 %v3713_v34, %s4230_s3  ;;  %3730 = vpow2.f32 %v3304_v16 }
 0x6d5   :  { %3732 = vrcp.f32 %v1100_v40 }
 0x6d6   :  { %3734 = vrcp.f32 %v1101_v28 }
 0x6d7   :  { %3736 = vrcp.f32 %v1099_v15 }
 0x6d8   :  { %3738 = vrcp.f32 %v1102_v60  ;;  %v1138_v60 = vrot.slane %v4593_v62, 7 }
 0x6db   :  { %v4689_v21 = vpop.eup %3724 }
 0x6dc   :  { %v3727_v31 = vpop.eup %3726 }
 0x6dd   :  { %v3729_v20 = vpop.eup %3728  ;;  %v1103_v37 = vadd.f32 1.0, %v3727_v31 }
 0x6de   :  { %v3731_v17 = vpop.eup %3730  ;;  %v1104_v47 = vadd.f32 1.0, %v3729_v20  ;;  %v1154_v20 = vmul.f32 %v4689_v21, %v1138_v60 }
 0x6df   :  { %3740 = vrcp.f32 %v1103_v37  ;;  %v1105_v19 = vadd.f32 1.0, %v3731_v17  ;;  %v4693_v34 = vpop.eup %3732 }
 0x6e0   :  { %3742 = vrcp.f32 %v1104_v47  ;;  %v4695_v61 = vpop.eup %3734  ;;  %v1140_v47 = vrot.slane %v4586_v56, 7 }
 0x6e1   :  { %3744 = vrcp.f32 %v1105_v19  ;;  %v4700_v38 = vpop.eup %3736  ;;  %v1141_v19 = vrot.slane %v4596_v5, 7 }
 0x6e2   :  { %v4703_v44 = vpop.eup %3738 }
 0x6e9   :  { %v4708_v10 = vpop.eup %3740 }
 0x6ea   :  { %v4711_v48 = vpop.eup %3742 }
 0x6eb   :  { %v4716_v15 = vpop.eup %3744 }
 0x739   :  { %v1171_v2 = vpop.permute.xlu0 %1170 }
 0x73a   :  { %v1194_v14 = vmul.f32 %v4689_v21, %v1171_v2  ;;  %v1175_v51 = vpop.permute.xlu1 %1174 }
 0x73b   :  { %v1196_v35 = vmul.f32 %v4693_v34, %v1175_v51  ;;  %v1156_v51 = vmul.f32 %v4693_v34, %v1140_v47 }
 0x73c   :  { %1210 = vrot.lane.b32.xlu0 %v1194_v14, %s4231_s12 }
 0x73d   :  { %v1177_v26 = vpop.permute.xlu0 %1176  ;;  %1214 = vrot.lane.b32.xlu1 %v1196_v35, %s4231_s12 }
 0x73e   :  { %v1197_v32 = vmul.f32 %v4695_v61, %v1177_v26  ;;  %v1173_v43 = vpop.permute.xlu1 %1172  ;;  %v1157_v26 = vmul.f32 %v4695_v61, %v1141_v19 }
 0x73f   :  { %v1195_v55 = vmul.f32 %v4700_v38, %v1173_v43 }
 0x740   :  { %1216 = vrot.lane.b32.xlu0 %v1197_v32, %s4231_s12  ;;  %v1139_v32 = vrot.slane %v4583_v49, 7  ;;  %v1143_v49 = vrot.slane %v4606_v18, 7 }
 0x741   :  { %v1179_v16 = vpop.permute.xlu0 %1178  ;;  %1212 = vrot.lane.b32.xlu1 %v1195_v55, %s4231_s12  ;;  %v1142_v55 = vrot.slane %v4603_v45, 7  ;;  %v1144_v45 = vrot.slane %v4612_v27, 7 }
 0x742   :  { %v1198_v4 = vmul.f32 %v4703_v44, %v1179_v16  ;;  %v1181_v40 = vpop.permute.xlu1 %1180  ;;  %v1155_v56 = vmul.f32 %v4700_v38, %v1139_v32 }
 0x743   :  { %v1199_v28 = vmul.f32 %v4708_v10, %v1181_v40  ;;  %v1158_v40 = vmul.f32 %v4703_v44, %v1142_v55  ;;  %v1160_v60 = vmul.f32 %v4711_v48, %v1144_v45 }
 0x744   :  { %1218 = vrot.lane.b32.xlu0 %v1198_v4, %s4231_s12 }
 0x745   :  { %v1183_v42 = vpop.permute.xlu0 %1182  ;;  %1220 = vrot.lane.b32.xlu1 %v1199_v28, %s4231_s12 }
 0x746   :  { %v1200_v2 = vmul.f32 %v4711_v48, %v1183_v42  ;;  %v1185_v31 = vpop.permute.xlu1 %1184 }
 0x747   :  { %v1201_v14 = vmul.f32 %v4716_v15, %v1185_v31  ;;  %v1159_v31 = vmul.f32 %v4708_v10, %v1143_v49 }
 0x748   :  { %1222 = vrot.lane.b32.xlu0 %v1200_v2, %s4231_s12 }
 0x749   :  { %1224 = vrot.lane.b32.xlu1 %v1201_v14, %s4231_s12 }
 0x7ae   :  { %v1211_v37 = vpop.permute.xlu0 %1210 }
 0x7af   :  { %v4723_v17 = vadd.f32 %v1211_v37, %v1154_v20  ;;  %v1215_v35 = vpop.permute.xlu1 %1214  ;;  %v1145_v20 = vrot.slane %v4614_v63, 7 }
 0x7b0   :  { %v4731_v43 = vadd.f32 %v1215_v35, %v1156_v51 }
 0x7b1   :  { %3746 = vtanh.f32 %v4723_v17  ;;  %v1161_v27 = vmul.f32 %v4716_v15, %v1145_v20 }
 0x7b2   :  { %v1217_v62 = vpop.permute.xlu0 %1216  ;;  %3748 = vtanh.f32 %v4731_v43 }
 0x7b3   :  { %v4734_v16 = vadd.f32 %v1217_v62, %v1157_v26  ;;  %v1213_v5 = vpop.permute.xlu1 %1212 }
 0x7b4   :  { %v4742_v28 = vadd.f32 %v1213_v5, %v1155_v56 }
 0x7b5   :  { %3750 = vtanh.f32 %v4734_v16 }
 0x7b6   :  { %v1219_v42 = vpop.permute.xlu0 %1218  ;;  %3752 = vtanh.f32 %v4742_v28 }
 0x7b7   :  { %v4745_v2 = vadd.f32 %v1219_v42, %v1158_v40  ;;  %v1221_v14 = vpop.permute.xlu1 %1220 }
 0x7b8   :  { %v4752_v37 = vadd.f32 %v1221_v14, %v1159_v31 }
 0x7b9   :  { %3754 = vtanh.f32 %v4745_v2 }
 0x7ba   :  { %v1223_v18 = vpop.permute.xlu0 %1222  ;;  %3756 = vtanh.f32 %v4752_v37 }
 0x7bb   :  { %v3747_v4 = vpop.eup %3746  ;;  %v4754_v47 = vadd.f32 %v1223_v18, %v1160_v60  ;;  %v1225_v19 = vpop.permute.xlu1 %1224 }
 0x7bc   :  { %1258 = vrot.lane.b32.xlu0 %v3747_v4, %s4230_s3  ;;  %v3749_v51 = vpop.eup %3748  ;;  %v4759_v35 = vadd.f32 %v1225_v19, %v1161_v27 }
 0x7bd   :  { %3758 = vtanh.f32 %v4754_v47  ;;  %1262 = vrot.lane.b32.xlu1 %v3749_v51, %s4230_s3 }
 0x7be   :  { %3760 = vtanh.f32 %v4759_v35 }
 0x7bf   :  { %v3751_v26 = vpop.eup %3750 }
 0x7c0   :  { %1264 = vrot.lane.b32.xlu0 %v3751_v26, %s4230_s3  ;;  %v3753_v63 = vpop.eup %3752 }
 0x7c1   :  { %1260 = vrot.lane.b32.xlu1 %v3753_v63, %s4230_s3 }
 0x7c3   :  { %v3755_v32 = vpop.eup %3754 }
 0x7c4   :  { %1266 = vrot.lane.b32.xlu0 %v3755_v32, %s4230_s3  ;;  %v3757_v62 = vpop.eup %3756 }
 0x7c5   :  { %1268 = vrot.lane.b32.xlu1 %v3757_v62, %s4230_s3 }
 0x7c7   :  { %v3759_v55 = vpop.eup %3758 }
 0x7c8   :  { %1270 = vrot.lane.b32.xlu0 %v3759_v55, %s4230_s3  ;;  %v3761_v4 = vpop.eup %3760 }
 0x7c9   :  { %1272 = vrot.lane.b32.xlu1 %v3761_v4, %s4230_s3 }
 0x82e   :  { %v1259_v56 = vpop.permute.xlu0 %1258 }
 0x82f   :  { %v1263_v5 = vpop.permute.xlu1 %1262  ;;  %v4770_v49 = vmul.f32 %v4689_v21, %v1259_v56 }
 0x830   :  { %v4785_v21 = vmul.f32 %v4693_v34, %v1263_v5 }
 0x831   :  { %v1331_v20 = vrot.slane %v4770_v49, 2 }
 0x832   :  { %v1265_v40 = vpop.permute.xlu0 %1264 }
 0x833   :  { %v4773_v42 = vmul.f32 %v4695_v61, %v1265_v40  ;;  %v1261_v45 = vpop.permute.xlu1 %1260 }
 0x834   :  { %v4776_v31 = vmul.f32 %v4700_v38, %v1261_v45 }
 0x835   :  { %v1335_v27 = vrot.slane %v4773_v42, 7 }
 0x836   :  { %v1267_v14 = vpop.permute.xlu0 %1266  ;;  %v1332_v18 = vrot.slane %v4776_v31, 1 }
 0x837   :  { %v4779_v60 = vmul.f32 %v4703_v44, %v1267_v14  ;;  %v1269_v19 = vpop.permute.xlu1 %1268 }
 0x838   :  { %v1333_v51 = vsel %vm587_vm3, %v1332_v18, %v1331_v20  ;;  %v4790_v38 = vmul.f32 %v4708_v10, %v1269_v19 }
 0x839   :  { %5748 = vst [vmem:[#allocation16_spill] sm:$0xff] %v4779_v60  ;;  %v1337_v61 = vrot.slane %v4779_v60, 6  ;;  %v1334_v44 = vsel %vm590_vm4, %v4785_v21, %v1333_v51 }
 0x83a   :  { %v1271_v26 = vpop.permute.xlu0 %1270  ;;  %v1336_v32 = vsel %vm593_vm5, %v1335_v27, %v1334_v44  ;;  %v1339_v34 = vrot.slane %v4790_v38, 5 }
 0x83b   :  { %v4795_v63 = vmul.f32 %v4711_v48, %v1271_v26  ;;  %v1338_v62 = vsel %vm596_vm6, %v1337_v61, %v1336_v32  ;;  %v1273_v55 = vpop.permute.xlu1 %1272 }
 0x83c   :  { %v4802_v56 = vmul.f32 %v4716_v15, %v1273_v55  ;;  %v1340_v10 = vsel %vm599_vm7, %v1339_v34, %v1338_v62 }
 0x83d   :  { %5749 = vst [vmem:[#allocation17_spill] sm:$0xff] %v4795_v63  ;;  %v1341_v4 = vrot.slane %v4795_v63, 4 }
 0x83e   :  { %v1343_v40 = vrot.slane %v4802_v56, 3 }
 0x83f   :  { %v1342_v5 = vsel %vm602_vm8, %v1341_v4, %v1340_v10 }
 0x840   :  { %v1344_v48 = vsel %vm605_vm9, %v1343_v40, %v1342_v5 }
 0x841   :  { %1345 = vrot.lane.b32.xlu0 %v1344_v48, %s4231_s12 }
 0x8b3   :  { %v1346_v45 = vpop.permute.xlu0 %1345 }
 0x8b4   :  { %3458 = vmatmul.mubr.msk.f32.vlgmr.msra.gmra.mrb[4].mxu1 %vm67_vm1, %v1346_v45 }
 0x8b5   :  { %3540 = vmatpush3.bf16.msra.mxu1 %v4330_v8  ;;  %3479 = vmatprep.mubr.msk.f32.mxu1 %vm4228_vm0, %v5724_v1 }
 0x8b6   :  { %3541 = vmatprep.subr.bf16.mxu1 %v5722_v0 }
 0x8b9   :  { %3543 = vmatpush3.bf16.msra.mxu1 %v4334_v12 }
 0x8ba   :  { %3550 = vmatprep.subr.bf16.mxu1 %v5722_v0 }
 0x987   :  { %v1415_v15 = vpop.f32.mrb[4].mxu1 }
 0x988   :  { %v3459_v14 = vpop.f32.mrb[5].mxu1  ;;  %v1421_v20 = vrot.slane %v1415_v15, 6  ;;  %v1423_v18 = vrot.slane %v1415_v15, 1  ;;  %v1420_v19 = vrot.slane %v1415_v15, 5  ;;  %v1438_v61 = vadd.f32 %v1415_v15, %v4365_v29 }
 0x989   :  { %v1424_v51 = vrot.slane %v1415_v15, 2  ;;  %v1422_v44 = vrot.slane %v1415_v15, 7  ;;  %v1426_v34 = vrot.slane %v1415_v15, 4  ;;  %v1425_v55 = vrot.slane %v1415_v15, 3 }
 0x98a   :  { %v1436_v27 = vadd.f32 %v1421_v20, %v4367_v30  ;;  %v1439_v26 = vadd.f32 %v1423_v18, %v4382_v41  ;;  %v1435_v32 = vadd.f32 %v1420_v19, %v4363_v23 }
 0x98b   :  { %v1440_v62 = vadd.f32 %v1424_v51, %v4379_v39  ;;  %v1437_v4 = vadd.f32 %v1422_v44, %v4372_v33  ;;  %v1442_v10 = vadd.f32 %v1426_v34, %v4385_v46  ;;  %v1441_v40 = vadd.f32 %v1425_v55, %v4389_v50 }
 0x98c   :  { %3762 = vtanh.f32 %v1436_v27  ;;  %v3307_v51 = vmul.f32 -1.442695, %v1436_v27  ;;  %v3309_v44 = vmul.f32 -1.442695, %v1438_v61  ;;  %v3310_v34 = vmul.f32 -1.442695, %v1439_v26 }
 0x98d   :  { %3764 = vtanh.f32 %v1438_v61  ;;  %v3306_v55 = vmul.f32 -1.442695, %v1435_v32 }
 0x98e   :  { %3766 = vtanh.f32 %v1439_v26 }
 0x98f   :  { %3768 = vtanh.f32 %v1435_v32 }
 0x990   :  { %3770 = vtanh.f32 %v1440_v62 }
 0x991   :  { %3772 = vtanh.f32 %v1437_v4 }
 0x992   :  { %3774 = vtanh.f32 %v1442_v10 }
 0x993   :  { %3776 = vtanh.f32 %v1441_v40 }
 0x994   :  { %3778 = vpow2.f32 %v3307_v51 }
 0x995   :  { %3780 = vpow2.f32 %v3309_v44 }
 0x996   :  { %v3763_v5 = vpop.eup %3762  ;;  %3782 = vpow2.f32 %v3310_v34 }
 0x997   :  { %1541 = vrot.lane.b32.xlu0 %v3763_v5, %s4230_s3  ;;  %v3765_v48 = vpop.eup %3764  ;;  %v3311_v5 = vmul.f32 -1.442695, %v1440_v62  ;;  %3784 = vpow2.f32 %v3306_v55 }
 0x998   :  { %1545 = vrot.lane.b32.xlu1 %v3765_v48, %s4230_s3  ;;  %v3767_v45 = vpop.eup %3766  ;;  %v3308_v48 = vmul.f32 -1.442695, %v1437_v4 }
 0x999   :  { %v3769_v15 = vpop.eup %3768  ;;  %3786 = vpow2.f32 %v3311_v5 }
 0x99a   :  { %v3771_v14 = vpop.eup %3770  ;;  %3788 = vpow2.f32 %v3308_v48 }
 0x99b   :  { %1547 = vrot.lane.b32.xlu0 %v3767_v45, %s4230_s3  ;;  %v3773_v20 = vpop.eup %3772  ;;  %v3313_v45 = vmul.f32 -1.442695, %v1442_v10 }
 0x99c   :  { %1539 = vrot.lane.b32.xlu1 %v3769_v15, %s4230_s3  ;;  %v3775_v18 = vpop.eup %3774 }
 0x99d   :  { %v3777_v19 = vpop.eup %3776  ;;  %3790 = vpow2.f32 %v3313_v45 }
 0x99e   :  { %v3779_v15 = vpop.eup %3778 }
 0x99f   :  { %1549 = vrot.lane.b32.xlu0 %v3771_v14, %s4230_s3  ;;  %v3312_v14 = vmul.f32 -1.442695, %v1441_v40 }
 0x9a0   :  { %1543 = vrot.lane.b32.xlu1 %v3773_v20, %s4230_s3  ;;  %v3781_v20 = vpop.eup %3780 }
 0x9a1   :  { %v3783_v0 = vpop.eup %3782  ;;  %3792 = vpow2.f32 %v3312_v14  ;;  %v1470_v27 = vadd.f32 1.0, %v3781_v20 }
 0x9a2   :  { %v3785_v61 = vpop.eup %3784  ;;  %v1471_v26 = vadd.f32 1.0, %v3783_v0 }
 0x9a3   :  { %1553 = vrot.lane.b32.xlu0 %v3775_v18, %s4230_s3  ;;  %v1468_v18 = vadd.f32 1.0, %v3779_v15  ;;  %v3787_v32 = vpop.eup %3786 }
 0x9a4   :  { %1551 = vrot.lane.b32.xlu1 %v3777_v19, %s4230_s3  ;;  %v1467_v19 = vadd.f32 1.0, %v3785_v61  ;;  %v3789_v62 = vpop.eup %3788  ;;  %v1472_v4 = vadd.f32 1.0, %v3787_v32 }
 0x9a5   :  { %3794 = vrcp.f32 %v1468_v18  ;;  %v1469_v10 = vadd.f32 1.0, %v3789_v62 }
 0x9a6   :  { %3796 = vrcp.f32 %v1470_v27 }
 0x9a7   :  { %3798 = vrcp.f32 %v1471_v26  ;;  %v3791_v51 = vpop.eup %3790 }
 0x9a8   :  { %3800 = vrcp.f32 %v1467_v19  ;;  %v1474_v40 = vadd.f32 1.0, %v3791_v51 }
 0x9a9   :  { %3802 = vrcp.f32 %v1472_v4 }
 0x9aa   :  { %3804 = vrcp.f32 %v1469_v10 }
 0x9ab   :  { %v3793_v44 = vpop.eup %3792  ;;  %3806 = vrcp.f32 %v1474_v40 }
 0x9ac   :  { %v1473_v5 = vadd.f32 1.0, %v3793_v44 }
 0x9ae   :  { %3808 = vrcp.f32 %v1473_v5 }
 0x9af   :  { %v4832_v34 = vpop.eup %3794 }
 0x9b0   :  { %v4835_v0 = vpop.eup %3796 }
 0x9b1   :  { %v4839_v14 = vpop.eup %3798 }
 0x9b2   :  { %v4843_v27 = vpop.eup %3800 }
 0x9b3   :  { %v4847_v32 = vpop.eup %3802 }
 0x9b4   :  { %v4851_v4 = vpop.eup %3804 }
 0x9b5   :  { %v4855_v44 = vpop.eup %3806 }
 0x9b8   :  { %v4859_v5 = vpop.eup %3808 }
 0xa09   :  { %v1542_v55 = vpop.permute.xlu0 %1541 }
 0xa0a   :  { %v1564_v48 = vmul.f32 %v4832_v34, %v1542_v55  ;;  %v1546_v45 = vpop.permute.xlu1 %1545 }
 0xa0b   :  { %v1566_v15 = vmul.f32 %v4835_v0, %v1546_v45 }
 0xa0c   :  { %1581 = vrot.lane.b32.xlu0 %v1564_v48, %s4231_s12 }
 0xa0d   :  { %v1548_v20 = vpop.permute.xlu0 %1547  ;;  %1585 = vrot.lane.b32.xlu1 %v1566_v15, %s4231_s12  ;;  %v1508_v15 = vrot.slane %v4742_v28, 7 }
 0xa0e   :  { %v1567_v18 = vmul.f32 %v4839_v14, %v1548_v20  ;;  %v1540_v61 = vpop.permute.xlu1 %1539  ;;  %v1510_v20 = vrot.slane %v4734_v16, 7  ;;  %v1512_v16 = vrot.slane %v4752_v37, 7 }
 0xa0f   :  { %v1563_v26 = vmul.f32 %v4843_v27, %v1540_v61 }
 0xa10   :  { %1587 = vrot.lane.b32.xlu0 %v1567_v18, %s4231_s12  ;;  %v1524_v18 = vmul.f32 %v4832_v34, %v1508_v15  ;;  %v1509_v15 = vrot.slane %v4731_v43, 7 }
 0xa11   :  { %v1550_v19 = vpop.permute.xlu0 %1549  ;;  %1579 = vrot.lane.b32.xlu1 %v1563_v26, %s4231_s12  ;;  %v1511_v26 = vrot.slane %v4745_v2, 7 }
 0xa12   :  { %v1568_v62 = vmul.f32 %v4847_v32, %v1550_v19  ;;  %v1544_v51 = vpop.permute.xlu1 %1543  ;;  %v1526_v19 = vmul.f32 %v4835_v0, %v1510_v20  ;;  %v1525_v37 = vmul.f32 %v4851_v4, %v1509_v15 }
 0xa13   :  { %v1565_v10 = vmul.f32 %v4851_v4, %v1544_v51  ;;  %v1527_v28 = vmul.f32 %v4839_v14, %v1511_v26 }
 0xa14   :  { %1589 = vrot.lane.b32.xlu0 %v1568_v62, %s4231_s12 }
 0xa15   :  { %v1554_v40 = vpop.permute.xlu0 %1553  ;;  %1583 = vrot.lane.b32.xlu1 %v1565_v10, %s4231_s12  ;;  %v1507_v10 = vrot.slane %v4723_v17, 7  ;;  %v1528_v17 = vmul.f32 %v4847_v32, %v1512_v16 }
 0xa16   :  { %v1570_v55 = vmul.f32 %v4855_v44, %v1554_v40  ;;  %v1552_v48 = vpop.permute.xlu1 %1551 }
 0xa17   :  { %v1569_v45 = vmul.f32 %v4859_v5, %v1552_v48  ;;  %v1523_v2 = vmul.f32 %v4843_v27, %v1507_v10 }
 0xa18   :  { %1593 = vrot.lane.b32.xlu0 %v1570_v55, %s4231_s12 }
 0xa19   :  { %1591 = vrot.lane.b32.xlu1 %v1569_v45, %s4231_s12 }
 0xa7e   :  { %v1582_v61 = vpop.permute.xlu0 %1581 }
 0xa7f   :  { %v4869_v62 = vadd.f32 %v1582_v61, %v1524_v18  ;;  %v1586_v51 = vpop.permute.xlu1 %1585  ;;  %v1514_v61 = vrot.slane %v4759_v35, 7 }
 0xa80   :  { %v4872_v40 = vadd.f32 %v1586_v51, %v1526_v19  ;;  %v1513_v51 = vrot.slane %v4754_v47, 7 }
 0xa81   :  { %3810 = vtanh.f32 %v4869_v62  ;;  %v1530_v43 = vmul.f32 %v4855_v44, %v1514_v61 }
 0xa82   :  { %v1588_v55 = vpop.permute.xlu0 %1587  ;;  %3812 = vtanh.f32 %v4872_v40  ;;  %v1529_v35 = vmul.f32 %v4859_v5, %v1513_v51 }
 0xa83   :  { %v4879_v48 = vadd.f32 %v1588_v55, %v1527_v28  ;;  %v1580_v45 = vpop.permute.xlu1 %1579 }
 0xa84   :  { %v4882_v20 = vadd.f32 %v1580_v45, %v1523_v2 }
 0xa85   :  { %3814 = vtanh.f32 %v4879_v48 }
 0xa86   :  { %v1590_v18 = vpop.permute.xlu0 %1589  ;;  %3816 = vtanh.f32 %v4882_v20 }
 0xa87   :  { %v4889_v26 = vadd.f32 %v1590_v18, %v1528_v17  ;;  %v1584_v19 = vpop.permute.xlu1 %1583 }
 0xa88   :  { %v4892_v10 = vadd.f32 %v1584_v19, %v1525_v37 }
 0xa89   :  { %3818 = vtanh.f32 %v4889_v26 }
 0xa8a   :  { %v1594_v28 = vpop.permute.xlu0 %1593  ;;  %3820 = vtanh.f32 %v4892_v10 }
 0xa8b   :  { %v3811_v55 = vpop.eup %3810  ;;  %v4898_v16 = vadd.f32 %v1594_v28, %v1530_v43  ;;  %v1592_v2 = vpop.permute.xlu1 %1591 }
 0xa8c   :  { %1629 = vrot.lane.b32.xlu0 %v3811_v55, %s4230_s3  ;;  %v3813_v45 = vpop.eup %3812  ;;  %v4901_v15 = vadd.f32 %v1592_v2, %v1529_v35 }
 0xa8d   :  { %3822 = vtanh.f32 %v4898_v16  ;;  %1633 = vrot.lane.b32.xlu1 %v3813_v45, %s4230_s3 }
 0xa8e   :  { %3824 = vtanh.f32 %v4901_v15 }
 0xa8f   :  { %v3815_v47 = vpop.eup %3814 }
 0xa90   :  { %1635 = vrot.lane.b32.xlu0 %v3815_v47, %s4230_s3  ;;  %v3817_v17 = vpop.eup %3816 }
 0xa91   :  { %1627 = vrot.lane.b32.xlu1 %v3817_v17, %s4230_s3 }
 0xa93   :  { %v3819_v18 = vpop.eup %3818 }
 0xa94   :  { %1637 = vrot.lane.b32.xlu0 %v3819_v18, %s4230_s3  ;;  %v3821_v61 = vpop.eup %3820 }
 0xa95   :  { %1631 = vrot.lane.b32.xlu1 %v3821_v61, %s4230_s3 }
 0xa97   :  { %v3823_v37 = vpop.eup %3822 }
 0xa98   :  { %1641 = vrot.lane.b32.xlu0 %v3823_v37, %s4230_s3  ;;  %v3825_v19 = vpop.eup %3824 }
 0xa99   :  { %1639 = vrot.lane.b32.xlu1 %v3825_v19, %s4230_s3 }
 0xafe   :  { %v1630_v51 = vpop.permute.xlu0 %1629 }
 0xaff   :  { %v1634_v43 = vpop.permute.xlu1 %1633  ;;  %v4916_v2 = vmul.f32 %v4832_v34, %v1630_v51 }
 0xb00   :  { %v4934_v51 = vmul.f32 %v4835_v0, %v1634_v43 }
 0xb01   :  { %v1701_v19 = vrot.slane %v4916_v2, 2 }
 0xb02   :  { %v1636_v28 = vpop.permute.xlu0 %1635  ;;  %5755 = vst [vmem:[#allocation23_spill] sm:$0xff] %v4934_v51 }
 0xb03   :  { %v1628_v55 = vpop.permute.xlu1 %1627  ;;  %v4923_v61 = vmul.f32 %v4839_v14, %v1636_v28 }
 0xb04   :  { %v4913_v35 = vmul.f32 %v4843_v27, %v1628_v55 }
 0xb05   :  { %5752 = vst [vmem:[#allocation20_spill] sm:$0xff] %v4923_v61  ;;  %v1706_v28 = vrot.slane %v4923_v61, 7 }
 0xb06   :  { %5750 = vst [vmem:[#allocation18_spill] sm:$0xff] %v4913_v35  ;;  %v1638_v45 = vpop.permute.xlu0 %1637  ;;  %v1700_v47 = vrot.slane %v4913_v35, 3 }
 0xb07   :  { %v1632_v17 = vpop.permute.xlu1 %1631  ;;  %v4920_v18 = vmul.f32 %v4847_v32, %v1638_v45 }
 0xb08   :  { %v4926_v37 = vmul.f32 %v4851_v4, %v1632_v17  ;;  %v1702_v32 = vsel %vm587_vm3, %v1701_v19, %v1700_v47 }
 0xb09   :  { %5751 = vst [vmem:[#allocation19_spill] sm:$0xff] %v4920_v18  ;;  %v1708_v45 = vrot.slane %v4920_v18, 6 }
 0xb0a   :  { %5753 = vst [vmem:[#allocation21_spill] sm:$0xff] %v4926_v37  ;;  %v1642_v27 = vpop.permute.xlu0 %1641  ;;  %v1703_v55 = vrot.slane %v4926_v37, 1 }
 0xb0b   :  { %v4931_v34 = vmul.f32 %v4855_v44, %v1642_v27  ;;  %v1640_v14 = vpop.permute.xlu1 %1639 }
 0xb0c   :  { %v1704_v4 = vsel %vm590_vm4, %v1703_v55, %v1702_v32  ;;  %v4941_v17 = vmul.f32 %v4859_v5, %v1640_v14  ;;  %v5757_v5 = vmov 0.0   ;;  %v5758_v32 = vmov 0.0|0.0  }
 0xb0d   :  { %5754 = vst [vmem:[#allocation22_spill] sm:$0xff] %v4931_v34  ;;  %v1705_v1 = vsel %vm593_vm5, %v4934_v51, %v1704_v4  ;;  %v1712_v44 = vrot.slane %v4931_v34, 4 }
 0xb0e   :  { %5756 = vst [vmem:[#allocation24_spill] sm:$0xff] %v4941_v17  ;;  %v1710_v0 = vrot.slane %v4941_v17, 5  ;;  %v1707_v43 = vsel %vm596_vm6, %v1706_v28, %v1705_v1 }
 0xb0f   :  { %v1709_v47 = vsel %vm599_vm7, %v1708_v45, %v1707_v43 }
 0xb10   :  { %v1711_v19 = vsel %vm602_vm8, %v1710_v0, %v1709_v47 }
 0xb11   :  { %v1713_v27 = vsel %vm605_vm9, %v1712_v44, %v1711_v19 }
 0xb12   :  { %1714 = vrot.lane.b32.xlu1 %v1713_v27, %s4231_s12 }
 0xb84   :  { %v1715_v55 = vpop.permute.xlu1 %1714 }
 0xb85   :  { %3469 = vmatmul.mubr.msk.f32.vlgmr.msra.gmra.mrb[10].mxu0 %vm67_vm1, %v1715_v55 }
 0xb86   :  { %3546 = vmatpush3.bf16.msra.mxu0 %v4330_v8  ;;  %3490 = vmatprep.mubr.msk.f32.mxu0 %vm4228_vm0, %v5757_v5 }
 0xb87   :  { %3547 = vmatprep.subr.bf16.mxu0 %v5758_v32 }
 0xb8a   :  { %3549 = vmatpush3.bf16.msra.mxu0 %v4334_v12 }
 0xc58   :  { %v1784_v1 = vpop.f32.mrb[10].mxu0 }
 0xc59   :  { %v1789_v45 = vrot.slane %v1784_v1, 4  ;;  %v3470_v14 = vpop.f32.mrb[11].mxu0  ;;  %v1791_v4 = vrot.slane %v1784_v1, 6  ;;  %v1793_v44 = vrot.slane %v1784_v1, 1  ;;  %v1790_v43 = vrot.slane %v1784_v1, 5 }
 0xc5a   :  { %v1808_v47 = vadd.f32 %v1784_v1, %v4382_v41  ;;  %v1794_v27 = vrot.slane %v1784_v1, 2  ;;  %v1792_v17 = vrot.slane %v1784_v1, 7  ;;  %v1795_v61 = vrot.slane %v1784_v1, 3 }
 0xc5b   :  { %v1804_v28 = vadd.f32 %v1789_v45, %v4363_v23  ;;  %v1806_v0 = vadd.f32 %v1791_v4, %v4372_v33  ;;  %v1809_v55 = vadd.f32 %v1793_v44, %v4379_v39  ;;  %v1805_v14 = vadd.f32 %v1790_v43, %v4367_v30 }
 0xc5c   :  { %v1810_v45 = vadd.f32 %v1794_v27, %v4389_v50  ;;  %v1807_v4 = vadd.f32 %v1792_v17, %v4365_v29  ;;  %v1811_v34 = vadd.f32 %v1795_v61, %v4385_v46 }
 0xc5d   :  { %3826 = vtanh.f32 %v1804_v28  ;;  %v3317_v27 = vmul.f32 -1.442695, %v1806_v0  ;;  %v3320_v18 = vmul.f32 -1.442695, %v1809_v55 }
 0xc5e   :  { %3828 = vtanh.f32 %v1806_v0  ;;  %v3322_v51 = vmul.f32 -1.442695, %v1811_v34 }
 0xc5f   :  { %3830 = vtanh.f32 %v1808_v47 }
 0xc60   :  { %3832 = vtanh.f32 %v1809_v55 }
 0xc61   :  { %3834 = vtanh.f32 %v1805_v14 }
 0xc62   :  { %3836 = vtanh.f32 %v1810_v45 }
 0xc63   :  { %3838 = vtanh.f32 %v1807_v4 }
 0xc64   :  { %3840 = vtanh.f32 %v1811_v34 }
 0xc67   :  { %v3827_v19 = vpop.eup %3826 }
 0xc68   :  { %1908 = vrot.lane.b32.xlu0 %v3827_v19, %s4230_s3  ;;  %v3829_v37 = vpop.eup %3828 }
 0xc69   :  { %v3831_v44 = vpop.eup %3830 }
 0xc6a   :  { %1916 = vrot.lane.b32.xlu1 %v3831_v44, %s4230_s3  ;;  %v3833_v19 = vpop.eup %3832  ;;  %v3319_v44 = vmul.f32 -1.442695, %v1808_v47 }
 0xc6b   :  { %v3835_v43 = vpop.eup %3834 }
 0xc6c   :  { %1912 = vrot.lane.b32.xlu0 %v3829_v37, %s4230_s3  ;;  %v3837_v1 = vpop.eup %3836  ;;  %v3315_v37 = vmul.f32 -1.442695, %v1804_v28 }
 0xc6d   :  { %v3839_v17 = vpop.eup %3838 }
 0xc6e   :  { %1910 = vrot.lane.b32.xlu1 %v3835_v43, %s4230_s3  ;;  %v3841_v61 = vpop.eup %3840  ;;  %3842 = vpow2.f32 %v3315_v37  ;;  %v3321_v43 = vmul.f32 -1.442695, %v1810_v45 }
 0xc6f   :  { %3844 = vpow2.f32 %v3317_v27 }
 0xc70   :  { %1918 = vrot.lane.b32.xlu0 %v3833_v19, %s4230_s3  ;;  %v3316_v19 = vmul.f32 -1.442695, %v1805_v14  ;;  %3846 = vpow2.f32 %v3319_v44 }
 0xc71   :  { %3848 = vpow2.f32 %v3320_v18 }
 0xc72   :  { %1914 = vrot.lane.b32.xlu1 %v3839_v17, %s4230_s3  ;;  %3850 = vpow2.f32 %v3316_v19 }
 0xc74   :  { %1920 = vrot.lane.b32.xlu0 %v3837_v1, %s4230_s3  ;;  %v3318_v1 = vmul.f32 -1.442695, %v1807_v4 }
 0xc76   :  { %1922 = vrot.lane.b32.xlu1 %v3841_v61, %s4230_s3 }
 0xc78   :  { %v3843_v35 = vpop.eup %3842 }
 0xc79   :  { %v1836_v63 = vadd.f32 1.0, %v3843_v35  ;;  %v3845_v17 = vpop.eup %3844 }
 0xc7a   :  { %v3847_v61 = vpop.eup %3846  ;;  %v1838_v28 = vadd.f32 1.0, %v3845_v17 }
 0xc7b   :  { %3852 = vrcp.f32 %v1836_v63  ;;  %v3849_v37 = vpop.eup %3848  ;;  %v1840_v0 = vadd.f32 1.0, %v3847_v61 }
 0xc7c   :  { %3854 = vpow2.f32 %v3321_v43  ;;  %v3851_v47 = vpop.eup %3850  ;;  %v1841_v35 = vadd.f32 1.0, %v3849_v37 }
 0xc7d   :  { %3856 = vpow2.f32 %v3318_v1  ;;  %v1837_v63 = vadd.f32 1.0, %v3851_v47 }
 0xc7e   :  { %3858 = vpow2.f32 %v3322_v51 }
 0xc7f   :  { %3860 = vrcp.f32 %v1838_v28 }
 0xc80   :  { %3862 = vrcp.f32 %v1840_v0 }
 0xc81   :  { %3864 = vrcp.f32 %v1841_v35 }
 0xc82   :  { %3866 = vrcp.f32 %v1837_v63 }
 0xc85   :  { %v4974_v27 = vpop.eup %3852 }
 0xc86   :  { %v3855_v18 = vpop.eup %3854 }
 0xc87   :  { %v3857_v45 = vpop.eup %3856  ;;  %v1842_v34 = vadd.f32 1.0, %v3855_v18 }
 0xc88   :  { %v1839_v4 = vadd.f32 1.0, %v3857_v45  ;;  %v3859_v51 = vpop.eup %3858 }
 0xc89   :  { %3868 = vrcp.f32 %v1842_v34  ;;  %v4978_v44 = vpop.eup %3860  ;;  %v1843_v43 = vadd.f32 1.0, %v3859_v51 }
 0xc8a   :  { %3870 = vrcp.f32 %v1839_v4  ;;  %v4981_v17 = vpop.eup %3862 }
 0xc8b   :  { %v4985_v37 = vpop.eup %3864  ;;  %3872 = vrcp.f32 %v1843_v43 }
 0xcda   :  { %v1909_v55 = vpop.permute.xlu0 %1908 }
 0xcdb   :  { %v1932_v14 = vmul.f32 %v4974_v27, %v1909_v55  ;;  %v4989_v55 = vpop.eup %3866 }
 0xcdc   :  { %v1917_v61 = vpop.permute.xlu1 %1916 }
 0xcdd   :  { %1948 = vrot.lane.b32.xlu0 %v1932_v14, %s4231_s12  ;;  %v1936_v28 = vmul.f32 %v4981_v17, %v1917_v61  ;;  %v4993_v14 = vpop.eup %3868  ;;  %v1876_v61 = vrot.slane %v4882_v20, 7 }
 0xcde   :  { %v1913_v19 = vpop.permute.xlu0 %1912  ;;  %v4997_v34 = vpop.eup %3870 }
 0xcdf   :  { %v1934_v1 = vmul.f32 %v4978_v44, %v1913_v19  ;;  %1956 = vrot.lane.b32.xlu1 %v1936_v28, %s4231_s12  ;;  %v5002_v19 = vpop.eup %3872  ;;  %v1892_v28 = vmul.f32 %v4974_v27, %v1876_v61  ;;  %v1877_v61 = vrot.slane %v4869_v62, 7  ;;  %v1879_v62 = vrot.slane %v4872_v40, 7 }
 0xce0   :  { %v1911_v35 = vpop.permute.xlu1 %1910 }
 0xce1   :  { %1952 = vrot.lane.b32.xlu0 %v1934_v1, %s4231_s12  ;;  %v1933_v18 = vmul.f32 %v4989_v55, %v1911_v35  ;;  %v1878_v35 = vrot.slane %v4892_v10, 7 }
 0xce2   :  { %v1919_v0 = vpop.permute.xlu0 %1918 }
 0xce3   :  { %v1937_v47 = vmul.f32 %v4985_v37, %v1919_v0  ;;  %1950 = vrot.lane.b32.xlu1 %v1933_v18, %s4231_s12  ;;  %v1880_v18 = vrot.slane %v4879_v48, 7 }
 0xce4   :  { %v1915_v4 = vpop.permute.xlu1 %1914 }
 0xce5   :  { %1958 = vrot.lane.b32.xlu0 %v1937_v47, %s4231_s12  ;;  %v1935_v51 = vmul.f32 %v4997_v34, %v1915_v4  ;;  %v1881_v4 = vrot.slane %v4889_v26, 7  ;;  %v1893_v26 = vmul.f32 %v4989_v55, %v1877_v61 }
 0xce6   :  { %v1921_v63 = vpop.permute.xlu0 %1920 }
 0xce7   :  { %v1938_v45 = vmul.f32 %v4993_v14, %v1921_v63  ;;  %1954 = vrot.lane.b32.xlu1 %v1935_v51, %s4231_s12  ;;  %v1894_v63 = vmul.f32 %v4978_v44, %v1878_v35  ;;  %v1896_v51 = vmul.f32 %v4981_v17, %v1880_v18  ;;  %v1897_v10 = vmul.f32 %v4985_v37, %v1881_v4 }
 0xce8   :  { %v1923_v43 = vpop.permute.xlu1 %1922 }
 0xce9   :  { %1960 = vrot.lane.b32.xlu0 %v1938_v45, %s4231_s12  ;;  %v1939_v1 = vmul.f32 %v5002_v19, %v1923_v43 }
 0xceb   :  { %1962 = vrot.lane.b32.xlu1 %v1939_v1, %s4231_s12 }
 0xd4f   :  { %v1949_v0 = vpop.permute.xlu0 %1948 }
 0xd50   :  { %v5008_v47 = vadd.f32 %v1949_v0, %v1892_v28  ;;  %v1882_v0 = vrot.slane %v4901_v15, 7  ;;  %v1895_v15 = vmul.f32 %v4997_v34, %v1879_v62 }
 0xd51   :  { %v1957_v20 = vpop.permute.xlu1 %1956 }
 0xd52   :  { %3874 = vtanh.f32 %v5008_v47  ;;  %v5019_v28 = vadd.f32 %v1957_v20, %v1896_v51 }
 0xd53   :  { %v1953_v45 = vpop.permute.xlu0 %1952 }
 0xd54   :  { %v5016_v43 = vadd.f32 %v1953_v45, %v1894_v63  ;;  %v1898_v45 = vmul.f32 %v4993_v14, %v1882_v0 }
 0xd55   :  { %v1951_v18 = vpop.permute.xlu1 %1950 }
 0xd56   :  { %3876 = vtanh.f32 %v5016_v43  ;;  %v5030_v63 = vadd.f32 %v1951_v18, %v1893_v26 }
 0xd57   :  { %v1959_v48 = vpop.permute.xlu0 %1958  ;;  %3878 = vtanh.f32 %v5019_v28 }
 0xd58   :  { %v5027_v35 = vadd.f32 %v1959_v48, %v1897_v10 }
 0xd59   :  { %v1955_v20 = vpop.permute.xlu1 %1954 }
 0xd5a   :  { %3880 = vtanh.f32 %v5027_v35  ;;  %v5039_v61 = vadd.f32 %v1955_v20, %v1895_v15 }
 0xd5b   :  { %v1961_v4 = vpop.permute.xlu0 %1960  ;;  %3882 = vtanh.f32 %v5030_v63 }
 0xd5c   :  { %v3875_v1 = vpop.eup %3874  ;;  %v5036_v51 = vadd.f32 %v1961_v4, %v1898_v45 }
 0xd5d   :  { %1996 = vrot.lane.b32.xlu0 %v3875_v1, %s4230_s3  ;;  %v1883_v1 = vrot.slane %v4898_v16, 7  ;;  %v1963_v48 = vpop.permute.xlu1 %1962 }
 0xd5e   :  { %3884 = vtanh.f32 %v5036_v51 }
 0xd5f   :  { %3886 = vtanh.f32 %v5039_v61  ;;  %v1899_v10 = vmul.f32 %v5002_v19, %v1883_v1 }
 0xd60   :  { %v3877_v40 = vpop.eup %3876 }
 0xd61   :  { %2000 = vrot.lane.b32.xlu0 %v3877_v40, %s4230_s3  ;;  %v3879_v0 = vpop.eup %3878  ;;  %v5045_v26 = vadd.f32 %v1963_v48, %v1899_v10 }
 0xd62   :  { %2004 = vrot.lane.b32.xlu1 %v3879_v0, %s4230_s3 }
 0xd63   :  { %3888 = vtanh.f32 %v5045_v26 }
 0xd64   :  { %v3881_v18 = vpop.eup %3880 }
 0xd65   :  { %2006 = vrot.lane.b32.xlu0 %v3881_v18, %s4230_s3  ;;  %v3883_v16 = vpop.eup %3882 }
 0xd66   :  { %1998 = vrot.lane.b32.xlu1 %v3883_v16, %s4230_s3 }
 0xd68   :  { %v3885_v62 = vpop.eup %3884 }
 0xd69   :  { %2008 = vrot.lane.b32.xlu0 %v3885_v62, %s4230_s3  ;;  %v3887_v45 = vpop.eup %3886 }
 0xd6a   :  { %2002 = vrot.lane.b32.xlu1 %v3887_v45, %s4230_s3 }
 0xd6d   :  { %v3889_v4 = vpop.eup %3888 }
 0xd6e   :  { %2010 = vrot.lane.b32.xlu1 %v3889_v4, %s4230_s3 }
 0xdcf   :  { %v1997_v15 = vpop.permute.xlu0 %1996 }
 0xdd0   :  { %v5058_v48 = vmul.f32 %v4974_v27, %v1997_v15 }
 0xdd2   :  { %v2069_v45 = vrot.slane %v5058_v48, 4 }
 0xdd3   :  { %v2001_v20 = vpop.permute.xlu0 %2000 }
 0xdd4   :  { %v2005_v1 = vpop.permute.xlu1 %2004  ;;  %v5055_v40 = vmul.f32 %v4978_v44, %v2001_v20 }
 0xdd6   :  { %5759 = vst [vmem:[#allocation25_spill] sm:$0xff] %v5055_v40  ;;  %v2072_v16 = vrot.slane %v5055_v40, 2 }
 0xdd7   :  { %v2007_v10 = vpop.permute.xlu0 %2006 }
 0xdd8   :  { %v1999_v0 = vpop.permute.xlu1 %1998  ;;  %v5067_v60 = vmul.f32 %v4985_v37, %v2007_v10 }
 0xdd9   :  { %v5061_v18 = vmul.f32 %v4989_v55, %v1999_v0 }
 0xdda   :  { %5761 = vst [vmem:[#allocation27_spill] sm:$0xff] %v5067_v60  ;;  %v2077_v40 = vrot.slane %v5067_v60, 7 }
 0xddb   :  { %5760 = vst [vmem:[#allocation26_spill] sm:$0xff] %v5061_v18  ;;  %v2009_v62 = vpop.permute.xlu0 %2008  ;;  %v2070_v4 = vrot.slane %v5061_v18, 3  ;;  %v5080_v18 = vmul.f32 %v4981_v17, %v2005_v1 }
 0xddc   :  { %v2003_v44 = vpop.permute.xlu1 %2002  ;;  %v5070_v20 = vmul.f32 %v4993_v14, %v2009_v62 }
 0xddd   :  { %v2071_v27 = vsel %vm587_vm3, %v2070_v4, %v2069_v45  ;;  %v5074_v15 = vmul.f32 %v4997_v34, %v2003_v44 }
 0xdde   :  { %v2073_v55 = vsel %vm590_vm4, %v2072_v16, %v2071_v27  ;;  %v2079_v10 = vrot.slane %v5070_v20, 6 }
 0xddf   :  { %v2074_v0 = vrot.slane %v5074_v15, 1 }
 0xde0   :  { %v2011_v37 = vpop.permute.xlu1 %2010 }
 0xde1   :  { %v2075_v14 = vsel %vm593_vm5, %v2074_v0, %v2073_v55  ;;  %v5085_v62 = vmul.f32 %v5002_v19, %v2011_v37 }
 0xde2   :  { %v2076_v34 = vsel %vm596_vm6, %v5080_v18, %v2075_v14 }
 0xde3   :  { %5762 = vst [vmem:[#allocation28_spill] sm:$0xff] %v5085_v62  ;;  %v2081_v16 = vrot.slane %v5085_v62, 5  ;;  %v2078_v45 = vsel %vm599_vm7, %v2077_v40, %v2076_v34 }
 0xde4   :  { %v2080_v4 = vsel %vm602_vm8, %v2079_v10, %v2078_v45 }
 0xde5   :  { %v2082_v17 = vsel %vm605_vm9, %v2081_v16, %v2080_v4 }
 0xde6   :  { %2083 = vrot.lane.b32.xlu0 %v2082_v17, %s4231_s12 }
 0xe58   :  { %v2084_v1 = vpop.permute.xlu0 %2083 }
 0xe59   :  { %3480 = vmatmul.mubr.msk.f32.vlgmr.msra.gmra.mrb[6].mxu1 %vm67_vm1, %v2084_v1 }
 0xe5a   :  { %3552 = vmatpush3.bf16.msra.mxu1 %v4330_v8  ;;  %3501 = vmatprep.mubr.msk.f32.mxu1 %vm4228_vm0, %v5757_v5  ;;  %vm2798_vm0 = vcmask 260102  }
 0xe5b   :  { %3553 = vmatprep.subr.bf16.mxu1 %v5758_v32 }
 0xe5e   :  { %3555 = vmatpush3.bf16.msra.mxu1 %v4334_v12 }
 0xf2c   :  { %v2153_v19 = vpop.f32.mrb[6].mxu1 }
 0xf2d   :  { %v2158_v40 = vrot.slane %v2153_v19, 3  ;;  %v3481_v44 = vpop.f32.mrb[7].mxu1  ;;  %v2159_v55 = vrot.slane %v2153_v19, 4  ;;  %v2160_v0 = vrot.slane %v2153_v19, 5  ;;  %v2161_v37 = vrot.slane %v2153_v19, 6 }
 0xf2e   :  { %v2162_v14 = vrot.slane %v2153_v19, 7  ;;  %v2163_v34 = vrot.slane %v2153_v19, 1  ;;  %v2164_v16 = vrot.slane %v2153_v19, 2  ;;  %v2178_v4 = vadd.f32 %v2153_v19, %v4379_v39 }
 0xf2f   :  { %v2173_v27 = vadd.f32 %v2158_v40, %v4363_v23  ;;  %v2174_v10 = vadd.f32 %v2159_v55, %v4367_v30  ;;  %v2175_v8 = vadd.f32 %v2160_v0, %v4372_v33  ;;  %v2176_v5 = vadd.f32 %v2161_v37, %v4365_v29 }
 0xf30   :  { %v2177_v12 = vadd.f32 %v2162_v14, %v4382_v41  ;;  %v2179_v45 = vadd.f32 %v2163_v34, %v4389_v50  ;;  %v2180_v17 = vadd.f32 %v2164_v16, %v4385_v46  ;;  %v3329_v62 = vmul.f32 -1.442695, %v2178_v4 }
 0xf31   :  { %3890 = vtanh.f32 %v2173_v27  ;;  %v3324_v14 = vmul.f32 -1.442695, %v2173_v27  ;;  %v3325_v34 = vmul.f32 -1.442695, %v2174_v10  ;;  %v3327_v16 = vmul.f32 -1.442695, %v2176_v5 }
 0xf32   :  { %3892 = vtanh.f32 %v2174_v10 }
 0xf33   :  { %3894 = vtanh.f32 %v2175_v8 }
 0xf34   :  { %3896 = vtanh.f32 %v2176_v5 }
 0xf35   :  { %3898 = vtanh.f32 %v2177_v12 }
 0xf36   :  { %3900 = vtanh.f32 %v2179_v45 }
 0xf37   :  { %3902 = vtanh.f32 %v2178_v4 }
 0xf38   :  { %3904 = vtanh.f32 %v2180_v17 }
 0xf39   :  { %3906 = vpow2.f32 %v3324_v14 }
 0xf3a   :  { %3908 = vpow2.f32 %v3325_v34 }
 0xf3b   :  { %v3891_v32 = vpop.eup %3890 }
 0xf3c   :  { %2277 = vrot.lane.b32.xlu1 %v3891_v32, %s4230_s3  ;;  %v3893_v1 = vpop.eup %3892  ;;  %v3326_v32 = vmul.f32 -1.442695, %v2175_v8 }
 0xf3d   :  { %v3895_v40 = vpop.eup %3894  ;;  %2279 = vrot.lane.b32.xlu0 %v3893_v1, %s4230_s3 }
 0xf3e   :  { %v3897_v44 = vpop.eup %3896  ;;  %3910 = vpow2.f32 %v3326_v32 }
 0xf3f   :  { %v3899_v55 = vpop.eup %3898  ;;  %3912 = vpow2.f32 %v3327_v16 }
 0xf40   :  { %2281 = vrot.lane.b32.xlu1 %v3895_v40, %s4230_s3  ;;  %v3901_v0 = vpop.eup %3900  ;;  %v3328_v40 = vmul.f32 -1.442695, %v2177_v12 }
 0xf41   :  { %2283 = vrot.lane.b32.xlu0 %v3897_v44, %s4230_s3  ;;  %v3903_v19 = vpop.eup %3902  ;;  %v3330_v44 = vmul.f32 -1.442695, %v2179_v45 }
 0xf42   :  { %v3905_v37 = vpop.eup %3904  ;;  %3914 = vpow2.f32 %v3328_v40 }
 0xf43   :  { %v3907_v1 = vpop.eup %3906  ;;  %3916 = vpow2.f32 %v3330_v44 }
 0xf44   :  { %2285 = vrot.lane.b32.xlu1 %v3899_v55, %s4230_s3  ;;  %v2205_v55 = vadd.f32 1.0, %v3907_v1 }
 0xf45   :  { %2289 = vrot.lane.b32.xlu0 %v3901_v0, %s4230_s3  ;;  %v3331_v0 = vmul.f32 -1.442695, %v2180_v17 }
 0xf46   :  { %3918 = vrcp.f32 %v2205_v55 }
 0xf47   :  { %3920 = vpow2.f32 %v3329_v62 }
 0xf48   :  { %2287 = vrot.lane.b32.xlu1 %v3903_v19, %s4230_s3  ;;  %v3909_v19 = vpop.eup %3908  ;;  %3922 = vpow2.f32 %v3331_v0 }
 0xf49   :  { %2291 = vrot.lane.b32.xlu0 %v3905_v37, %s4230_s3  ;;  %v3911_v37 = vpop.eup %3910  ;;  %v2206_v27 = vadd.f32 1.0, %v3909_v19 }
 0xf4a   :  { %v3913_v10 = vpop.eup %3912  ;;  %v2207_v8 = vadd.f32 1.0, %v3911_v37 }
 0xf4b   :  { %3924 = vrcp.f32 %v2206_v27  ;;  %v2208_v34 = vadd.f32 1.0, %v3913_v10 }
 0xf4c   :  { %v3915_v14 = vpop.eup %3914  ;;  %3926 = vrcp.f32 %v2207_v8 }
 0xf4d   :  { %v3917_v5 = vpop.eup %3916  ;;  %v2209_v32 = vadd.f32 1.0, %v3915_v14  ;;  %3928 = vrcp.f32 %v2208_v34 }
 0xf4e   :  { %v2211_v62 = vadd.f32 1.0, %v3917_v5 }
 0xf4f   :  { %3930 = vrcp.f32 %v2209_v32 }
 0xf50   :  { %v5116_v12 = vpop.eup %3918  ;;  %3932 = vrcp.f32 %v2211_v62 }
 0xf51   :  { %v3921_v4 = vpop.eup %3920 }
 0xf52   :  { %v3923_v16 = vpop.eup %3922  ;;  %v2210_v1 = vadd.f32 1.0, %v3921_v4 }
 0xf53   :  { %v2212_v40 = vadd.f32 1.0, %v3923_v16 }
 0xf54   :  { %3934 = vrcp.f32 %v2210_v1 }
 0xf55   :  { %v5120_v44 = vpop.eup %3924  ;;  %3936 = vrcp.f32 %v2212_v40 }
 0xf56   :  { %v5122_v0 = vpop.eup %3926 }
 0xf57   :  { %v5127_v10 = vpop.eup %3928 }
 0xf59   :  { %v5130_v14 = vpop.eup %3930 }
 0xf5a   :  { %v5135_v32 = vpop.eup %3932 }
 0xfae   :  { %v2278_v45 = vpop.permute.xlu1 %2277 }
 0xfaf   :  { %v2301_v17 = vmul.f32 %v5116_v12, %v2278_v45  ;;  %v2280_v55 = vpop.permute.xlu0 %2279 }
 0xfb0   :  { %v2302_v19 = vmul.f32 %v5120_v44, %v2280_v55 }
 0xfb1   :  { %2317 = vrot.lane.b32.xlu1 %v2301_v17, %s4231_s12  ;;  %v5138_v17 = vpop.eup %3934 }
 0xfb2   :  { %v2282_v37 = vpop.permute.xlu1 %2281  ;;  %2319 = vrot.lane.b32.xlu0 %v2302_v19, %s4231_s12  ;;  %v5143_v40 = vpop.eup %3936 }
 0xfb3   :  { %v2303_v27 = vmul.f32 %v5122_v0, %v2282_v37  ;;  %v2284_v8 = vpop.permute.xlu0 %2283  ;;  %v2245_v37 = vrot.slane %v5008_v47, 7 }
 0xfb4   :  { %v2304_v5 = vmul.f32 %v5127_v10, %v2284_v8 }
 0xfb5   :  { %2321 = vrot.lane.b32.xlu1 %v2303_v27, %s4231_s12  ;;  %v2261_v27 = vmul.f32 %v5116_v12, %v2245_v37 }
 0xfb6   :  { %v2286_v34 = vpop.permute.xlu1 %2285  ;;  %2323 = vrot.lane.b32.xlu0 %v2304_v5, %s4231_s12 }
 0xfb7   :  { %v2305_v45 = vmul.f32 %v5130_v14, %v2286_v34  ;;  %v2290_v4 = vpop.permute.xlu0 %2289  ;;  %v2246_v34 = vrot.slane %v5030_v63, 7 }
 0xfb8   :  { %v2307_v62 = vmul.f32 %v5135_v32, %v2290_v4 }
 0xfb9   :  { %2325 = vrot.lane.b32.xlu1 %v2305_v45, %s4231_s12  ;;  %v2247_v45 = vrot.slane %v5016_v43, 7  ;;  %v2262_v4 = vmul.f32 %v5120_v44, %v2246_v34  ;;  %v2251_v34 = vrot.slane %v5036_v51, 7  ;;  %v2252_v51 = vrot.slane %v5045_v26, 7 }
 0xfba   :  { %v2288_v16 = vpop.permute.xlu1 %2287  ;;  %2329 = vrot.lane.b32.xlu0 %v2307_v62, %s4231_s12 }
 0xfbb   :  { %v2306_v1 = vmul.f32 %v5138_v17, %v2288_v16  ;;  %v2292_v55 = vpop.permute.xlu0 %2291  ;;  %v2263_v16 = vmul.f32 %v5122_v0, %v2247_v45 }
 0xfbc   :  { %v2308_v19 = vmul.f32 %v5143_v40, %v2292_v55 }
 0xfbd   :  { %2327 = vrot.lane.b32.xlu1 %v2306_v1, %s4231_s12  ;;  %v2248_v1 = vrot.slane %v5039_v61, 7 }
 0xfbe   :  { %2331 = vrot.lane.b32.xlu0 %v2308_v19, %s4231_s12  ;;  %v2249_v19 = vrot.slane %v5019_v28, 7  ;;  %v2250_v28 = vrot.slane %v5027_v35, 7  ;;  %v2268_v35 = vmul.f32 %v5143_v40, %v2252_v51 }
 0xfbf   :  { %v2264_v63 = vmul.f32 %v5127_v10, %v2248_v1 }
 0xfc0   :  { %v2266_v1 = vmul.f32 %v5138_v17, %v2250_v28 }
0x1023   :  { %v2318_v8 = vpop.permute.xlu1 %2317 }
0x1024   :  { %v5150_v5 = vadd.f32 %v2318_v8, %v2261_v27  ;;  %v2320_v62 = vpop.permute.xlu0 %2319  ;;  %v2265_v8 = vmul.f32 %v5130_v14, %v2249_v19 }
0x1025   :  { %v5158_v55 = vadd.f32 %v2320_v62, %v2262_v4  ;;  %v2267_v62 = vmul.f32 %v5135_v32, %v2251_v34 }
0x1026   :  { %3938 = vtanh.f32 %v5150_v5 }
0x1027   :  { %v2322_v47 = vpop.permute.xlu1 %2321  ;;  %3940 = vtanh.f32 %v5158_v55 }
0x1028   :  { %v5161_v37 = vadd.f32 %v2322_v47, %v2263_v16  ;;  %v2324_v43 = vpop.permute.xlu0 %2323 }
0x1029   :  { %v5168_v61 = vadd.f32 %v2324_v43, %v2264_v63 }
0x102a   :  { %3942 = vtanh.f32 %v5161_v37 }
0x102b   :  { %v2326_v45 = vpop.permute.xlu1 %2325  ;;  %3944 = vtanh.f32 %v5168_v61 }
0x102c   :  { %v5172_v4 = vadd.f32 %v2326_v45, %v2265_v8  ;;  %v2330_v16 = vpop.permute.xlu0 %2329 }
0x102d   :  { %v5179_v47 = vadd.f32 %v2330_v16, %v2267_v62 }
0x102e   :  { %3946 = vtanh.f32 %v5172_v4 }
0x102f   :  { %v2328_v19 = vpop.permute.xlu1 %2327  ;;  %3948 = vtanh.f32 %v5179_v47 }
0x1030   :  { %v3939_v27 = vpop.eup %3938  ;;  %v5181_v63 = vadd.f32 %v2328_v19, %v2266_v1 }
0x1031   :  { %2365 = vrot.lane.b32.xlu1 %v3939_v27, %s4230_s3  ;;  %v2332_v27 = vpop.permute.xlu0 %2331  ;;  %v3941_v43 = vpop.eup %3940 }
0x1032   :  { %3950 = vtanh.f32 %v5181_v63  ;;  %v5186_v8 = vadd.f32 %v2332_v27, %v2268_v35  ;;  %2367 = vrot.lane.b32.xlu0 %v3941_v43, %s4230_s3 }
0x1034   :  { %v3943_v34 = vpop.eup %3942  ;;  %3952 = vtanh.f32 %v5186_v8 }
0x1035   :  { %2369 = vrot.lane.b32.xlu1 %v3943_v34, %s4230_s3  ;;  %v3945_v26 = vpop.eup %3944 }
0x1036   :  { %2371 = vrot.lane.b32.xlu0 %v3945_v26, %s4230_s3 }
0x1038   :  { %v3947_v45 = vpop.eup %3946 }
0x1039   :  { %2373 = vrot.lane.b32.xlu1 %v3947_v45, %s4230_s3  ;;  %v3949_v28 = vpop.eup %3948 }
0x103a   :  { %2377 = vrot.lane.b32.xlu0 %v3949_v28, %s4230_s3 }
0x103c   :  { %v3951_v62 = vpop.eup %3950 }
0x103d   :  { %2375 = vrot.lane.b32.xlu1 %v3951_v62, %s4230_s3 }
0x103e   :  { %v3953_v16 = vpop.eup %3952 }
0x103f   :  { %2379 = vrot.lane.b32.xlu0 %v3953_v16, %s4230_s3 }
0x10a3   :  { %v2366_v1 = vpop.permute.xlu1 %2365 }
0x10a4   :  { %v5197_v51 = vmul.f32 %v5116_v12, %v2366_v1  ;;  %v2368_v19 = vpop.permute.xlu0 %2367 }
0x10a5   :  { %v5200_v35 = vmul.f32 %v5120_v44, %v2368_v19 }
0x10a6   :  { %v2438_v27 = vrot.slane %v5197_v51, 5 }
0x10a7   :  { %5763 = vst [vmem:[#allocation29_spill] sm:$0xff] %v5200_v35  ;;  %v2370_v43 = vpop.permute.xlu1 %2369  ;;  %v2439_v26 = vrot.slane %v5200_v35, 4 }
0x10a8   :  { %v5204_v34 = vmul.f32 %v5122_v0, %v2370_v43  ;;  %v2372_v45 = vpop.permute.xlu0 %2371 }
0x10a9   :  { %v2440_v62 = vsel %vm587_vm3, %v2439_v26, %v2438_v27  ;;  %v5210_v12 = vmul.f32 %v5127_v10, %v2372_v45 }
0x10aa   :  { %5764 = vst [vmem:[#allocation30_spill] sm:$0xff] %v5204_v34  ;;  %v2441_v28 = vrot.slane %v5204_v34, 3 }
0x10ab   :  { %5765 = vst [vmem:[#allocation31_spill] sm:$0xff] %v5210_v12  ;;  %v2374_v16 = vpop.permute.xlu1 %2373  ;;  %v2443_v19 = vrot.slane %v5210_v12, 2 }
0x10ac   :  { %v2442_v44 = vsel %vm590_vm4, %v2441_v28, %v2440_v62  ;;  %v5214_v1 = vmul.f32 %v5130_v14, %v2374_v16  ;;  %v2378_v0 = vpop.permute.xlu0 %2377 }
0x10ad   :  { %v5219_v35 = vmul.f32 %v5135_v32, %v2378_v0  ;;  %v2444_v60 = vsel %vm593_vm5, %v2443_v19, %v2442_v44 }
0x10ae   :  { %5766 = vst [vmem:[#allocation32_spill] sm:$0xff] %v5214_v1  ;;  %v2445_v43 = vrot.slane %v5214_v1, 1 }
0x10af   :  { %5767 = vst [vmem:[#allocation33_spill] sm:$0xff] %v5219_v35  ;;  %v2376_v27 = vpop.permute.xlu1 %2375  ;;  %v2448_v45 = vrot.slane %v5219_v35, 7 }
0x10b0   :  { %v2446_v10 = vsel %vm596_vm6, %v2445_v43, %v2444_v60  ;;  %v5224_v26 = vmul.f32 %v5138_v17, %v2376_v27 }
0x10b1   :  { %v2380_v14 = vpop.permute.xlu0 %2379 }
0x10b2   :  { %5768 = vst [vmem:[#allocation34_spill] sm:$0xff] %v5224_v26  ;;  %v2447_v28 = vsel %vm599_vm7, %v5224_v26, %v2446_v10  ;;  %v5230_v62 = vmul.f32 %v5143_v40, %v2380_v14 }
0x10b3   :  { %v2449_v32 = vsel %vm602_vm8, %v2448_v45, %v2447_v28 }
0x10b4   :  { %5769 = vst [vmem:[#allocation35_spill] sm:$0xff] %v5230_v62  ;;  %v2450_v16 = vrot.slane %v5230_v62, 6 }
0x10b6   :  { %v2451_v44 = vsel %vm605_vm9, %v2450_v16, %v2449_v32 }
0x10b7   :  { %2452 = vrot.lane.b32.xlu1 %v2451_v44, %s4231_s12 }
0x1129   :  { %v2453_v60 = vpop.permute.xlu1 %2452 }
0x112a   :  { %3491 = vmatmul.mubr.msk.f32.vlgmr.msra.gmra.mrb[12].mxu0 %vm67_vm1, %v2453_v60 }
0x11fd   :  { %v2522_v17 = vpop.f32.mrb[12].mxu0 }
0x11fe   :  { %v2527_v19 = vrot.slane %v2522_v17, 2  ;;  %v3492_v0 = vpop.f32.mrb[13].mxu0  ;;  %v2528_v27 = vrot.slane %v2522_v17, 3  ;;  %v2529_v40 = vrot.slane %v2522_v17, 4  ;;  %v2530_v10 = vrot.slane %v2522_v17, 5 }
0x11ff   :  { %v2531_v14 = vrot.slane %v2522_v17, 6  ;;  %v2532_v32 = vrot.slane %v2522_v17, 7  ;;  %v2533_v60 = vrot.slane %v2522_v17, 1 }
0x1200   :  { %v2542_v43 = vadd.f32 %v2527_v19, %v4363_v23  ;;  %v2543_v45 = vadd.f32 %v2528_v27, %v4367_v30  ;;  %v2544_v28 = vadd.f32 %v2529_v40, %v4372_v33  ;;  %v2545_v16 = vadd.f32 %v2530_v10, %v4365_v29 }
0x1201   :  { %v2546_v62 = vadd.f32 %v2531_v14, %v4382_v41  ;;  %v2547_v19 = vadd.f32 %v2532_v32, %v4379_v39  ;;  %v2549_v0 = vadd.f32 %v2533_v60, %v4385_v46  ;;  %v2548_v27 = vadd.f32 %v2522_v17, %v4389_v50 }
0x1202   :  { %3954 = vtanh.f32 %v2542_v43  ;;  %v3333_v60 = vmul.f32 -1.442695, %v2542_v43  ;;  %v3335_v12 = vmul.f32 -1.442695, %v2544_v28 }
0x1203   :  { %3956 = vtanh.f32 %v2543_v45  ;;  %v3338_v1 = vmul.f32 -1.442695, %v2547_v19  ;;  %v3340_v34 = vmul.f32 -1.442695, %v2549_v0 }
0x1204   :  { %3958 = vtanh.f32 %v2544_v28 }
0x1205   :  { %3960 = vtanh.f32 %v2545_v16 }
0x1206   :  { %3962 = vtanh.f32 %v2546_v62 }
0x1207   :  { %3964 = vtanh.f32 %v2547_v19 }
0x1208   :  { %3966 = vtanh.f32 %v2549_v0 }
0x1209   :  { %3968 = vtanh.f32 %v2548_v27 }
0x120a   :  { %3970 = vpow2.f32 %v3333_v60 }
0x120c   :  { %v3955_v44 = vpop.eup %3954 }
0x120d   :  { %2646 = vrot.lane.b32.xlu0 %v3955_v44, %s4230_s3  ;;  %v3957_v40 = vpop.eup %3956 }
0x120e   :  { %v3959_v10 = vpop.eup %3958  ;;  %2648 = vrot.lane.b32.xlu1 %v3957_v40, %s4230_s3  ;;  %v3334_v40 = vmul.f32 -1.442695, %v2543_v45 }
0x120f   :  { %v3961_v14 = vpop.eup %3960 }
0x1210   :  { %v3963_v26 = vpop.eup %3962  ;;  %3972 = vpow2.f32 %v3334_v40 }
0x1211   :  { %2650 = vrot.lane.b32.xlu0 %v3959_v10, %s4230_s3  ;;  %v3965_v32 = vpop.eup %3964  ;;  %v3336_v10 = vmul.f32 -1.442695, %v2545_v16  ;;  %3974 = vpow2.f32 %v3335_v12 }
0x1212   :  { %2652 = vrot.lane.b32.xlu1 %v3961_v14, %s4230_s3  ;;  %v3967_v44 = vpop.eup %3966  ;;  %v3337_v14 = vmul.f32 -1.442695, %v2546_v62 }
0x1213   :  { %v3969_v17 = vpop.eup %3968  ;;  %3976 = vpow2.f32 %v3336_v10 }
0x1214   :  { %v3971_v35 = vpop.eup %3970  ;;  %3978 = vpow2.f32 %v3337_v14 }
0x1215   :  { %2654 = vrot.lane.b32.xlu0 %v3963_v26, %s4230_s3  ;;  %v2574_v26 = vadd.f32 1.0, %v3971_v35  ;;  %3980 = vpow2.f32 %v3338_v1 }
0x1216   :  { %2656 = vrot.lane.b32.xlu1 %v3965_v32, %s4230_s3  ;;  %v3339_v32 = vmul.f32 -1.442695, %v2548_v27 }
0x1217   :  { %3982 = vrcp.f32 %v2574_v26 }
0x1218   :  { %3984 = vpow2.f32 %v3340_v34 }
0x1219   :  { %2660 = vrot.lane.b32.xlu0 %v3967_v44, %s4230_s3  ;;  %3986 = vpow2.f32 %v3339_v32 }
0x121a   :  { %2658 = vrot.lane.b32.xlu1 %v3969_v17, %s4230_s3  ;;  %v3973_v44 = vpop.eup %3972 }
0x121b   :  { %v3975_v17 = vpop.eup %3974  ;;  %v2575_v43 = vadd.f32 1.0, %v3973_v44 }
0x121c   :  { %v2576_v28 = vadd.f32 1.0, %v3975_v17 }
0x121d   :  { %v3977_v45 = vpop.eup %3976  ;;  %3988 = vrcp.f32 %v2575_v43 }
0x121e   :  { %v3979_v60 = vpop.eup %3978  ;;  %v2577_v12 = vadd.f32 1.0, %v3977_v45  ;;  %3990 = vrcp.f32 %v2576_v28 }
0x121f   :  { %v3981_v16 = vpop.eup %3980  ;;  %v2578_v35 = vadd.f32 1.0, %v3979_v60 }
0x1220   :  { %3992 = vrcp.f32 %v2577_v12  ;;  %v2579_v34 = vadd.f32 1.0, %v3981_v16 }
0x1221   :  { %v5253_v62 = vpop.eup %3982  ;;  %3994 = vrcp.f32 %v2578_v35 }
0x1222   :  { %v3985_v0 = vpop.eup %3984  ;;  %3996 = vrcp.f32 %v2579_v34 }
0x1223   :  { %v3987_v27 = vpop.eup %3986  ;;  %v2581_v40 = vadd.f32 1.0, %v3985_v0 }
0x1224   :  { %v2580_v10 = vadd.f32 1.0, %v3987_v27 }
0x1225   :  { %3998 = vrcp.f32 %v2581_v40 }
0x1226   :  { %4000 = vrcp.f32 %v2580_v10 }
0x1227   :  { %v5257_v14 = vpop.eup %3988 }
0x1228   :  { %v5259_v32 = vpop.eup %3990 }
0x122a   :  { %v5264_v45 = vpop.eup %3992 }
0x122b   :  { %v5267_v60 = vpop.eup %3994 }
0x122c   :  { %v5272_v35 = vpop.eup %3996 }
0x127f   :  { %v2647_v19 = vpop.permute.xlu0 %2646 }
0x1280   :  { %v2670_v1 = vmul.f32 %v5253_v62, %v2647_v19  ;;  %v2649_v26 = vpop.permute.xlu1 %2648 }
0x1281   :  { %v2671_v44 = vmul.f32 %v5257_v14, %v2649_v26 }
0x1282   :  { %2686 = vrot.lane.b32.xlu0 %v2670_v1, %s4231_s12  ;;  %v5275_v1 = vpop.eup %3998 }
0x1283   :  { %v2651_v17 = vpop.permute.xlu0 %2650  ;;  %2688 = vrot.lane.b32.xlu1 %v2671_v44, %s4231_s12  ;;  %v5280_v10 = vpop.eup %4000 }
0x1284   :  { %v2672_v43 = vmul.f32 %v5259_v32, %v2651_v17  ;;  %v2653_v28 = vpop.permute.xlu1 %2652  ;;  %v2614_v17 = vrot.slane %v5150_v5, 7 }
0x1285   :  { %v2673_v16 = vmul.f32 %v5264_v45, %v2653_v28 }
0x1286   :  { %2690 = vrot.lane.b32.xlu0 %v2672_v43, %s4231_s12  ;;  %v2630_v43 = vmul.f32 %v5253_v62, %v2614_v17 }
0x1287   :  { %v2655_v12 = vpop.permute.xlu0 %2654  ;;  %2692 = vrot.lane.b32.xlu1 %v2673_v16, %s4231_s12 }
0x1288   :  { %v2674_v19 = vmul.f32 %v5267_v60, %v2655_v12  ;;  %v2657_v0 = vpop.permute.xlu1 %2656  ;;  %v2615_v12 = vrot.slane %v5158_v55, 7 }
0x1289   :  { %v2675_v34 = vmul.f32 %v5272_v35, %v2657_v0 }
0x128a   :  { %2694 = vrot.lane.b32.xlu0 %v2674_v19, %s4231_s12  ;;  %v2616_v19 = vrot.slane %v5161_v37, 7  ;;  %v2631_v0 = vmul.f32 %v5257_v14, %v2615_v12  ;;  %v2619_v12 = vrot.slane %v5181_v63, 7  ;;  %v2620_v63 = vrot.slane %v5179_v47, 7 }
0x128b   :  { %v2661_v27 = vpop.permute.xlu0 %2660  ;;  %2696 = vrot.lane.b32.xlu1 %v2675_v34, %s4231_s12 }
0x128c   :  { %v2677_v40 = vmul.f32 %v5275_v1, %v2661_v27  ;;  %v2659_v26 = vpop.permute.xlu1 %2658  ;;  %v2632_v27 = vmul.f32 %v5259_v32, %v2616_v19 }
0x128d   :  { %v2676_v44 = vmul.f32 %v5280_v10, %v2659_v26 }
0x128e   :  { %2700 = vrot.lane.b32.xlu0 %v2677_v40, %s4231_s12  ;;  %v2617_v40 = vrot.slane %v5168_v61, 7 }
0x128f   :  { %2698 = vrot.lane.b32.xlu1 %v2676_v44, %s4231_s12  ;;  %v2618_v44 = vrot.slane %v5172_v4, 7  ;;  %v2621_v4 = vrot.slane %v5186_v8, 7  ;;  %v2636_v8 = vmul.f32 %v5280_v10, %v2620_v63 }
0x1290   :  { %v2633_v55 = vmul.f32 %v5264_v45, %v2617_v40 }
0x1291   :  { %v2637_v40 = vmul.f32 %v5275_v1, %v2621_v4 }
0x12f4   :  { %v2687_v28 = vpop.permute.xlu0 %2686 }
0x12f5   :  { %v5287_v16 = vadd.f32 %v2687_v28, %v2630_v43  ;;  %v2689_v34 = vpop.permute.xlu1 %2688  ;;  %v2634_v28 = vmul.f32 %v5267_v60, %v2618_v44 }
0x12f6   :  { %v5295_v26 = vadd.f32 %v2689_v34, %v2631_v0  ;;  %v2635_v34 = vmul.f32 %v5272_v35, %v2619_v12 }
0x12f7   :  { %4002 = vtanh.f32 %v5287_v16 }
0x12f8   :  { %v2691_v5 = vpop.permute.xlu0 %2690  ;;  %4004 = vtanh.f32 %v5295_v26 }
0x12f9   :  { %v5298_v17 = vadd.f32 %v2691_v5, %v2632_v27  ;;  %v2693_v37 = vpop.permute.xlu1 %2692 }
0x12fa   :  { %v5305_v61 = vadd.f32 %v2693_v37, %v2633_v55 }
0x12fb   :  { %4006 = vtanh.f32 %v5298_v17 }
0x12fc   :  { %v2695_v19 = vpop.permute.xlu0 %2694  ;;  %4008 = vtanh.f32 %v5305_v61 }
0x12fd   :  { %v5309_v0 = vadd.f32 %v2695_v19, %v2634_v28  ;;  %v2697_v27 = vpop.permute.xlu1 %2696 }
0x12fe   :  { %v5316_v5 = vadd.f32 %v2697_v27, %v2635_v34 }
0x12ff   :  { %4010 = vtanh.f32 %v5309_v0 }
0x1300   :  { %v2701_v44 = vpop.permute.xlu0 %2700  ;;  %4012 = vtanh.f32 %v5316_v5 }
0x1301   :  { %v4003_v43 = vpop.eup %4002  ;;  %v5318_v55 = vadd.f32 %v2701_v44, %v2637_v40 }
0x1302   :  { %2734 = vrot.lane.b32.xlu0 %v4003_v43, %s4230_s3  ;;  %v2699_v43 = vpop.permute.xlu1 %2698  ;;  %v4005_v37 = vpop.eup %4004 }
0x1303   :  { %4014 = vtanh.f32 %v5318_v55  ;;  %v5323_v28 = vadd.f32 %v2699_v43, %v2636_v8  ;;  %2736 = vrot.lane.b32.xlu1 %v4005_v37, %s4230_s3 }
0x1305   :  { %v4007_v12 = vpop.eup %4006  ;;  %4016 = vtanh.f32 %v5323_v28 }
0x1306   :  { %2738 = vrot.lane.b32.xlu0 %v4007_v12, %s4230_s3  ;;  %v4009_v47 = vpop.eup %4008 }
0x1307   :  { %2740 = vrot.lane.b32.xlu1 %v4009_v47, %s4230_s3 }
0x1309   :  { %v4011_v19 = vpop.eup %4010 }
0x130a   :  { %2742 = vrot.lane.b32.xlu0 %v4011_v19, %s4230_s3  ;;  %v4013_v4 = vpop.eup %4012 }
0x130b   :  { %2744 = vrot.lane.b32.xlu1 %v4013_v4, %s4230_s3 }
0x130d   :  { %v4015_v34 = vpop.eup %4014 }
0x130e   :  { %2748 = vrot.lane.b32.xlu0 %v4015_v34, %s4230_s3 }
0x130f   :  { %v4017_v27 = vpop.eup %4016 }
0x1310   :  { %2746 = vrot.lane.b32.xlu1 %v4017_v27, %s4230_s3 }
0x1374   :  { %v2735_v40 = vpop.permute.xlu0 %2734 }
0x1375   :  { %v5334_v63 = vmul.f32 %v5253_v62, %v2735_v40  ;;  %v2737_v44 = vpop.permute.xlu1 %2736 }
0x1376   :  { %v5337_v8 = vmul.f32 %v5257_v14, %v2737_v44 }
0x1377   :  { %v2807_v43 = vrot.slane %v5334_v63, 6 }
0x1378   :  { %5770 = vst [vmem:[#allocation36_spill] sm:$0xff] %v5337_v8  ;;  %v2739_v37 = vpop.permute.xlu0 %2738  ;;  %v2808_v47 = vrot.slane %v5337_v8, 5 }
0x1379   :  { %v5341_v12 = vmul.f32 %v5259_v32, %v2739_v37  ;;  %v2741_v19 = vpop.permute.xlu1 %2740 }
0x137a   :  { %v2809_v34 = vsel %vm587_vm3, %v2808_v47, %v2807_v43  ;;  %v5347_v62 = vmul.f32 %v5264_v45, %v2741_v19 }
0x137b   :  { %5771 = vst [vmem:[#allocation37_spill] sm:$0xff] %v5341_v12  ;;  %v2810_v4 = vrot.slane %v5341_v12, 4 }
0x137c   :  { %v2743_v27 = vpop.permute.xlu0 %2742  ;;  %v2812_v44 = vrot.slane %v5347_v62, 3 }
0x137d   :  { %v2811_v14 = vsel %vm590_vm4, %v2810_v4, %v2809_v34  ;;  %v5351_v40 = vmul.f32 %v5267_v60, %v2743_v27  ;;  %v2745_v32 = vpop.permute.xlu1 %2744 }
0x137e   :  { %v5356_v8 = vmul.f32 %v5272_v35, %v2745_v32  ;;  %v2813_v12 = vsel %vm593_vm5, %v2812_v44, %v2811_v14 }
0x137f   :  { %v2814_v37 = vrot.slane %v5351_v40, 2 }
0x1380   :  { %v2749_v43 = vpop.permute.xlu0 %2748  ;;  %v2816_v19 = vrot.slane %v5356_v8, 1 }
0x1381   :  { %v2815_v45 = vsel %vm596_vm6, %v2814_v37, %v2813_v12  ;;  %v5361_v47 = vmul.f32 %v5275_v1, %v2749_v43 }
0x1382   :  { %v2747_v60 = vpop.permute.xlu1 %2746  ;;  %v2817_v27 = vsel %vm599_vm7, %v2816_v19, %v2815_v45 }
0x1383   :  { %v2819_v4 = vrot.slane %v5361_v47, 7  ;;  %v5366_v34 = vmul.f32 %v5280_v10, %v2747_v60 }
0x1385   :  { %v2818_v35 = vsel %vm602_vm8, %v5366_v34, %v2817_v27 }
0x1386   :  { %v2820_v14 = vsel %vm605_vm9, %v2819_v4, %v2818_v35 }
0x1387   :  { %2821 = vrot.lane.b32.xlu0 %v2820_v14, %s4231_s12 }
0x13f9   :  { %v2822_v12 = vpop.permute.xlu0 %2821 }
0x13fa   :  { %3502 = vmatmul.mubr.msk.f32.vlgmr.msra.gmra.mrb[8].mxu1 %vm67_vm1, %v2822_v12  ;;  %vm3167_vm1 = vcmask 261127  }
0x14cd   :  { %v2891_v1 = vpop.f32.mrb[8].mxu1 }
0x14ce   :  { %v3503_v44 = vpop.f32.mrb[9].mxu1  ;;  %v2897_v32 = vrot.slane %v2891_v1, 2  ;;  %v2898_v37 = vrot.slane %v2891_v1, 3  ;;  %v2899_v43 = vrot.slane %v2891_v1, 4  ;;  %v2900_v60 = vrot.slane %v2891_v1, 5 }
0x14cf   :  { %v2901_v19 = vrot.slane %v2891_v1, 6  ;;  %v2902_v4 = vrot.slane %v2891_v1, 7  ;;  %v2896_v12 = vrot.slane %v2891_v1, 1 }
0x14d0   :  { %v2912_v10 = vadd.f32 %v2897_v32, %v4367_v30  ;;  %v2913_v45 = vadd.f32 %v2898_v37, %v4372_v33  ;;  %v2914_v27 = vadd.f32 %v2899_v43, %v4365_v29  ;;  %v2915_v35 = vadd.f32 %v2900_v60, %v4382_v41 }
0x14d1   :  { %v2916_v14 = vadd.f32 %v2901_v19, %v4379_v39  ;;  %v2917_v44 = vadd.f32 %v2902_v4, %v4389_v50  ;;  %v2918_v30 = vadd.f32 %v2891_v1, %v4385_v46  ;;  %v2911_v33 = vadd.f32 %v2896_v12, %v4363_v23 }
0x14d2   :  { %4018 = vtanh.f32 %v2912_v10  ;;  %v3344_v37 = vmul.f32 -1.442695, %v2913_v45  ;;  %v3346_v43 = vmul.f32 -1.442695, %v2915_v35 }
0x14d3   :  { %4020 = vtanh.f32 %v2913_v45  ;;  %v3348_v60 = vmul.f32 -1.442695, %v2917_v44  ;;  %v3342_v4 = vmul.f32 -1.442695, %v2911_v33 }
0x14d4   :  { %4022 = vtanh.f32 %v2914_v27 }
0x14d5   :  { %4024 = vtanh.f32 %v2915_v35 }
0x14d6   :  { %4026 = vtanh.f32 %v2916_v14 }
0x14d7   :  { %4028 = vtanh.f32 %v2917_v44 }
0x14d8   :  { %4030 = vtanh.f32 %v2918_v30 }
0x14d9   :  { %4032 = vtanh.f32 %v2911_v33 }
0x14da   :  { %4034 = vpow2.f32 %v3344_v37 }
0x14db   :  { %4036 = vpow2.f32 %v3346_v43 }
0x14dc   :  { %v4019_v32 = vpop.eup %4018 }
0x14dd   :  { %v4021_v29 = vpop.eup %4020  ;;  %3017 = vrot.lane.b32.xlu1 %v4019_v32, %s4230_s3 }
0x14de   :  { %3019 = vrot.lane.b32.xlu0 %v4021_v29, %s4230_s3  ;;  %v4023_v39 = vpop.eup %4022 }
0x14df   :  { %v4025_v41 = vpop.eup %4024 }
0x14e0   :  { %v4027_v50 = vpop.eup %4026 }
0x14e1   :  { %3021 = vrot.lane.b32.xlu1 %v4023_v39, %s4230_s3  ;;  %v4029_v46 = vpop.eup %4028 }
0x14e2   :  { %3023 = vrot.lane.b32.xlu0 %v4025_v41, %s4230_s3  ;;  %v4031_v23 = vpop.eup %4030 }
0x14e3   :  { %v4033_v1 = vpop.eup %4032 }
0x14e4   :  { %v4035_v19 = vpop.eup %4034 }
0x14e5   :  { %3025 = vrot.lane.b32.xlu1 %v4027_v50, %s4230_s3  ;;  %v4037_v12 = vpop.eup %4036 }
0x14e6   :  { %3027 = vrot.lane.b32.xlu0 %v4029_v46, %s4230_s3 }
0x14e9   :  { %3029 = vrot.lane.b32.xlu1 %v4031_v23, %s4230_s3 }
0x14ea   :  { %3015 = vrot.lane.b32.xlu0 %v4033_v1, %s4230_s3 }
0x14ed   :  { %553 = vrot.lane.b32.xlu1 %v4491_v7, %s4231_s12  ;;  %v3349_v7 = vmul.f32 -1.442695, %v2918_v30 }
0x14ee   :  { %555 = vrot.lane.b32.xlu0 %v4484_v3, %s4231_s12  ;;  %v3343_v3 = vmul.f32 -1.442695, %v2912_v10 }
0x14ef   :  { %4038 = vpow2.f32 %v3349_v7 }
0x14f0   :  { %4040 = vpow2.f32 %v3348_v60 }
0x14f1   :  { %557 = vrot.lane.b32.xlu1 %v4488_v6, %s4231_s12  ;;  %v2945_v6 = vadd.f32 1.0, %v4035_v19  ;;  %4042 = vpow2.f32 %v3343_v3 }
0x14f2   :  { %559 = vrot.lane.b32.xlu0 %v4494_v9, %s4231_s12  ;;  %v3345_v9 = vmul.f32 -1.442695, %v2914_v27  ;;  %4044 = vpow2.f32 %v3342_v4 }
0x14f3   :  { %4046 = vrcp.f32 %v2945_v6 }
0x14f4   :  { %4048 = vpow2.f32 %v3345_v9 }
0x14f5   :  { %561 = vrot.lane.b32.xlu1 %v4504_v36, %s4231_s12  ;;  %v2947_v36 = vadd.f32 1.0, %v4037_v12 }
0x14f6   :  { %563 = vrot.lane.b32.xlu0 %v4500_v13, %s4231_s12  ;;  %v3347_v13 = vmul.f32 -1.442695, %v2916_v14 }
0x14f7   :  { %4050 = vrcp.f32 %v2947_v36 }
0x14f8   :  { %4052 = vpow2.f32 %v3347_v13 }
0x14f9   :  { %v4039_v45 = vpop.eup %4038 }
0x14fa   :  { %v4041_v35 = vpop.eup %4040  ;;  %v2950_v30 = vadd.f32 1.0, %v4039_v45 }
0x14fb   :  { %v4043_v44 = vpop.eup %4042  ;;  %v2949_v32 = vadd.f32 1.0, %v4041_v35 }
0x14fc   :  { %v4045_v10 = vpop.eup %4044  ;;  %v2944_v27 = vadd.f32 1.0, %v4043_v44  ;;  %4054 = vrcp.f32 %v2950_v30 }
0x14fd   :  { %v5402_v33 = vpop.eup %4046  ;;  %4056 = vrcp.f32 %v2949_v32  ;;  %v2943_v46 = vadd.f32 1.0, %v4045_v10 }
0x14fe   :  { %v4049_v50 = vpop.eup %4048  ;;  %4058 = vrcp.f32 %v2944_v27 }
0x14ff   :  { %v2946_v43 = vadd.f32 1.0, %v4049_v50  ;;  %4060 = vrcp.f32 %v2943_v46 }
0x1501   :  { %v5406_v23 = vpop.eup %4050  ;;  %4062 = vrcp.f32 %v2946_v43 }
0x1502   :  { %v4053_v7 = vpop.eup %4052 }
0x1503   :  { %v2948_v3 = vadd.f32 1.0, %v4053_v7  ;;  %v2989_v7 = vrot.slane %v5323_v28, 7  ;;  %v2986_v28 = vrot.slane %v5305_v61, 7 }
0x1505   :  { %4064 = vrcp.f32 %v2948_v3 }
0x1506   :  { %v5410_v4 = vpop.eup %4054 }
0x1507   :  { %v5414_v12 = vpop.eup %4056 }
0x1508   :  { %v5419_v45 = vpop.eup %4058 }
0x1509   :  { %v5422_v30 = vpop.eup %4060 }
0x150b   :  { %v5429_v10 = vpop.eup %4062 }
0x154f   :  { %v3018_v29 = vpop.permute.xlu1 %3017 }
0x1550   :  { %v3020_v39 = vpop.permute.xlu0 %3019 }
0x1551   :  { %v3041_v41 = vmul.f32 %v5402_v33, %v3020_v39 }
0x1553   :  { %3059 = vrot.lane.b32.xlu0 %v3041_v41, %s4231_s12  ;;  %v3022_v14 = vpop.permute.xlu1 %3021 }
0x1554   :  { %v3024_v1 = vpop.permute.xlu0 %3023  ;;  %v3042_v41 = vmul.f32 %v5429_v10, %v3022_v14 }
0x1555   :  { %v3043_v37 = vmul.f32 %v5406_v23, %v3024_v1 }
0x1557   :  { %3063 = vrot.lane.b32.xlu0 %v3043_v37, %s4231_s12  ;;  %v3026_v60 = vpop.permute.xlu1 %3025  ;;  %v2990_v37 = vrot.slane %v5318_v55, 7 }
0x1558   :  { %v3028_v19 = vpop.permute.xlu0 %3027 }
0x1559   :  { %v3045_v13 = vmul.f32 %v5414_v12, %v3028_v19 }
0x155b   :  { %567 = vrot.lane.b32.xlu0 %v4512_v24, %s4231_s12  ;;  %v3030_v6 = vpop.permute.xlu1 %3029  ;;  %v3040_v24 = vmul.f32 %v5419_v45, %v3018_v29  ;;  %v5436_v29 = vpop.eup %4064 }
0x155c   :  { %v3046_v9 = vmul.f32 %v5410_v4, %v3030_v6  ;;  %v3016_v36 = vpop.permute.xlu0 %3015  ;;  %v3044_v46 = vmul.f32 %v5436_v29, %v3026_v60  ;;  %v3005_v60 = vmul.f32 %v5414_v12, %v2989_v7 }
0x155d   :  { %v3039_v32 = vmul.f32 %v5422_v30, %v3016_v36 }
0x155e   :  { %3069 = vrot.lane.b32.xlu1 %v3046_v9, %s4231_s12  ;;  %v2983_v9 = vrot.slane %v5287_v16, 7 }
0x155f   :  { %3067 = vrot.lane.b32.xlu0 %v3045_v13, %s4231_s12  ;;  %v554_v35 = vpop.permute.xlu1 %553 }
0x1560   :  { %578 = vst.msk [vmem:[#allocation8] sm:$0x1] %vm577_vm10, %v554_v35  ;;  %v556_v44 = vpop.permute.xlu0 %555  ;;  %v2999_v35 = vmul.f32 %v5422_v30, %v2983_v9 }
0x1561   :  { %579 = vst.msk [vmem:[#allocation8 + $0x8] sm:$0x1] %vm577_vm10, %v556_v44 }
0x1562   :  { %3057 = vrot.lane.b32.xlu1 %v3040_v24, %s4231_s12 }
0x1563   :  { %3055 = vrot.lane.b32.xlu0 %v3039_v32, %s4231_s12  ;;  %v558_v39 = vpop.permute.xlu1 %557 }
0x1564   :  { %580 = vst.msk [vmem:[#allocation8 + $0x10] sm:$0x1] %vm577_vm10, %v558_v39  ;;  %v560_v27 = vpop.permute.xlu0 %559  ;;  %v3002_v39 = vmul.f32 %v5429_v10, %v2986_v28 }
0x1565   :  { %581 = vst.msk [vmem:[#allocation8 + $0x18] sm:$0x1] %vm577_vm10, %v560_v27  ;;  %v2988_v27 = vrot.slane %v5316_v5, 7 }
0x1566   :  { %3061 = vrot.lane.b32.xlu1 %v3042_v41, %s4231_s12 }
0x1567   :  { %931 = vrot.lane.b32.xlu0 %v4636_v59, %s4231_s12  ;;  %v562_v50 = vpop.permute.xlu1 %561  ;;  %v5776_v59 = vld [vmem:[#allocation18_spill] sm:$0xff] }
0x1568   :  { %582 = vst.msk [vmem:[#allocation8 + $0x20] sm:$0x1] %vm577_vm10, %v562_v50  ;;  %v564_v1 = vpop.permute.xlu0 %563 }
0x1569   :  { %583 = vst.msk [vmem:[#allocation8 + $0x28] sm:$0x1] %vm577_vm10, %v564_v1 }
0x156a   :  { %3065 = vrot.lane.b32.xlu1 %v3044_v46, %s4231_s12 }
0x156b   :  { %935 = vrot.lane.b32.xlu0 %v4633_v57, %s4231_s12  ;;  %v5775_v57 = vld [vmem:[#allocation19_spill] sm:$0xff] }
0x156e   :  { %565 = vrot.lane.b32.xlu1 %v4515_v25, %s4231_s12  ;;  %v5772_v25 = vld [vmem:[#allocation16_spill] sm:$0xff] }
0x156f   :  { %939 = vrot.lane.b32.xlu0 %v4648_v52, %s4231_s12  ;;  %v5778_v52 = vld [vmem:[#allocation21_spill] sm:$0xff] }
0x1572   :  { %929 = vrot.lane.b32.xlu1 %v4630_v22, %s4231_s12  ;;  %v5774_v22 = vld [vmem:[#allocation17_spill] sm:$0xff] }
0x1573   :  { %943 = vrot.lane.b32.xlu0 %v4658_v58, %s4231_s12  ;;  %v5780_v58 = vld [vmem:[#allocation24_spill] sm:$0xff] }
0x1576   :  { %933 = vrot.lane.b32.xlu1 %v4627_v54, %s4231_s12  ;;  %v5773_v54 = vld [vmem:[#allocation23_spill] sm:$0xff] }
0x1577   :  { %1300 = vrot.lane.b32.xlu0 %v4776_v31, %s4231_s12 }
0x157a   :  { %937 = vrot.lane.b32.xlu1 %v4644_v11, %s4231_s12  ;;  %v5777_v11 = vld [vmem:[#allocation22_spill] sm:$0xff] }
0x157b   :  { %1304 = vrot.lane.b32.xlu0 %v4773_v42, %s4231_s12 }
0x157e   :  { %941 = vrot.lane.b32.xlu1 %v4655_v53, %s4231_s12  ;;  %v5779_v53 = vld [vmem:[#allocation20_spill] sm:$0xff] }
0x157f   :  { %1308 = vrot.lane.b32.xlu0 %v4790_v38, %s4231_s12 }
0x1582   :  { %1298 = vrot.lane.b32.xlu1 %v4770_v49, %s4231_s12  ;;  %v2985_v49 = vrot.slane %v5298_v17, 7 }
0x1583   :  { %1312 = vrot.lane.b32.xlu0 %v4802_v56, %s4231_s12 }
0x1584   :  { %v3001_v42 = vmul.f32 %v5402_v33, %v2985_v49 }
0x1586   :  { %1302 = vrot.lane.b32.xlu1 %v4785_v21, %s4231_s12  ;;  %v2987_v21 = vrot.slane %v5309_v0, 7  ;;  %v2984_v0 = vrot.slane %v5295_v26, 7 }
0x1587   :  { %1669 = vrot.lane.b32.xlu0 %v4916_v2, %s4231_s12 }
0x1588   :  { %v3003_v56 = vmul.f32 %v5406_v23, %v2987_v21  ;;  %v3000_v55 = vmul.f32 %v5419_v45, %v2984_v0 }
0x158a   :  { %1306 = vrot.lane.b32.xlu1 %v5772_v25, %s4231_s12 }
0x158b   :  { %1673 = vrot.lane.b32.xlu0 %v5773_v54, %s4231_s12  ;;  %v5781_v54 = vld [vmem:[#allocation25_spill] sm:$0xff] }
0x158e   :  { %1310 = vrot.lane.b32.xlu1 %v5774_v22, %s4231_s12  ;;  %v3004_v22 = vmul.f32 %v5436_v29, %v2988_v27 }
0x158f   :  { %1677 = vrot.lane.b32.xlu0 %v5775_v57, %s4231_s12 }
0x1592   :  { %1667 = vrot.lane.b32.xlu1 %v5776_v59, %s4231_s12 }
0x1593   :  { %1681 = vrot.lane.b32.xlu0 %v5777_v11, %s4231_s12 }
0x1596   :  { %1671 = vrot.lane.b32.xlu1 %v5778_v52, %s4231_s12 }
0x159a   :  { %1675 = vrot.lane.b32.xlu1 %v5779_v53, %s4231_s12 }
0x159e   :  { %1679 = vrot.lane.b32.xlu1 %v5780_v58, %s4231_s12 }
0x15a2   :  { %2036 = vrot.lane.b32.xlu1 %v5058_v48, %s4231_s12  ;;  %v3006_v48 = vmul.f32 %v5410_v4, %v2990_v37 }
0x15c5   :  { %v3060_v31 = vpop.permute.xlu0 %3059 }
0x15c6   :  { %v3081_v38 = vadd.f32 %v3060_v31, %v3001_v42 }
0x15c8   :  { %4066 = vtanh.f32 %v3081_v38  ;;  %v3204_v16 = vrot.slane %v3081_v38, 6 }
0x15c9   :  { %v3064_v2 = vpop.permute.xlu0 %3063 }
0x15ca   :  { %v3083_v14 = vadd.f32 %v3064_v2, %v3003_v56 }
0x15cc   :  { %4068 = vtanh.f32 %v3083_v14  ;;  %v3208_v57 = vrot.slane %v3083_v14, 4 }
0x15cd   :  { %v568_v43 = vpop.permute.xlu0 %567 }
0x15ce   :  { %585 = vst.msk [vmem:[#allocation8 + $0x38] sm:$0x1] %vm577_vm10, %v568_v43 }
0x15d0   :  { %v3070_v17 = vpop.permute.xlu1 %3069 }
0x15d1   :  { %v3086_v19 = vadd.f32 %v3070_v17, %v3006_v48  ;;  %v3068_v3 = vpop.permute.xlu0 %3067 }
0x15d2   :  { %v4067_v6 = vpop.eup %4066  ;;  %v3085_v36 = vadd.f32 %v3068_v3, %v3005_v60 }
0x15d3   :  { %4070 = vtanh.f32 %v3086_v19  ;;  %3107 = vrot.lane.b32.xlu1 %v4067_v6, %s4230_s3  ;;  %v3214_v56 = vrot.slane %v3086_v19, 1 }
0x15d4   :  { %4072 = vtanh.f32 %v3085_v36  ;;  %v3058_v13 = vpop.permute.xlu1 %3057  ;;  %v3212_v31 = vrot.slane %v3085_v36, 2 }
0x15d5   :  { %v3080_v24 = vadd.f32 %v3058_v13, %v3000_v55  ;;  %v3056_v44 = vpop.permute.xlu0 %3055 }
0x15d6   :  { %v4069_v26 = vpop.eup %4068  ;;  %v5509_v32 = vadd.f32 %v3056_v44, %v2999_v35  ;;  %v5785_v35 = vld [vmem:[#allocation32_spill] sm:$0xff] }
0x15d7   :  { %4074 = vtanh.f32 %v3080_v24  ;;  %v3203_v41 = vrot.slane %v3080_v24, 7  ;;  %3111 = vrot.lane.b32.xlu1 %v4069_v26, %s4230_s3  ;;  %v5786_v44 = vld [vmem:[#allocation28_spill] sm:$0xff]  ;;  %v5787_v26 = vld [vmem:[#allocation33_spill] sm:$0xff] }
0x15d8   :  { %4076 = vtanh.f32 %v5509_v32  ;;  %v3062_v61 = vpop.permute.xlu1 %3061 }
0x15d9   :  { %v3205_v50 = vsel %vm587_vm3, %v3204_v16, %v3203_v41  ;;  %v3082_v46 = vadd.f32 %v3062_v61, %v3002_v39  ;;  %v932_v1 = vpop.permute.xlu0 %931  ;;  %v5788_v41 = vld [vmem:[#allocation29_spill] sm:$0xff] }
0x15da   :  { %955 = vst.msk [vmem:[#allocation8 + $0x8] sm:$0x2] %vm953_vm11, %v932_v1 }
0x15db   :  { %4078 = vtanh.f32 %v3082_v46  ;;  %v3206_v25 = vrot.slane %v3082_v46, 5  ;;  %2040 = vrot.lane.b32.xlu1 %v5781_v54, %s4231_s12  ;;  %v5790_v46 = vld [vmem:[#allocation37_spill] sm:$0xff] }
0x15dc   :  { %v3066_v59 = vpop.permute.xlu1 %3065 }
0x15dd   :  { %v4071_v11 = vpop.eup %4070  ;;  %v3207_v52 = vsel %vm590_vm4, %v3206_v25, %v3205_v50  ;;  %v3084_v53 = vadd.f32 %v3066_v59, %v3004_v22  ;;  %v936_v5 = vpop.permute.xlu0 %935  ;;  %v5789_v50 = vld [vmem:[#allocation31_spill] sm:$0xff]  ;;  %v5793_v59 = vld [vmem:[#allocation36_spill] sm:$0xff] }
0x15de   :  { %v4073_v58 = vpop.eup %4072  ;;  %v3209_v49 = vsel %vm593_vm5, %v3208_v57, %v3207_v52  ;;  %957 = vst.msk [vmem:[#allocation8 + $0x18] sm:$0x2] %vm953_vm11, %v936_v5  ;;  %3117 = vrot.lane.b32.xlu0 %v4071_v11, %s4230_s3  ;;  %v5792_v22 = vld [vmem:[#allocation35_spill] sm:$0xff] }
0x15df   :  { %4080 = vtanh.f32 %v3084_v53  ;;  %v3210_v42 = vrot.slane %v3084_v53, 3  ;;  %3115 = vrot.lane.b32.xlu1 %v4073_v58, %s4230_s3 }
0x15e0   :  { %v566_v21 = vpop.permute.xlu1 %565 }
0x15e1   :  { %v4075_v38 = vpop.eup %4074  ;;  %v3211_v2 = vsel %vm596_vm6, %v3210_v42, %v3209_v49  ;;  %584 = vst.msk [vmem:[#allocation8 + $0x30] sm:$0x1] %vm577_vm10, %v566_v21  ;;  %v940_v14 = vpop.permute.xlu0 %939 }
0x15e2   :  { %v4077_v37 = vpop.eup %4076  ;;  %959 = vst.msk [vmem:[#allocation8 + $0x28] sm:$0x2] %vm953_vm11, %v940_v14  ;;  %3105 = vrot.lane.b32.xlu0 %v4075_v38, %s4230_s3  ;;  %v3213_v43 = vsel %vm599_vm7, %v3212_v31, %v3211_v2 }
0x15e3   :  { %3103 = vrot.lane.b32.xlu1 %v4077_v37, %s4230_s3  ;;  %v5532_v7 = vsel %vm602_vm8, %v3214_v56, %v3213_v43 }
0x15e4   :  { %v930_v48 = vpop.permute.xlu1 %929 }
0x15e5   :  { %v4079_v17 = vpop.eup %4078  ;;  %954 = vst.msk [vmem:[#allocation8] sm:$0x2] %vm953_vm11, %v930_v48  ;;  %v944_v60 = vpop.permute.xlu0 %943 }
0x15e6   :  { %961 = vst.msk [vmem:[#allocation8 + $0x38] sm:$0x2] %vm953_vm11, %v944_v60  ;;  %3109 = vrot.lane.b32.xlu0 %v4079_v17, %s4230_s3 }
0x15e7   :  { %2044 = vrot.lane.b32.xlu1 %v5080_v18, %s4231_s12  ;;  %v5782_v18 = vld [vmem:[#allocation26_spill] sm:$0xff] }
0x15e8   :  { %v934_v0 = vpop.permute.xlu1 %933 }
0x15e9   :  { %v4081_v19 = vpop.eup %4080  ;;  %956 = vst.msk [vmem:[#allocation8 + $0x10] sm:$0x2] %vm953_vm11, %v934_v0  ;;  %v1301_v3 = vpop.permute.xlu0 %1300 }
0x15ea   :  { %1324 = vst.msk [vmem:[#allocation8 + $0x8] sm:$0x4] %vm1322_vm12, %v1301_v3  ;;  %3113 = vrot.lane.b32.xlu0 %v4081_v19, %s4230_s3 }
0x15eb   :  { %2048 = vrot.lane.b32.xlu1 %v5070_v20, %s4231_s12  ;;  %v5783_v20 = vld [vmem:[#allocation30_spill] sm:$0xff] }
0x15ec   :  { %v938_v6 = vpop.permute.xlu1 %937 }
0x15ed   :  { %958 = vst.msk [vmem:[#allocation8 + $0x20] sm:$0x2] %vm953_vm11, %v938_v6  ;;  %v1305_v9 = vpop.permute.xlu0 %1304 }
0x15ee   :  { %1326 = vst.msk [vmem:[#allocation8 + $0x18] sm:$0x4] %vm1322_vm12, %v1305_v9  ;;  %2038 = vrot.lane.b32.xlu0 %v5782_v18, %s4231_s12 }
0x15ef   :  { %2405 = vrot.lane.b32.xlu1 %v5197_v51, %s4231_s12  ;;  %v5784_v51 = vld [vmem:[#allocation27_spill] sm:$0xff] }
0x15f0   :  { %v942_v36 = vpop.permute.xlu1 %941 }
0x15f1   :  { %960 = vst.msk [vmem:[#allocation8 + $0x30] sm:$0x2] %vm953_vm11, %v942_v36  ;;  %v1309_v55 = vpop.permute.xlu0 %1308 }
0x15f2   :  { %1328 = vst.msk [vmem:[#allocation8 + $0x28] sm:$0x4] %vm1322_vm12, %v1309_v55  ;;  %2042 = vrot.lane.b32.xlu0 %v5074_v15, %s4231_s12 }
0x15f3   :  { %2409 = vrot.lane.b32.xlu1 %v5783_v20, %s4231_s12 }
0x15f4   :  { %v1299_v28 = vpop.permute.xlu1 %1298 }
0x15f5   :  { %1323 = vst.msk [vmem:[#allocation8] sm:$0x4] %vm1322_vm12, %v1299_v28  ;;  %v1313_v13 = vpop.permute.xlu0 %1312 }
0x15f6   :  { %1330 = vst.msk [vmem:[#allocation8 + $0x38] sm:$0x4] %vm1322_vm12, %v1313_v13  ;;  %2046 = vrot.lane.b32.xlu0 %v5784_v51, %s4231_s12 }
0x15f7   :  { %2413 = vrot.lane.b32.xlu1 %v5785_v35, %s4231_s12 }
0x15f8   :  { %v1303_v24 = vpop.permute.xlu1 %1302 }
0x15f9   :  { %1325 = vst.msk [vmem:[#allocation8 + $0x10] sm:$0x4] %vm1322_vm12, %v1303_v24  ;;  %v1670_v15 = vpop.permute.xlu0 %1669 }
0x15fa   :  { %1693 = vst.msk [vmem:[#allocation8 + $0x8] sm:$0x8] %vm1691_vm13, %v1670_v15  ;;  %2050 = vrot.lane.b32.xlu0 %v5786_v44, %s4231_s12 }
0x15fb   :  { %2417 = vrot.lane.b32.xlu1 %v5787_v26, %s4231_s12 }
0x15fc   :  { %v1307_v39 = vpop.permute.xlu1 %1306 }
0x15fd   :  { %1327 = vst.msk [vmem:[#allocation8 + $0x20] sm:$0x4] %vm1322_vm12, %v1307_v39  ;;  %v1674_v16 = vpop.permute.xlu0 %1673 }
0x15fe   :  { %1695 = vst.msk [vmem:[#allocation8 + $0x18] sm:$0x8] %vm1691_vm13, %v1674_v16  ;;  %2407 = vrot.lane.b32.xlu0 %v5788_v41, %s4231_s12 }
0x15ff   :  { %2774 = vrot.lane.b32.xlu1 %v5334_v63, %s4231_s12  ;;  %v5791_v63 = vld [vmem:[#allocation34_spill] sm:$0xff] }
0x1600   :  { %v1311_v61 = vpop.permute.xlu1 %1310 }
0x1601   :  { %1329 = vst.msk [vmem:[#allocation8 + $0x30] sm:$0x4] %vm1322_vm12, %v1311_v61  ;;  %v1678_v27 = vpop.permute.xlu0 %1677 }
0x1602   :  { %1697 = vst.msk [vmem:[#allocation8 + $0x28] sm:$0x8] %vm1691_vm13, %v1678_v27  ;;  %2411 = vrot.lane.b32.xlu0 %v5789_v50, %s4231_s12 }
0x1603   :  { %2778 = vrot.lane.b32.xlu1 %v5790_v46, %s4231_s12 }
0x1604   :  { %v1668_v1 = vpop.permute.xlu1 %1667 }
0x1605   :  { %1692 = vst.msk [vmem:[#allocation8] sm:$0x8] %vm1691_vm13, %v1668_v1  ;;  %v1682_v25 = vpop.permute.xlu0 %1681 }
0x1606   :  { %1699 = vst.msk [vmem:[#allocation8 + $0x38] sm:$0x8] %vm1691_vm13, %v1682_v25  ;;  %2415 = vrot.lane.b32.xlu0 %v5791_v63, %s4231_s12 }
0x1607   :  { %2782 = vrot.lane.b32.xlu1 %v5351_v40, %s4231_s12 }
0x1608   :  { %v1672_v54 = vpop.permute.xlu1 %1671 }
0x1609   :  { %1694 = vst.msk [vmem:[#allocation8 + $0x10] sm:$0x8] %vm1691_vm13, %v1672_v54 }
0x160a   :  { %2419 = vrot.lane.b32.xlu0 %v5792_v22, %s4231_s12 }
0x160b   :  { %2786 = vrot.lane.b32.xlu1 %v5366_v34, %s4231_s12 }
0x160c   :  { %v1676_v57 = vpop.permute.xlu1 %1675 }
0x160d   :  { %1696 = vst.msk [vmem:[#allocation8 + $0x20] sm:$0x8] %vm1691_vm13, %v1676_v57 }
0x160e   :  { %2776 = vrot.lane.b32.xlu0 %v5793_v59, %s4231_s12 }
0x1610   :  { %v1680_v11 = vpop.permute.xlu1 %1679 }
0x1611   :  { %1698 = vst.msk [vmem:[#allocation8 + $0x30] sm:$0x8] %vm1691_vm13, %v1680_v11 }
0x1612   :  { %2780 = vrot.lane.b32.xlu0 %v5347_v62, %s4231_s12 }
0x1614   :  { %v2037_v40 = vpop.permute.xlu1 %2036 }
0x1615   :  { %2061 = vst.msk [vmem:[#allocation8] sm:$0x10] %vm2060_vm14, %v2037_v40 }
0x1616   :  { %2784 = vrot.lane.b32.xlu0 %v5356_v8, %s4231_s12 }
0x161a   :  { %2788 = vrot.lane.b32.xlu0 %v5361_v47, %s4231_s12 }
0x1645   :  { %v3108_v34 = vpop.permute.xlu1 %3107 }
0x1646   :  { %v3129_v8 = vmul.f32 %v5402_v33, %v3108_v34 }
0x1649   :  { %v3112_v52 = vpop.permute.xlu1 %3111 }
0x164a   :  { %v3131_v14 = vmul.f32 %v5406_v23, %v3112_v52 }
0x164c   :  { %v3181_v17 = vrot.slane %v3131_v14, 4 }
0x164d   :  { %v2041_v53 = vpop.permute.xlu1 %2040 }
0x164e   :  { %2063 = vst.msk [vmem:[#allocation8 + $0x10] sm:$0x10] %vm2060_vm14, %v2041_v53 }
0x1650   :  { %v3118_v5 = vpop.permute.xlu0 %3117 }
0x1651   :  { %v3116_v58 = vpop.permute.xlu1 %3115  ;;  %v3134_v49 = vmul.f32 %v5410_v4, %v3118_v5  ;;  %v3177_v4 = vrot.slane %v3129_v8, 6 }
0x1652   :  { %v3133_v33 = vmul.f32 %v5414_v12, %v3116_v58 }
0x1653   :  { %3157 = vrot.lane.b32.xlu1 %v3134_v49, %s4231_s12  ;;  %v3187_v19 = vrot.slane %v3134_v49, 1 }
0x1654   :  { %v3106_v62 = vpop.permute.xlu0 %3105  ;;  %v3185_v60 = vrot.slane %v3133_v33, 2 }
0x1655   :  { %v3128_v42 = vmul.f32 %v5419_v45, %v3106_v62  ;;  %v3104_v31 = vpop.permute.xlu1 %3103 }
0x1656   :  { %v3127_v21 = vmul.f32 %v5422_v30, %v3104_v31 }
0x1657   :  { %3145 = vrot.lane.b32.xlu1 %v3128_v42, %s4231_s12  ;;  %v3176_v47 = vrot.slane %v3128_v42, 7 }
0x1658   :  { %3143 = vrot.lane.b32.xlu0 %v3127_v21, %s4231_s12  ;;  %v3110_v38 = vpop.permute.xlu0 %3109 }
0x1659   :  { %v3130_v56 = vmul.f32 %v5429_v10, %v3110_v38  ;;  %v2045_v2 = vpop.permute.xlu1 %2044  ;;  %v3178_v30 = vsel %vm587_vm3, %v3177_v4, %v3176_v47 }
0x165a   :  { %2065 = vst.msk [vmem:[#allocation8 + $0x20] sm:$0x10] %vm2060_vm14, %v2045_v2 }
0x165b   :  { %v3179_v45 = vrot.slane %v3130_v56, 5  ;;  %3149 = vrot.lane.b32.xlu1 %v3130_v56, %s4231_s12 }
0x165c   :  { %3147 = vrot.lane.b32.xlu0 %v3129_v8, %s4231_s12  ;;  %v3114_v37 = vpop.permute.xlu0 %3113 }
0x165d   :  { %v3180_v43 = vsel %vm590_vm4, %v3179_v45, %v3178_v30  ;;  %v3132_v10 = vmul.f32 %v5436_v29, %v3114_v37  ;;  %v2049_v48 = vpop.permute.xlu1 %2048 }
0x165e   :  { %2067 = vst.msk [vmem:[#allocation8 + $0x30] sm:$0x10] %vm2060_vm14, %v2049_v48  ;;  %v3182_v12 = vsel %vm593_vm5, %v3181_v17, %v3180_v43 }
0x165f   :  { %v3183_v23 = vrot.slane %v3132_v10, 3  ;;  %3153 = vrot.lane.b32.xlu1 %v3132_v10, %s4231_s12 }
0x1660   :  { %3151 = vrot.lane.b32.xlu0 %v3131_v14, %s4231_s12  ;;  %v2039_v0 = vpop.permute.xlu0 %2038 }
0x1661   :  { %v3184_v3 = vsel %vm596_vm6, %v3183_v23, %v3182_v12  ;;  %2062 = vst.msk [vmem:[#allocation8 + $0x8] sm:$0x10] %vm2060_vm14, %v2039_v0  ;;  %v2406_v29 = vpop.permute.xlu1 %2405 }
0x1662   :  { %2430 = vst.msk [vmem:[#allocation8] sm:$0x20] %vm2429_vm15, %v2406_v29  ;;  %v3186_v6 = vsel %vm599_vm7, %v3185_v60, %v3184_v3 }
0x1663   :  { %v3188_v9 = vsel %vm602_vm8, %v3187_v19, %v3186_v6 }
0x1664   :  { %3155 = vrot.lane.b32.xlu0 %v3133_v33, %s4231_s12  ;;  %v2043_v18 = vpop.permute.xlu0 %2042  ;;  %3189 = vrot.lane.b32.xlu1 %v3188_v9, %s4231_s12 }
0x1665   :  { %2064 = vst.msk [vmem:[#allocation8 + $0x18] sm:$0x10] %vm2060_vm14, %v2043_v18  ;;  %v2410_v36 = vpop.permute.xlu1 %2409 }
0x1666   :  { %2432 = vst.msk [vmem:[#allocation8 + $0x10] sm:$0x20] %vm2429_vm15, %v2410_v36 }
0x1668   :  { %3216 = vrot.lane.b32.xlu0 %v5509_v32, %s4232_s13  ;;  %v2047_v55 = vpop.permute.xlu0 %2046  ;;  %3218 = vrot.lane.b32.xlu1 %v5532_v7, %s4232_s13 }
0x1669   :  { %2066 = vst.msk [vmem:[#allocation8 + $0x28] sm:$0x10] %vm2060_vm14, %v2047_v55  ;;  %v2414_v20 = vpop.permute.xlu1 %2413 }
0x166a   :  { %2434 = vst.msk [vmem:[#allocation8 + $0x20] sm:$0x20] %vm2429_vm15, %v2414_v20 }
0x166c   :  { %v2051_v28 = vpop.permute.xlu0 %2050 }
0x166d   :  { %2068 = vst.msk [vmem:[#allocation8 + $0x38] sm:$0x10] %vm2060_vm14, %v2051_v28  ;;  %v2418_v13 = vpop.permute.xlu1 %2417 }
0x166e   :  { %2436 = vst.msk [vmem:[#allocation8 + $0x30] sm:$0x20] %vm2429_vm15, %v2418_v13 }
0x1670   :  { %v2408_v51 = vpop.permute.xlu0 %2407 }
0x1671   :  { %2431 = vst.msk [vmem:[#allocation8 + $0x8] sm:$0x20] %vm2429_vm15, %v2408_v51  ;;  %v2775_v35 = vpop.permute.xlu1 %2774 }
0x1672   :  { %2799 = vst.msk [vmem:[#allocation8] sm:$0x40] %vm2798_vm0, %v2775_v35 }
0x1674   :  { %v2412_v32 = vpop.permute.xlu0 %2411 }
0x1675   :  { %2433 = vst.msk [vmem:[#allocation8 + $0x18] sm:$0x20] %vm2429_vm15, %v2412_v32  ;;  %v2779_v7 = vpop.permute.xlu1 %2778 }
0x1676   :  { %2801 = vst.msk [vmem:[#allocation8 + $0x10] sm:$0x40] %vm2798_vm0, %v2779_v7 }
0x1678   :  { %v2416_v24 = vpop.permute.xlu0 %2415 }
0x1679   :  { %2435 = vst.msk [vmem:[#allocation8 + $0x28] sm:$0x20] %vm2429_vm15, %v2416_v24  ;;  %v2783_v15 = vpop.permute.xlu1 %2782 }
0x167a   :  { %2803 = vst.msk [vmem:[#allocation8 + $0x20] sm:$0x40] %vm2798_vm0, %v2783_v15 }
0x167c   :  { %v2420_v44 = vpop.permute.xlu0 %2419 }
0x167d   :  { %2437 = vst.msk [vmem:[#allocation8 + $0x38] sm:$0x20] %vm2429_vm15, %v2420_v44  ;;  %v2787_v26 = vpop.permute.xlu1 %2786 }
0x167e   :  { %2805 = vst.msk [vmem:[#allocation8 + $0x30] sm:$0x40] %vm2798_vm0, %v2787_v26 }
0x1680   :  { %v2777_v39 = vpop.permute.xlu0 %2776 }
0x1681   :  { %2800 = vst.msk [vmem:[#allocation8 + $0x8] sm:$0x40] %vm2798_vm0, %v2777_v39 }
0x1684   :  { %v2781_v16 = vpop.permute.xlu0 %2780 }
0x1685   :  { %2802 = vst.msk [vmem:[#allocation8 + $0x18] sm:$0x40] %vm2798_vm0, %v2781_v16 }
0x1688   :  { %v2785_v41 = vpop.permute.xlu0 %2784 }
0x1689   :  { %2804 = vst.msk [vmem:[#allocation8 + $0x28] sm:$0x40] %vm2798_vm0, %v2785_v41 }
0x168c   :  { %v2789_v61 = vpop.permute.xlu0 %2788 }
0x168d   :  { %2806 = vst.msk [vmem:[#allocation8 + $0x38] sm:$0x40] %vm2798_vm0, %v2789_v61 }
0x16c5   :  { %v3158_v27 = vpop.permute.xlu1 %3157 }
0x16c6   :  { %3175 = vst.msk [vmem:[#allocation8 + $0x38] sm:$0x80] %vm3167_vm1, %v3158_v27 }
0x16c9   :  { %v3146_v50 = vpop.permute.xlu1 %3145 }
0x16ca   :  { %v3144_v46 = vpop.permute.xlu0 %3143  ;;  %3169 = vst.msk [vmem:[#allocation8 + $0x8] sm:$0x80] %vm3167_vm1, %v3146_v50 }
0x16cb   :  { %3168 = vst.msk [vmem:[#allocation8] sm:$0x80] %vm3167_vm1, %v3144_v46  ;;  %3192 = vst.msk [vmem:[#allocation9 - $0x7] sm:$0x80] %vm3167_vm1, %v3144_v46 }
0x16cd   :  { %v3150_v1 = vpop.permute.xlu1 %3149 }
0x16ce   :  { %v3148_v25 = vpop.permute.xlu0 %3147  ;;  %3171 = vst.msk [vmem:[#allocation8 + $0x18] sm:$0x80] %vm3167_vm1, %v3150_v1 }
0x16cf   :  { %3170 = vst.msk [vmem:[#allocation8 + $0x10] sm:$0x80] %vm3167_vm1, %v3148_v25 }
0x16d1   :  { %v3154_v63 = vpop.permute.xlu1 %3153 }
0x16d2   :  { %v3152_v54 = vpop.permute.xlu0 %3151  ;;  %3173 = vst.msk [vmem:[#allocation8 + $0x28] sm:$0x80] %vm3167_vm1, %v3154_v63 }
0x16d3   :  { %3172 = vst.msk [vmem:[#allocation8 + $0x20] sm:$0x80] %vm3167_vm1, %v3152_v54 }
0x16d6   :  { %v3156_v22 = vpop.permute.xlu0 %3155  ;;  %v3190_v57 = vpop.permute.xlu1 %3189 }
0x16d7   :  { %3174 = vst.msk [vmem:[#allocation8 + $0x30] sm:$0x80] %vm3167_vm1, %v3156_v22 }
0x16d8   :  { %3194 = vst.msk [vmem:[#allocation9 + $0x1] sm:$0x7f] %vm3193_vm2, %v3190_v57 }
0x16d9   :  { %4159 = shalt.err (!%p4156_p0)
}
0x16da   :  { %s4160_s22 = scalar_lea.hbm %s5720_s5, 128 }
0x16db   :  { %p4161_p1 = scmp.ne.s32.totalorder %s5720_s5, %s4160_s22  ;;  %p4164_p2 = scmp.lt.u32.totalorder %s4160_s22, %s5720_s5 }
0x16dd   :  { %p4166_p3 = pnand %p4164_p2, %p4161_p1 }
0x16df   :  { %4169 = shalt.err (!%p4166_p3)
}
0x16e0   :  { %3245 = dma.vmem_to_hbm [thread:$0]  %s3243_s15, 128, %s5720_s5, [#allocation10]  }
0x16e1   :  { %s4170_s30 = scalar_lea.vmem %s5658_s17, 1024  ;;  %p4175_p5 = scmp.lt.s32.totalorder %s5658_s17, %s5658_s17 }
0x16e2   :  { %p4171_p4 = scmp.ne.s32.totalorder %s5658_s17, %s4170_s30  ;;  %p4176_p6 = scmp.lt.s32.totalorder %s4170_s30, %s4170_s30 }
0x16e4   :  { %p4177_p7 = por %p4176_p6, %p4175_p5 }
0x16e6   :  { %p4178_p8 = pnand %p4177_p7, %p4171_p4 }
0x16e8   :  { %4181 = shalt.err (!%p4178_p8)
}
0x16e9   :  { %s4182_s0 = scalar_lea.hbm %s5719_s4, 1024 }
0x16ea   :  { %p4183_p9 = scmp.ne.s32.totalorder %s5719_s4, %s4182_s0  ;;  %p4186_p10 = scmp.lt.u32.totalorder %s4182_s0, %s5719_s4 }
0x16ec   :  { %p4188_p11 = pnand %p4186_p10, %p4183_p9 }
0x16ee   :  { %4191 = shalt.err (!%p4188_p11)
}
0x16ef   :  { %3235 = dma.vmem_to_hbm [thread:$0]  %s5658_s17, 1024, %s5719_s4, [#allocation4], %s4224_s9, %s4224_s9, %s4225_s10   ;;  %v3217_v59 = vpop.permute.xlu0 %3216  ;;  %v3219_v11 = vpop.permute.xlu1 %3218 }
0x16f0   :  { %3222 = vst.msk [vmem:[#allocation11 - $0x7] sm:$0x80] %vm3167_vm1, %v3217_v59  ;;  %s4192_s13 = scalar_lea.vmem %s5662_s19, 128  ;;  %p4197_p13 = scmp.lt.s32.totalorder %s5662_s19, %s5662_s19 }
0x16f1   :  { %3223 = vst.msk [vmem:[#allocation11 + $0x1] sm:$0x7f] %vm3193_vm2, %v3219_v11  ;;  %p4193_p12 = scmp.ne.s32.totalorder %s5662_s19, %s4192_s13  ;;  %p4198_p0 = scmp.lt.s32.totalorder %s4192_s13, %s4192_s13 }
0x16f3   :  { %p4199_p1 = por %p4198_p0, %p4197_p13 }
0x16f5   :  { %p4200_p2 = pnand %p4199_p1, %p4193_p12 }
0x16f7   :  { %4203 = shalt.err (!%p4200_p2)
}
0x16f8   :  { %s4204_s16 = scalar_lea.hbm %s5721_s6, 128 }
0x16f9   :  { %p4205_p3 = scmp.ne.s32.totalorder %s5721_s6, %s4204_s16  ;;  %p4208_p4 = scmp.lt.u32.totalorder %s4204_s16, %s5721_s6 }
0x16fb   :  { %p4210_p5 = pnand %p4208_p4, %p4205_p3 }
0x16fd   :  { %4213 = shalt.err (!%p4210_p5)
}
0x16fe   :  { %3255 = dma.vmem_to_hbm [thread:$0]  %s5662_s19, 128, %s5721_s6, [#allocation10]  }
0x16ff   :  { %4218 = dma.done.wait [#allocation4], 1024  }
0x1700   :  { %4219 = vsyncadd [#allocation4], 4294966272 }
0x1701   :  { %4220 = dma.done.wait [#allocation10], 256  }
0x1702   :  { %4221 = vsyncadd [#allocation10], 4294967040 }
0x1703   :  { %3265 = vsyncpa [#allocation3], 1 }
0x1704   :  { %3266 = vsyncpa [#allocation6], 1 }
0x1705   :  { %3267 = vsyncpa [#allocation4], 1 }
0x1706   :  { %3268 = vsyncpa [#allocation10], 1 }

</bundles_post_ra>
